<compile_context>
chip_gen: v6e
topology: v6e:2x2x1
jax: 0.10.0
libtpu: 0.0.40
codegen_flags: <defaults>
</compile_context>

<pallas_src>
import math

import jax
import jax.numpy as jnp
from jax.experimental import pallas as pl
from jax.experimental.pallas import tpu as pltpu

VOCAB_SIZE = 64
MAX_POS = 16
HIDDEN = 256
NUM_HEADS = 2            # head_dim = 128 keeps every head slice lane-tile aligned
HEAD_DIM = HIDDEN // NUM_HEADS
INTERMEDIATE = 1024
NUM_LAYERS = 2
LABEL_NUM = 4
LABEL_PAD = 128          # lane-dense classifier width (real logits in cols [0, LABEL_NUM))
LN_EPS = 1e-12


# ---------------------------------------------------------------------------
# In-kernel helpers
# ---------------------------------------------------------------------------
def _layernorm(h, g, b):
    mu = jnp.mean(h, axis=-1, keepdims=True)
    var = jnp.mean(jnp.square(h - mu), axis=-1, keepdims=True)
    return (h - mu) * jax.lax.rsqrt(var + LN_EPS) * g + b


def _dot_bf16(a, w_bf16, bias_f32):
    return jnp.dot(a.astype(jnp.bfloat16), w_bf16,
                   preferred_element_type=jnp.float32) + bias_f32


# ---------------------------------------------------------------------------
# Single fused kernel: grid = (NUM_LAYERS,), whole batch blocked per step.
# Activation lives in a VMEM scratch across layers; layer-(l+1) weights are
# double-buffered by the BlockSpec pipeline while layer l computes.
# ---------------------------------------------------------------------------
def _make_kernel(B, S):
    BS = B * S

    def kernel(emb_ref, bias_ref, emb_g_ref, emb_b_ref,
               wqkv_ref, bqkv_ref, wo_ref, bo_ref, ln1g_ref, ln1b_ref,
               w1_ref, b1_ref, w2_ref, b2_ref, ln2g_ref, ln2b_ref,
               fcw_ref, fcb_ref, onehot_ref,
               logits_ref, loss_ref, resid_ref):
        layer = pl.program_id(0)

        @pl.when(layer == 0)
        def _():
            # Embedding LayerNorm fused into the first layer's init.
            emb = emb_ref[...].astype(jnp.float32)                   # (BS, H) f32
            resid_ref[...] = _layernorm(emb, emb_g_ref[...], emb_b_ref[...])

        x = resid_ref[...]                                           # (BS, H) f32

        # ---- self-attention: one fused QKV matmul for the whole batch tile ----
        qkv = _dot_bf16(x, wqkv_ref[...], bqkv_ref[...])             # (BS, 3H) f32
        bias = bias_ref[...]                                         # (B, 1, S) additive mask
        scale = 1.0 / math.sqrt(HEAD_DIM)

        attn_acc = None
        for h in range(NUM_HEADS):                                   # short static unroll
            lo, hi = h * HEAD_DIM, (h + 1) * HEAD_DIM                # 128-aligned slices
            q = qkv[:, lo:hi].reshape(B, S, HEAD_DIM)
            k = qkv[:, HIDDEN + lo:HIDDEN + hi].reshape(B, S, HEAD_DIM)
            v = qkv[:, 2 * HIDDEN + lo:2 * HIDDEN + hi].reshape(B, S, HEAD_DIM)

            # batched over the batch dim (single 3-D MXU push per head)
            s = jnp.einsum('bqd,bkd->bqk',
                           q.astype(jnp.bfloat16), k.astype(jnp.bfloat16),
                           preferred_element_type=jnp.float32)       # (B, S, S)
            s = s * scale + bias
            s = s - jnp.max(s, axis=-1, keepdims=True)
            p = jnp.exp(s)
            p = p / jnp.sum(p, axis=-1, keepdims=True)               # exact division (parity)
            ctx = jnp.einsum('bqk,bkd->bqd',
                             p.astype(jnp.bfloat16), v.astype(jnp.bfloat16),
                             preferred_element_type=jnp.float32)     # (B, S, Dh)

            # per-head output-projection accumulation (no lane concatenate)
            contrib = jnp.dot(ctx.reshape(BS, HEAD_DIM).astype(jnp.bfloat16),
                              wo_ref[lo:hi, :],
                              preferred_element_type=jnp.float32)    # (BS, H)
            attn_acc = contrib if attn_acc is None else attn_acc + contrib

        attn_out = attn_acc + bo_ref[...]
        h1 = _layernorm(attn_out + x, ln1g_ref[...], ln1b_ref[...])

        # ---- FFN ---------------------------------------------------------------
        f = _dot_bf16(h1, w1_ref[...], b1_ref[...])                  # (BS, I)
        # TODO(synk): PyTorch nn.GELU default is exact erf; tanh approx used here.
        f = jax.nn.gelu(f, approximate=True)
        f = _dot_bf16(f, w2_ref[...], b2_ref[...])                   # (BS, H)
        h2 = _layernorm(f + h1, ln2g_ref[...], ln2b_ref[...])

        resid_ref[...] = h2                                          # stays VMEM-resident

        # ---- fused classifier head on the last layer ---------------------------
        @pl.when(layer == NUM_LAYERS - 1)
        def _():
            # CLS rows are rows b*S of the flattened activation (B is tiny & static).
            cls = jnp.concatenate([h2[b * S:b * S + 1, :] for b in range(B)], axis=0)
            # TODO(synk): nn.Dropout(0.1) on CLS is identity in eval mode (training RNG mask not implemented).
            logits = jnp.dot(cls.astype(jnp.bfloat16), fcw_ref[...],
                             preferred_element_type=jnp.float32) + fcb_ref[...]  # (B, LABEL_PAD)
            logits_ref[...] = logits
            m = jnp.max(logits, axis=-1, keepdims=True)
            lse = jnp.log(jnp.sum(jnp.exp(logits - m), axis=-1, keepdims=True)) + m
            picked = jnp.sum(onehot_ref[...] * logits, axis=-1, keepdims=True)    # (B, 1)
            loss_ref[...] = jnp.mean(lse - picked, keepdims=True)                 # (1, 1)

    return kernel


def run_fused_forward(params, emb_flat, mask_bias, onehot_pad, B, S):
    p = params
    kernel = _make_kernel(B, S)
    logits_pad, loss = pl.pallas_call(
        kernel,
        out_shape=(jax.ShapeDtypeStruct((B, LABEL_PAD), jnp.float32),
                   jax.ShapeDtypeStruct((1, 1), jnp.float32)),
        grid=(NUM_LAYERS,),
        in_specs=[
            pl.BlockSpec((B * S, HIDDEN), lambda l: (0, 0)),                    # emb (bf16, fetched once)
            pl.BlockSpec((B, 1, S), lambda l: (0, 0, 0)),                       # additive mask bias
            pl.BlockSpec((1, HIDDEN), lambda l: (0, 0)),                        # emb_ln_g
            pl.BlockSpec((1, HIDDEN), lambda l: (0, 0)),                        # emb_ln_b
            pl.BlockSpec((None, HIDDEN, 3 * HIDDEN), lambda l: (l, 0, 0)),      # wqkv
            pl.BlockSpec((None, 1, 3 * HIDDEN), lambda l: (l, 0, 0)),           # bqkv
            pl.BlockSpec((None, HIDDEN, HIDDEN), lambda l: (l, 0, 0)),          # wo
            pl.BlockSpec((None, 1, HIDDEN), lambda l: (l, 0, 0)),               # bo
            pl.BlockSpec((None, 1, HIDDEN), lambda l: (l, 0, 0)),               # ln1_g
            pl.BlockSpec((None, 1, HIDDEN), lambda l: (l, 0, 0)),               # ln1_b
            pl.BlockSpec((None, HIDDEN, INTERMEDIATE), lambda l: (l, 0, 0)),    # w1
            pl.BlockSpec((None, 1, INTERMEDIATE), lambda l: (l, 0, 0)),         # b1
            pl.BlockSpec((None, INTERMEDIATE, HIDDEN), lambda l: (l, 0, 0)),    # w2
            pl.BlockSpec((None, 1, HIDDEN), lambda l: (l, 0, 0)),               # b2
            pl.BlockSpec((None, 1, HIDDEN), lambda l: (l, 0, 0)),               # ln2_g
            pl.BlockSpec((None, 1, HIDDEN), lambda l: (l, 0, 0)),               # ln2_b
            pl.BlockSpec((HIDDEN, LABEL_PAD), lambda l: (0, 0)),                # fc_w (padded)
            pl.BlockSpec((1, LABEL_PAD), lambda l: (0, 0)),                     # fc_b (padded)
            pl.BlockSpec((B, LABEL_PAD), lambda l: (0, 0)),                     # one-hot labels (padded)
        ],
        out_specs=(pl.BlockSpec((B, LABEL_PAD), lambda l: (0, 0)),
                   pl.BlockSpec((1, 1), lambda l: (0, 0))),
        scratch_shapes=[pltpu.VMEM((B * S, HIDDEN), jnp.float32)],              # resident activation
        compiler_params=pltpu.CompilerParams(
            dimension_semantics=("arbitrary",),
            vmem_limit_bytes=32 * 1024 * 1024),
    )(emb_flat, mask_bias, p["emb_ln_g"], p["emb_ln_b"],
      p["wqkv"], p["bqkv"], p["wo"], p["bo"], p["ln1_g"], p["ln1_b"],
      p["w1"], p["b1"], p["w2"], p["b2"], p["ln2_g"], p["ln2_b"],
      p["fc_w"], p["fc_b"], onehot_pad)
    return logits_pad, loss


# ---------------------------------------------------------------------------
# Parameter init (deterministic, synthetic; weights stored bf16, fused/stacked)
# ---------------------------------------------------------------------------
def init_params(key):
    keys = iter(jax.random.split(key, 64))

    def nrm(shape, scale=0.02):
        return (scale * jax.random.normal(next(keys), shape)).astype(jnp.float32)

    L, H, I = NUM_LAYERS, HIDDEN, INTERMEDIATE
    fc_w = nrm((H, LABEL_NUM))
    fc_w_pad = jnp.concatenate(
        [fc_w, jnp.zeros((H, LABEL_PAD - LABEL_NUM), jnp.float32)], axis=1)
    fc_b_pad = jnp.concatenate(
        [jnp.zeros((1, LABEL_NUM), jnp.float32),
         jnp.full((1, LABEL_PAD - LABEL_NUM), -1e9, jnp.float32)], axis=1)

    params = {
        "word_emb": nrm((VOCAB_SIZE, H)),
        "pos_emb": nrm((MAX_POS, H)),
        "type_emb": nrm((2, H)),
        "emb_ln_g": jnp.ones((1, H), jnp.float32),
        "emb_ln_b": jnp.zeros((1, H), jnp.float32),
        # fused wq|wk|wv, stacked over layers
        "wqkv": nrm((L, H, 3 * H)).astype(jnp.bfloat16),
        "bqkv": jnp.zeros((L, 1, 3 * H), jnp.float32),
        "wo": nrm((L, H, H)).astype(jnp.bfloat16),
        "bo": jnp.zeros((L, 1, H), jnp.float32),
        "ln1_g": jnp.ones((L, 1, H), jnp.float32),
        "ln1_b": jnp.zeros((L, 1, H), jnp.float32),
        "w1": nrm((L, H, I)).astype(jnp.bfloat16),
        "b1": jnp.zeros((L, 1, I), jnp.float32),
        "w2": nrm((L, I, H)).astype(jnp.bfloat16),
        "b2": jnp.zeros((L, 1, H), jnp.float32),
        "ln2_g": jnp.ones((L, 1, H), jnp.float32),
        "ln2_b": jnp.zeros((L, 1, H), jnp.float32),
        "fc_w": fc_w_pad.astype(jnp.bfloat16),
        "fc_b": fc_b_pad,
    }
    return params


# ---------------------------------------------------------------------------
# Forward pass (mirrors BERT_Classifier.forward)
# ---------------------------------------------------------------------------
def bert_classifier_forward(params, input_ids, attention_mask, label=None):
    B, S = input_ids.shape

    # embeddings (gather is XLA glue); LayerNorm happens inside the kernel.
    we = jnp.take(params["word_emb"], input_ids, axis=0)          # (B, S, H)
    pe = params["pos_emb"][:S][None, :, :]
    te = params["type_emb"][0][None, None, :]                     # token_type_ids = 0
    # bf16 into the kernel halves the activation DMA in; LN math is f32 in-kernel.
    emb_flat = (we + pe + te).astype(jnp.bfloat16).reshape(B * S, HIDDEN)
    # embedding / attention / hidden dropout: identity (eval semantics)
    # TODO(synk): nn.Dropout(0.1) training-mode RNG mask not implemented.

    # extended attention mask -> additive bias (B, 1, S); broadcast over heads/queries in-kernel.
    mask_bias = ((1.0 - attention_mask.astype(jnp.float32)) * -10000.0)[:, None, :]

    if label is None:
        onehot_pad = jnp.zeros((B, LABEL_PAD), jnp.float32)
    else:
        onehot_pad = jax.nn.one_hot(label, LABEL_PAD, dtype=jnp.float32)

    logits_pad, loss = run_fused_forward(params, emb_flat, mask_bias, onehot_pad, B, S)
    logits = logits_pad[:, :LABEL_NUM]

    if label is None:
        return None, logits
    return loss[0, 0], logits


# ---------------------------------------------------------------------------
if __name__ == "__main__":
    key = jax.random.PRNGKey(0)
    kp, ki, kl = jax.random.split(key, 3)

    params = init_params(kp)

    B, S = 2, 8
    input_ids = jax.random.randint(ki, (B, S), 0, VOCAB_SIZE, dtype=jnp.int32)
    attention_mask = jnp.array([[1, 1, 1, 1, 1, 1, 1, 1],
                                [1, 1, 1, 1, 1, 1, 0, 0]], dtype=jnp.int32)
    label = jax.random.randint(kl, (B,), 0, LABEL_NUM, dtype=jnp.int32)

    # inference path (label is None)
    none_loss, logits = bert_classifier_forward(params, input_ids, attention_mask)
    jax.block_until_ready(logits)
    assert none_loss is None and logits.shape == (B, LABEL_NUM)
    assert bool(jnp.all(jnp.isfinite(logits)))

    # training-loss path (label provided)
    loss, logits2 = bert_classifier_forward(params, input_ids, attention_mask, label)
    jax.block_until_ready((loss, logits2))
    assert logits2.shape == (B, LABEL_NUM) and bool(jnp.isfinite(loss))

    print("KERNEL_OK")
</pallas_src>

<mosaic_0001>
module attributes {stable_mosaic.version = 11 : i64} {
  func.func @kernel(%arg0: i32, %arg1: memref<16x256xbf16, #tpu.memory_space<vmem>>, %arg2: memref<2x1x8xf32, #tpu.memory_space<vmem>>, %arg3: memref<1x256xf32, #tpu.memory_space<vmem>>, %arg4: memref<1x256xf32, #tpu.memory_space<vmem>>, %arg5: memref<1x256x768xbf16, #tpu.memory_space<vmem>>, %arg6: memref<1x1x768xf32, #tpu.memory_space<vmem>>, %arg7: memref<1x256x256xbf16, #tpu.memory_space<vmem>>, %arg8: memref<1x1x256xf32, #tpu.memory_space<vmem>>, %arg9: memref<1x1x256xf32, #tpu.memory_space<vmem>>, %arg10: memref<1x1x256xf32, #tpu.memory_space<vmem>>, %arg11: memref<1x256x1024xbf16, #tpu.memory_space<vmem>>, %arg12: memref<1x1x1024xf32, #tpu.memory_space<vmem>>, %arg13: memref<1x1024x256xbf16, #tpu.memory_space<vmem>>, %arg14: memref<1x1x256xf32, #tpu.memory_space<vmem>>, %arg15: memref<1x1x256xf32, #tpu.memory_space<vmem>>, %arg16: memref<1x1x256xf32, #tpu.memory_space<vmem>>, %arg17: memref<256x128xbf16, #tpu.memory_space<vmem>>, %arg18: memref<1x128xf32, #tpu.memory_space<vmem>>, %arg19: memref<2x128xf32, #tpu.memory_space<vmem>>, %arg20: memref<2x128xf32, #tpu.memory_space<vmem>>, %arg21: memref<1x1xf32, #tpu.memory_space<vmem>>, %arg22: memref<16x256xf32, #tpu.memory_space<vmem>>) attributes {dimension_semantics = [#tpu.dimension_semantics<arbitrary>], iteration_bounds = array<i64: 2>, scalar_prefetch = 0 : i64, scratch_operands = 1 : i64, tpu.core_type = #tpu.core_type<tc>, window_params = [{pipeline_mode = #tpu.pipeline_mode<synchronous>, transform_indices = @transform_0, window_bounds = array<i64: 16, 256>}, {pipeline_mode = #tpu.pipeline_mode<synchronous>, transform_indices = @transform_1, window_bounds = array<i64: 2, 1, 8>}, {pipeline_mode = #tpu.pipeline_mode<synchronous>, transform_indices = @transform_2, window_bounds = array<i64: 1, 256>}, {pipeline_mode = #tpu.pipeline_mode<synchronous>, transform_indices = @transform_3, window_bounds = array<i64: 1, 256>}, {transform_indices = @transform_4, window_bounds = array<i64: 1, 256, 768>}, {transform_indices = @transform_5, window_bounds = array<i64: 1, 1, 768>}, {transform_indices = @transform_6, window_bounds = array<i64: 1, 256, 256>}, {transform_indices = @transform_7, window_bounds = array<i64: 1, 1, 256>}, {transform_indices = @transform_8, window_bounds = array<i64: 1, 1, 256>}, {transform_indices = @transform_9, window_bounds = array<i64: 1, 1, 256>}, {transform_indices = @transform_10, window_bounds = array<i64: 1, 256, 1024>}, {transform_indices = @transform_11, window_bounds = array<i64: 1, 1, 1024>}, {transform_indices = @transform_12, window_bounds = array<i64: 1, 1024, 256>}, {transform_indices = @transform_13, window_bounds = array<i64: 1, 1, 256>}, {transform_indices = @transform_14, window_bounds = array<i64: 1, 1, 256>}, {transform_indices = @transform_15, window_bounds = array<i64: 1, 1, 256>}, {pipeline_mode = #tpu.pipeline_mode<synchronous>, transform_indices = @transform_16, window_bounds = array<i64: 256, 128>}, {pipeline_mode = #tpu.pipeline_mode<synchronous>, transform_indices = @transform_17, window_bounds = array<i64: 1, 128>}, {pipeline_mode = #tpu.pipeline_mode<synchronous>, transform_indices = @transform_18, window_bounds = array<i64: 2, 128>}, {pipeline_mode = #tpu.pipeline_mode<synchronous>, transform_indices = @transform_19, window_bounds = array<i64: 2, 128>}, {pipeline_mode = #tpu.pipeline_mode<synchronous>, transform_indices = @transform_20, window_bounds = array<i64: 1, 1>}]} {
    %c0_i32 = arith.constant 0 : i32
    %0 = arith.cmpi eq, %arg0, %c0_i32 : i32
    %1 = arith.extui %0 : i1 to i32
    %c0_i32_0 = arith.constant 0 : i32
    %2 = arith.cmpi ne, %1, %c0_i32_0 : i32
    scf.if %2 {
      %c0_74 = arith.constant 0 : index
      %c0_75 = arith.constant 0 : index
      %165 = vector.load %arg1[%c0_74, %c0_75] : memref<16x256xbf16, #tpu.memory_space<vmem>>, vector<16x256xbf16>
      %166 = arith.extf %165 : vector<16x256xbf16> to vector<16x256xf32>
      %c0_76 = arith.constant 0 : index
      %c0_77 = arith.constant 0 : index
      %167 = vector.load %arg3[%c0_76, %c0_77] : memref<1x256xf32, #tpu.memory_space<vmem>>, vector<1x256xf32>
      %c0_78 = arith.constant 0 : index
      %c0_79 = arith.constant 0 : index
      %168 = vector.load %arg4[%c0_78, %c0_79] : memref<1x256xf32, #tpu.memory_space<vmem>>, vector<1x256xf32>
      %cst_80 = arith.constant dense<0.000000e+00> : vector<16xf32>
      %169 = vector.multi_reduction <add>, %166, %cst_80 [1] : vector<16x256xf32> to vector<16xf32>
      %170 = vector.shape_cast %169 : vector<16xf32> to vector<16x1xf32>
      %cst_81 = arith.constant 2.560000e+02 : f32
      %171 = vector.broadcast %cst_81 : f32 to vector<16x1xf32>
      %172 = arith.divf %170, %171 : vector<16x1xf32>
      %173 = vector.broadcast %172 : vector<16x1xf32> to vector<16x256xf32>
      %174 = arith.subf %166, %173 : vector<16x256xf32>
      %175 = arith.mulf %174, %174 : vector<16x256xf32>
      %cst_82 = arith.constant dense<0.000000e+00> : vector<16xf32>
      %176 = vector.multi_reduction <add>, %175, %cst_82 [1] : vector<16x256xf32> to vector<16xf32>
      %177 = vector.shape_cast %176 : vector<16xf32> to vector<16x1xf32>
      %cst_83 = arith.constant 2.560000e+02 : f32
      %178 = vector.broadcast %cst_83 : f32 to vector<16x1xf32>
      %179 = arith.divf %177, %178 : vector<16x1xf32>
      %180 = vector.broadcast %172 : vector<16x1xf32> to vector<16x256xf32>
      %181 = arith.subf %166, %180 : vector<16x256xf32>
      %cst_84 = arith.constant 9.99999996E-13 : f32
      %182 = vector.broadcast %cst_84 : f32 to vector<16x1xf32>
      %183 = arith.addf %179, %182 : vector<16x1xf32>
      %184 = math.rsqrt %183 : vector<16x1xf32>
      %185 = vector.broadcast %184 : vector<16x1xf32> to vector<16x256xf32>
      %186 = arith.mulf %181, %185 : vector<16x256xf32>
      %187 = vector.broadcast %167 : vector<1x256xf32> to vector<16x256xf32>
      %188 = arith.mulf %186, %187 : vector<16x256xf32>
      %189 = vector.broadcast %168 : vector<1x256xf32> to vector<16x256xf32>
      %190 = arith.addf %188, %189 : vector<16x256xf32>
      %c0_85 = arith.constant 0 : index
      %c0_86 = arith.constant 0 : index
      %191 = vector.load %arg22[%c0_85, %c0_86] : memref<16x256xf32, #tpu.memory_space<vmem>>, vector<16x256xf32>
      tpu.vector_store %arg22[%c0_85, %c0_86], %190 {strides = array<i32>} : memref<16x256xf32, #tpu.memory_space<vmem>>, vector<16x256xf32>,
    } else {
    }
    %c0 = arith.constant 0 : index
    %c0_1 = arith.constant 0 : index
    %3 = vector.load %arg22[%c0, %c0_1] : memref<16x256xf32, #tpu.memory_space<vmem>>, vector<16x256xf32>
    %c0_2 = arith.constant 0 : index
    %c0_3 = arith.constant 0 : index
    %c0_4 = arith.constant 0 : index
    %4 = vector.load %arg5[%c0_2, %c0_3, %c0_4] : memref<1x256x768xbf16, #tpu.memory_space<vmem>>, vector<1x256x768xbf16>
    %5 = vector.shape_cast %4 : vector<1x256x768xbf16> to vector<256x768xbf16>
    %c0_5 = arith.constant 0 : index
    %c0_6 = arith.constant 0 : index
    %c0_7 = arith.constant 0 : index
    %6 = vector.load %arg6[%c0_5, %c0_6, %c0_7] : memref<1x1x768xf32, #tpu.memory_space<vmem>>, vector<1x1x768xf32>
    %7 = vector.shape_cast %6 : vector<1x1x768xf32> to vector<1x768xf32>
    %8 = arith.truncf %3 : vector<16x256xf32> to vector<16x256xbf16>
    %cst = arith.constant dense<0.000000e+00> : vector<16x768xf32>
    %9 = tpu.matmul %8, %5, %cst {dimension_numbers = #tpu.dot_dimension_numbers<[1], [0], [0], [1], [0, 0, 1, 1], [], []>} : vector<16x256xbf16>, vector<256x768xbf16>, vector<16x768xf32> -> vector<16x768xf32>
    %10 = vector.broadcast %7 : vector<1x768xf32> to vector<16x768xf32>
    %11 = arith.addf %9, %10 : vector<16x768xf32>
    %c0_8 = arith.constant 0 : index
    %c0_9 = arith.constant 0 : index
    %c0_10 = arith.constant 0 : index
    %12 = vector.load %arg2[%c0_8, %c0_9, %c0_10] : memref<2x1x8xf32, #tpu.memory_space<vmem>>, vector<2x1x8xf32>
    %13 = vector.extract_strided_slice %11 {offsets = [0, 0], sizes = [16, 128], strides = [1, 1]} : vector<16x768xf32> to vector<16x128xf32>
    %14 = vector.shape_cast %13 : vector<16x128xf32> to vector<2x8x128xf32>
    %15 = vector.extract_strided_slice %11 {offsets = [0, 256], sizes = [16, 128], strides = [1, 1]} : vector<16x768xf32> to vector<16x128xf32>
    %16 = vector.shape_cast %15 : vector<16x128xf32> to vector<2x8x128xf32>
    %17 = vector.extract_strided_slice %11 {offsets = [0, 512], sizes = [16, 128], strides = [1, 1]} : vector<16x768xf32> to vector<16x128xf32>
    %18 = vector.shape_cast %17 : vector<16x128xf32> to vector<2x8x128xf32>
    %19 = arith.truncf %14 : vector<2x8x128xf32> to vector<2x8x128xbf16>
    %20 = arith.truncf %16 : vector<2x8x128xf32> to vector<2x8x128xbf16>
    "tpu.trace_start"() <{level = 10 : i32, message = "bqd,bkd->bqk"}> : () -> ()
    %cst_11 = arith.constant dense<0.000000e+00> : vector<2x8x8xf32>
    %21 = tpu.matmul %19, %20, %cst_11 {dimension_numbers = #tpu.dot_dimension_numbers<[2], [2], [1], [1], [0, 0, 0, 1, 1, 1], [0], [0]>} : vector<2x8x128xbf16>, vector<2x8x128xbf16>, vector<2x8x8xf32> -> vector<2x8x8xf32>
    "tpu.trace_stop"() : () -> ()
    %cst_12 = arith.constant 0.0883883461 : f32
    %22 = vector.broadcast %cst_12 : f32 to vector<2x8x8xf32>
    %23 = arith.mulf %21, %22 : vector<2x8x8xf32>
    %24 = vector.broadcast %12 : vector<2x1x8xf32> to vector<2x8x8xf32>
    %25 = arith.addf %23, %24 : vector<2x8x8xf32>
    %cst_13 = arith.constant dense<0xFF800000> : vector<2x8xf32>
    %26 = vector.multi_reduction <maximumf>, %25, %cst_13 [2] : vector<2x8x8xf32> to vector<2x8xf32>
    %27 = vector.shape_cast %26 : vector<2x8xf32> to vector<2x8x1xf32>
    %28 = vector.broadcast %27 : vector<2x8x1xf32> to vector<2x8x8xf32>
    %29 = arith.subf %25, %28 : vector<2x8x8xf32>
    %30 = math.exp %29 : vector<2x8x8xf32>
    %cst_14 = arith.constant dense<0.000000e+00> : vector<2x8xf32>
    %31 = vector.multi_reduction <add>, %30, %cst_14 [2] : vector<2x8x8xf32> to vector<2x8xf32>
    %32 = vector.shape_cast %31 : vector<2x8xf32> to vector<2x8x1xf32>
    %33 = vector.broadcast %32 : vector<2x8x1xf32> to vector<2x8x8xf32>
    %34 = arith.divf %30, %33 : vector<2x8x8xf32>
    %35 = arith.truncf %34 : vector<2x8x8xf32> to vector<2x8x8xbf16>
    %36 = arith.truncf %18 : vector<2x8x128xf32> to vector<2x8x128xbf16>
    "tpu.trace_start"() <{level = 10 : i32, message = "bqk,bkd->bqd"}> : () -> ()
    %cst_15 = arith.constant dense<0.000000e+00> : vector<2x8x128xf32>
    %37 = tpu.matmul %35, %36, %cst_15 {dimension_numbers = #tpu.dot_dimension_numbers<[2], [1], [1], [2], [0, 0, 0, 1, 1, 2], [0], [0]>} : vector<2x8x8xbf16>, vector<2x8x128xbf16>, vector<2x8x128xf32> -> vector<2x8x128xf32>
    "tpu.trace_stop"() : () -> ()
    %38 = vector.shape_cast %37 : vector<2x8x128xf32> to vector<16x128xf32>
    %39 = arith.truncf %38 : vector<16x128xf32> to vector<16x128xbf16>
    %c0_16 = arith.constant 0 : index
    %c0_17 = arith.constant 0 : index
    %c0_18 = arith.constant 0 : index
    %40 = vector.load %arg7[%c0_16, %c0_17, %c0_18] : memref<1x256x256xbf16, #tpu.memory_space<vmem>>, vector<1x128x256xbf16>
    %41 = vector.shape_cast %40 : vector<1x128x256xbf16> to vector<128x256xbf16>
    %cst_19 = arith.constant dense<0.000000e+00> : vector<16x256xf32>
    %42 = tpu.matmul %39, %41, %cst_19 {dimension_numbers = #tpu.dot_dimension_numbers<[1], [0], [0], [1], [0, 0, 1, 1], [], []>} : vector<16x128xbf16>, vector<128x256xbf16>, vector<16x256xf32> -> vector<16x256xf32>
    %43 = vector.extract_strided_slice %11 {offsets = [0, 128], sizes = [16, 128], strides = [1, 1]} : vector<16x768xf32> to vector<16x128xf32>
    %44 = vector.shape_cast %43 : vector<16x128xf32> to vector<2x8x128xf32>
    %45 = vector.extract_strided_slice %11 {offsets = [0, 384], sizes = [16, 128], strides = [1, 1]} : vector<16x768xf32> to vector<16x128xf32>
    %46 = vector.shape_cast %45 : vector<16x128xf32> to vector<2x8x128xf32>
    %47 = vector.extract_strided_slice %11 {offsets = [0, 640], sizes = [16, 128], strides = [1, 1]} : vector<16x768xf32> to vector<16x128xf32>
    %48 = vector.shape_cast %47 : vector<16x128xf32> to vector<2x8x128xf32>
    %49 = arith.truncf %44 : vector<2x8x128xf32> to vector<2x8x128xbf16>
    %50 = arith.truncf %46 : vector<2x8x128xf32> to vector<2x8x128xbf16>
    "tpu.trace_start"() <{level = 10 : i32, message = "bqd,bkd->bqk"}> : () -> ()
    %cst_20 = arith.constant dense<0.000000e+00> : vector<2x8x8xf32>
    %51 = tpu.matmul %49, %50, %cst_20 {dimension_numbers = #tpu.dot_dimension_numbers<[2], [2], [1], [1], [0, 0, 0, 1, 1, 1], [0], [0]>} : vector<2x8x128xbf16>, vector<2x8x128xbf16>, vector<2x8x8xf32> -> vector<2x8x8xf32>
    "tpu.trace_stop"() : () -> ()
    %cst_21 = arith.constant 0.0883883461 : f32
    %52 = vector.broadcast %cst_21 : f32 to vector<2x8x8xf32>
    %53 = arith.mulf %51, %52 : vector<2x8x8xf32>
    %54 = vector.broadcast %12 : vector<2x1x8xf32> to vector<2x8x8xf32>
    %55 = arith.addf %53, %54 : vector<2x8x8xf32>
    %cst_22 = arith.constant dense<0xFF800000> : vector<2x8xf32>
    %56 = vector.multi_reduction <maximumf>, %55, %cst_22 [2] : vector<2x8x8xf32> to vector<2x8xf32>
    %57 = vector.shape_cast %56 : vector<2x8xf32> to vector<2x8x1xf32>
    %58 = vector.broadcast %57 : vector<2x8x1xf32> to vector<2x8x8xf32>
    %59 = arith.subf %55, %58 : vector<2x8x8xf32>
    %60 = math.exp %59 : vector<2x8x8xf32>
    %cst_23 = arith.constant dense<0.000000e+00> : vector<2x8xf32>
    %61 = vector.multi_reduction <add>, %60, %cst_23 [2] : vector<2x8x8xf32> to vector<2x8xf32>
    %62 = vector.shape_cast %61 : vector<2x8xf32> to vector<2x8x1xf32>
    %63 = vector.broadcast %62 : vector<2x8x1xf32> to vector<2x8x8xf32>
    %64 = arith.divf %60, %63 : vector<2x8x8xf32>
    %65 = arith.truncf %64 : vector<2x8x8xf32> to vector<2x8x8xbf16>
    %66 = arith.truncf %48 : vector<2x8x128xf32> to vector<2x8x128xbf16>
    "tpu.trace_start"() <{level = 10 : i32, message = "bqk,bkd->bqd"}> : () -> ()
    %cst_24 = arith.constant dense<0.000000e+00> : vector<2x8x128xf32>
    %67 = tpu.matmul %65, %66, %cst_24 {dimension_numbers = #tpu.dot_dimension_numbers<[2], [1], [1], [2], [0, 0, 0, 1, 1, 2], [0], [0]>} : vector<2x8x8xbf16>, vector<2x8x128xbf16>, vector<2x8x128xf32> -> vector<2x8x128xf32>
    "tpu.trace_stop"() : () -> ()
    %68 = vector.shape_cast %67 : vector<2x8x128xf32> to vector<16x128xf32>
    %69 = arith.truncf %68 : vector<16x128xf32> to vector<16x128xbf16>
    %c0_25 = arith.constant 0 : index
    %c128 = arith.constant 128 : index
    %c0_26 = arith.constant 0 : index
    %70 = vector.load %arg7[%c0_25, %c128, %c0_26] : memref<1x256x256xbf16, #tpu.memory_space<vmem>>, vector<1x128x256xbf16>
    %71 = vector.shape_cast %70 : vector<1x128x256xbf16> to vector<128x256xbf16>
    %cst_27 = arith.constant dense<0.000000e+00> : vector<16x256xf32>
    %72 = tpu.matmul %69, %71, %cst_27 {dimension_numbers = #tpu.dot_dimension_numbers<[1], [0], [0], [1], [0, 0, 1, 1], [], []>} : vector<16x128xbf16>, vector<128x256xbf16>, vector<16x256xf32> -> vector<16x256xf32>
    %73 = arith.addf %42, %72 : vector<16x256xf32>
    %c0_28 = arith.constant 0 : index
    %c0_29 = arith.constant 0 : index
    %c0_30 = arith.constant 0 : index
    %74 = vector.load %arg8[%c0_28, %c0_29, %c0_30] : memref<1x1x256xf32, #tpu.memory_space<vmem>>, vector<1x1x256xf32>
    %75 = vector.shape_cast %74 : vector<1x1x256xf32> to vector<1x256xf32>
    %76 = vector.broadcast %75 : vector<1x256xf32> to vector<16x256xf32>
    %77 = arith.addf %73, %76 : vector<16x256xf32>
    %78 = arith.addf %77, %3 : vector<16x256xf32>
    %c0_31 = arith.constant 0 : index
    %c0_32 = arith.constant 0 : index
    %c0_33 = arith.constant 0 : index
    %79 = vector.load %arg9[%c0_31, %c0_32, %c0_33] : memref<1x1x256xf32, #tpu.memory_space<vmem>>, vector<1x1x256xf32>
    %80 = vector.shape_cast %79 : vector<1x1x256xf32> to vector<1x256xf32>
    %c0_34 = arith.constant 0 : index
    %c0_35 = arith.constant 0 : index
    %c0_36 = arith.constant 0 : index
    %81 = vector.load %arg10[%c0_34, %c0_35, %c0_36] : memref<1x1x256xf32, #tpu.memory_space<vmem>>, vector<1x1x256xf32>
    %82 = vector.shape_cast %81 : vector<1x1x256xf32> to vector<1x256xf32>
    %cst_37 = arith.constant dense<0.000000e+00> : vector<16xf32>
    %83 = vector.multi_reduction <add>, %78, %cst_37 [1] : vector<16x256xf32> to vector<16xf32>
    %84 = vector.shape_cast %83 : vector<16xf32> to vector<16x1xf32>
    %cst_38 = arith.constant 2.560000e+02 : f32
    %85 = vector.broadcast %cst_38 : f32 to vector<16x1xf32>
    %86 = arith.divf %84, %85 : vector<16x1xf32>
    %87 = vector.broadcast %86 : vector<16x1xf32> to vector<16x256xf32>
    %88 = arith.subf %78, %87 : vector<16x256xf32>
    %89 = arith.mulf %88, %88 : vector<16x256xf32>
    %cst_39 = arith.constant dense<0.000000e+00> : vector<16xf32>
    %90 = vector.multi_reduction <add>, %89, %cst_39 [1] : vector<16x256xf32> to vector<16xf32>
    %91 = vector.shape_cast %90 : vector<16xf32> to vector<16x1xf32>
    %cst_40 = arith.constant 2.560000e+02 : f32
    %92 = vector.broadcast %cst_40 : f32 to vector<16x1xf32>
    %93 = arith.divf %91, %92 : vector<16x1xf32>
    %94 = vector.broadcast %86 : vector<16x1xf32> to vector<16x256xf32>
    %95 = arith.subf %78, %94 : vector<16x256xf32>
    %cst_41 = arith.constant 9.99999996E-13 : f32
    %96 = vector.broadcast %cst_41 : f32 to vector<16x1xf32>
    %97 = arith.addf %93, %96 : vector<16x1xf32>
    %98 = math.rsqrt %97 : vector<16x1xf32>
    %99 = vector.broadcast %98 : vector<16x1xf32> to vector<16x256xf32>
    %100 = arith.mulf %95, %99 : vector<16x256xf32>
    %101 = vector.broadcast %80 : vector<1x256xf32> to vector<16x256xf32>
    %102 = arith.mulf %100, %101 : vector<16x256xf32>
    %103 = vector.broadcast %82 : vector<1x256xf32> to vector<16x256xf32>
    %104 = arith.addf %102, %103 : vector<16x256xf32>
    %c0_42 = arith.constant 0 : index
    %c0_43 = arith.constant 0 : index
    %c0_44 = arith.constant 0 : index
    %105 = vector.load %arg11[%c0_42, %c0_43, %c0_44] : memref<1x256x1024xbf16, #tpu.memory_space<vmem>>, vector<1x256x1024xbf16>
    %106 = vector.shape_cast %105 : vector<1x256x1024xbf16> to vector<256x1024xbf16>
    %c0_45 = arith.constant 0 : index
    %c0_46 = arith.constant 0 : index
    %c0_47 = arith.constant 0 : index
    %107 = vector.load %arg12[%c0_45, %c0_46, %c0_47] : memref<1x1x1024xf32, #tpu.memory_space<vmem>>, vector<1x1x1024xf32>
    %108 = vector.shape_cast %107 : vector<1x1x1024xf32> to vector<1x1024xf32>
    %109 = arith.truncf %104 : vector<16x256xf32> to vector<16x256xbf16>
    %cst_48 = arith.constant dense<0.000000e+00> : vector<16x1024xf32>
    %110 = tpu.matmul %109, %106, %cst_48 {dimension_numbers = #tpu.dot_dimension_numbers<[1], [0], [0], [1], [0, 0, 1, 1], [], []>} : vector<16x256xbf16>, vector<256x1024xbf16>, vector<16x1024xf32> -> vector<16x1024xf32>
    %111 = vector.broadcast %108 : vector<1x1024xf32> to vector<16x1024xf32>
    %112 = arith.addf %110, %111 : vector<16x1024xf32>
    %113 = arith.mulf %112, %112 : vector<16x1024xf32>
    %114 = arith.mulf %112, %113 : vector<16x1024xf32>
    %cst_49 = arith.constant 4.471500e-02 : f32
    %115 = vector.broadcast %cst_49 : f32 to vector<16x1024xf32>
    %116 = arith.mulf %115, %114 : vector<16x1024xf32>
    %117 = arith.addf %112, %116 : vector<16x1024xf32>
    %cst_50 = arith.constant 0.797884583 : f32
    %118 = vector.broadcast %cst_50 : f32 to vector<16x1024xf32>
    %119 = arith.mulf %118, %117 : vector<16x1024xf32>
    %120 = math.tanh %119 : vector<16x1024xf32>
    %cst_51 = arith.constant 1.000000e+00 : f32
    %121 = vector.broadcast %cst_51 : f32 to vector<16x1024xf32>
    %122 = arith.addf %121, %120 : vector<16x1024xf32>
    %cst_52 = arith.constant 5.000000e-01 : f32
    %123 = vector.broadcast %cst_52 : f32 to vector<16x1024xf32>
    %124 = arith.mulf %123, %122 : vector<16x1024xf32>
    %125 = arith.mulf %112, %124 : vector<16x1024xf32>
    %c0_53 = arith.constant 0 : index
    %c0_54 = arith.constant 0 : index
    %c0_55 = arith.constant 0 : index
    %126 = vector.load %arg13[%c0_53, %c0_54, %c0_55] : memref<1x1024x256xbf16, #tpu.memory_space<vmem>>, vector<1x1024x256xbf16>
    %127 = vector.shape_cast %126 : vector<1x1024x256xbf16> to vector<1024x256xbf16>
    %c0_56 = arith.constant 0 : index
    %c0_57 = arith.constant 0 : index
    %c0_58 = arith.constant 0 : index
    %128 = vector.load %arg14[%c0_56, %c0_57, %c0_58] : memref<1x1x256xf32, #tpu.memory_space<vmem>>, vector<1x1x256xf32>
    %129 = vector.shape_cast %128 : vector<1x1x256xf32> to vector<1x256xf32>
    %130 = arith.truncf %125 : vector<16x1024xf32> to vector<16x1024xbf16>
    %cst_59 = arith.constant dense<0.000000e+00> : vector<16x256xf32>
    %131 = tpu.matmul %130, %127, %cst_59 {dimension_numbers = #tpu.dot_dimension_numbers<[1], [0], [0], [1], [0, 0, 1, 1], [], []>} : vector<16x1024xbf16>, vector<1024x256xbf16>, vector<16x256xf32> -> vector<16x256xf32>
    %132 = vector.broadcast %129 : vector<1x256xf32> to vector<16x256xf32>
    %133 = arith.addf %131, %132 : vector<16x256xf32>
    %134 = arith.addf %133, %104 : vector<16x256xf32>
    %c0_60 = arith.constant 0 : index
    %c0_61 = arith.constant 0 : index
    %c0_62 = arith.constant 0 : index
    %135 = vector.load %arg15[%c0_60, %c0_61, %c0_62] : memref<1x1x256xf32, #tpu.memory_space<vmem>>, vector<1x1x256xf32>
    %136 = vector.shape_cast %135 : vector<1x1x256xf32> to vector<1x256xf32>
    %c0_63 = arith.constant 0 : index
    %c0_64 = arith.constant 0 : index
    %c0_65 = arith.constant 0 : index
    %137 = vector.load %arg16[%c0_63, %c0_64, %c0_65] : memref<1x1x256xf32, #tpu.memory_space<vmem>>, vector<1x1x256xf32>
    %138 = vector.shape_cast %137 : vector<1x1x256xf32> to vector<1x256xf32>
    %cst_66 = arith.constant dense<0.000000e+00> : vector<16xf32>
    %139 = vector.multi_reduction <add>, %134, %cst_66 [1] : vector<16x256xf32> to vector<16xf32>
    %140 = vector.shape_cast %139 : vector<16xf32> to vector<16x1xf32>
    %cst_67 = arith.constant 2.560000e+02 : f32
    %141 = vector.broadcast %cst_67 : f32 to vector<16x1xf32>
    %142 = arith.divf %140, %141 : vector<16x1xf32>
    %143 = vector.broadcast %142 : vector<16x1xf32> to vector<16x256xf32>
    %144 = arith.subf %134, %143 : vector<16x256xf32>
    %145 = arith.mulf %144, %144 : vector<16x256xf32>
    %cst_68 = arith.constant dense<0.000000e+00> : vector<16xf32>
    %146 = vector.multi_reduction <add>, %145, %cst_68 [1] : vector<16x256xf32> to vector<16xf32>
    %147 = vector.shape_cast %146 : vector<16xf32> to vector<16x1xf32>
    %cst_69 = arith.constant 2.560000e+02 : f32
    %148 = vector.broadcast %cst_69 : f32 to vector<16x1xf32>
    %149 = arith.divf %147, %148 : vector<16x1xf32>
    %150 = vector.broadcast %142 : vector<16x1xf32> to vector<16x256xf32>
    %151 = arith.subf %134, %150 : vector<16x256xf32>
    %cst_70 = arith.constant 9.99999996E-13 : f32
    %152 = vector.broadcast %cst_70 : f32 to vector<16x1xf32>
    %153 = arith.addf %149, %152 : vector<16x1xf32>
    %154 = math.rsqrt %153 : vector<16x1xf32>
    %155 = vector.broadcast %154 : vector<16x1xf32> to vector<16x256xf32>
    %156 = arith.mulf %151, %155 : vector<16x256xf32>
    %157 = vector.broadcast %136 : vector<1x256xf32> to vector<16x256xf32>
    %158 = arith.mulf %156, %157 : vector<16x256xf32>
    %159 = vector.broadcast %138 : vector<1x256xf32> to vector<16x256xf32>
    %160 = arith.addf %158, %159 : vector<16x256xf32>
    %c0_71 = arith.constant 0 : index
    %c0_72 = arith.constant 0 : index
    %161 = vector.load %arg22[%c0_71, %c0_72] : memref<16x256xf32, #tpu.memory_space<vmem>>, vector<16x256xf32>
    tpu.vector_store %arg22[%c0_71, %c0_72], %160 {strides = array<i32>} : memref<16x256xf32, #tpu.memory_space<vmem>>, vector<16x256xf32>,
    %c1_i32 = arith.constant 1 : i32
    %162 = arith.cmpi eq, %arg0, %c1_i32 : i32
    %163 = arith.extui %162 : i1 to i32
    %c0_i32_73 = arith.constant 0 : i32
    %164 = arith.cmpi ne, %163, %c0_i32_73 : i32
    scf.if %164 {
      %165 = vector.extract_strided_slice %160 {offsets = [0, 0], sizes = [1, 256], strides = [1, 1]} : vector<16x256xf32> to vector<1x256xf32>
      %166 = vector.extract_strided_slice %160 {offsets = [8, 0], sizes = [1, 256], strides = [1, 1]} : vector<16x256xf32> to vector<1x256xf32>
      %167 = tpu.concatenate %165, %166 in 0 : vector<1x256xf32>, vector<1x256xf32> -> vector<2x256xf32>
      %168 = arith.truncf %167 : vector<2x256xf32> to vector<2x256xbf16>
      %c0_74 = arith.constant 0 : index
      %c0_75 = arith.constant 0 : index
      %169 = vector.load %arg17[%c0_74, %c0_75] : memref<256x128xbf16, #tpu.memory_space<vmem>>, vector<256x128xbf16>
      %cst_76 = arith.constant dense<0.000000e+00> : vector<2x128xf32>
      %170 = tpu.matmul %168, %169, %cst_76 {dimension_numbers = #tpu.dot_dimension_numbers<[1], [0], [0], [1], [0, 0, 1, 1], [], []>} : vector<2x256xbf16>, vector<256x128xbf16>, vector<2x128xf32> -> vector<2x128xf32>
      %c0_77 = arith.constant 0 : index
      %c0_78 = arith.constant 0 : index
      %171 = vector.load %arg18[%c0_77, %c0_78] : memref<1x128xf32, #tpu.memory_space<vmem>>, vector<1x128xf32>
      %172 = vector.broadcast %171 : vector<1x128xf32> to vector<2x128xf32>
      %173 = arith.addf %170, %172 : vector<2x128xf32>
      %c0_79 = arith.constant 0 : index
      %c0_80 = arith.constant 0 : index
      %174 = vector.load %arg20[%c0_79, %c0_80] : memref<2x128xf32, #tpu.memory_space<vmem>>, vector<2x128xf32>
      tpu.vector_store %arg20[%c0_79, %c0_80], %173 {strides = array<i32>} : memref<2x128xf32, #tpu.memory_space<vmem>>, vector<2x128xf32>,
      %cst_81 = arith.constant dense<0xFF800000> : vector<2xf32>
      %175 = vector.multi_reduction <maximumf>, %173, %cst_81 [1] : vector<2x128xf32> to vector<2xf32>
      %176 = vector.shape_cast %175 : vector<2xf32> to vector<2x1xf32>
      %177 = vector.broadcast %176 : vector<2x1xf32> to vector<2x128xf32>
      %178 = arith.subf %173, %177 : vector<2x128xf32>
      %179 = math.exp %178 : vector<2x128xf32>
      %cst_82 = arith.constant dense<0.000000e+00> : vector<2xf32>
      %180 = vector.multi_reduction <add>, %179, %cst_82 [1] : vector<2x128xf32> to vector<2xf32>
      %181 = vector.shape_cast %180 : vector<2xf32> to vector<2x1xf32>
      %182 = math.log %181 : vector<2x1xf32>
      %183 = arith.addf %182, %176 : vector<2x1xf32>
      %c0_83 = arith.constant 0 : index
      %c0_84 = arith.constant 0 : index
      %184 = vector.load %arg19[%c0_83, %c0_84] : memref<2x128xf32, #tpu.memory_space<vmem>>, vector<2x128xf32>
      %185 = arith.mulf %184, %173 : vector<2x128xf32>
      %cst_85 = arith.constant dense<0.000000e+00> : vector<2xf32>
      %186 = vector.multi_reduction <add>, %185, %cst_85 [1] : vector<2x128xf32> to vector<2xf32>
      %187 = vector.shape_cast %186 : vector<2xf32> to vector<2x1xf32>
      %188 = arith.subf %183, %187 : vector<2x1xf32>
      %189 = vector.shape_cast %188 : vector<2x1xf32> to vector<1x2x1xf32>
      %cst_86 = arith.constant dense<0.000000e+00> : vector<1xf32>
      %190 = vector.multi_reduction <add>, %189, %cst_86 [1, 2] : vector<1x2x1xf32> to vector<1xf32>
      %191 = vector.shape_cast %190 : vector<1xf32> to vector<1x1x1xf32>
      %192 = vector.extract %191[0, 0, 0] : f32 from vector<1x1x1xf32>
      %193 = vector.broadcast %192 : f32 to vector<1x1xf32>
      %cst_87 = arith.constant 2.000000e+00 : f32
      %194 = vector.broadcast %cst_87 : f32 to vector<1x1xf32>
      %195 = arith.divf %193, %194 : vector<1x1xf32>
      %c0_88 = arith.constant 0 : index
      %c0_89 = arith.constant 0 : index
      %196 = vector.load %arg21[%c0_88, %c0_89] : memref<1x1xf32, #tpu.memory_space<vmem>>, vector<1x1xf32>
      tpu.vector_store %arg21[%c0_88, %c0_89], %195 {strides = array<i32>} : memref<1x1xf32, #tpu.memory_space<vmem>>, vector<1x1xf32>,
    } else {
    }
    return
  }
  func.func @transform_0(%arg0: i32) -> (i32, i32) {
    %c0_i32 = arith.constant 0 : i32
    %c0_i32_0 = arith.constant 0 : i32
    %c0_i32_1 = arith.constant 0 : i32
    return %c0_i32, %c0_i32_0 : i32, i32
  }
  func.func @transform_1(%arg0: i32) -> (i32, i32, i32) {
    %c0_i32 = arith.constant 0 : i32
    %c0_i32_0 = arith.constant 0 : i32
    %c0_i32_1 = arith.constant 0 : i32
    %c0_i32_2 = arith.constant 0 : i32
    return %c0_i32, %c0_i32_0, %c0_i32_1 : i32, i32, i32
  }
  func.func @transform_2(%arg0: i32) -> (i32, i32) {
    %c0_i32 = arith.constant 0 : i32
    %c0_i32_0 = arith.constant 0 : i32
    %c0_i32_1 = arith.constant 0 : i32
    return %c0_i32, %c0_i32_0 : i32, i32
  }
  func.func @transform_3(%arg0: i32) -> (i32, i32) {
    %c0_i32 = arith.constant 0 : i32
    %c0_i32_0 = arith.constant 0 : i32
    %c0_i32_1 = arith.constant 0 : i32
    return %c0_i32, %c0_i32_0 : i32, i32
  }
  func.func @transform_4(%arg0: i32) -> (i32, i32, i32) {
    %c0_i32 = arith.constant 0 : i32
    %c0_i32_0 = arith.constant 0 : i32
    %c0_i32_1 = arith.constant 0 : i32
    return %arg0, %c0_i32, %c0_i32_0 : i32, i32, i32
  }
  func.func @transform_5(%arg0: i32) -> (i32, i32, i32) {
    %c0_i32 = arith.constant 0 : i32
    %c0_i32_0 = arith.constant 0 : i32
    %c0_i32_1 = arith.constant 0 : i32
    return %arg0, %c0_i32, %c0_i32_0 : i32, i32, i32
  }
  func.func @transform_6(%arg0: i32) -> (i32, i32, i32) {
    %c0_i32 = arith.constant 0 : i32
    %c0_i32_0 = arith.constant 0 : i32
    %c0_i32_1 = arith.constant 0 : i32
    return %arg0, %c0_i32, %c0_i32_0 : i32, i32, i32
  }
  func.func @transform_7(%arg0: i32) -> (i32, i32, i32) {
    %c0_i32 = arith.constant 0 : i32
    %c0_i32_0 = arith.constant 0 : i32
    %c0_i32_1 = arith.constant 0 : i32
    return %arg0, %c0_i32, %c0_i32_0 : i32, i32, i32
  }
  func.func @transform_8(%arg0: i32) -> (i32, i32, i32) {
    %c0_i32 = arith.constant 0 : i32
    %c0_i32_0 = arith.constant 0 : i32
    %c0_i32_1 = arith.constant 0 : i32
    return %arg0, %c0_i32, %c0_i32_0 : i32, i32, i32
  }
  func.func @transform_9(%arg0: i32) -> (i32, i32, i32) {
    %c0_i32 = arith.constant 0 : i32
    %c0_i32_0 = arith.constant 0 : i32
    %c0_i32_1 = arith.constant 0 : i32
    return %arg0, %c0_i32, %c0_i32_0 : i32, i32, i32
  }
  func.func @transform_10(%arg0: i32) -> (i32, i32, i32) {
    %c0_i32 = arith.constant 0 : i32
    %c0_i32_0 = arith.constant 0 : i32
    %c0_i32_1 = arith.constant 0 : i32
    return %arg0, %c0_i32, %c0_i32_0 : i32, i32, i32
  }
  func.func @transform_11(%arg0: i32) -> (i32, i32, i32) {
    %c0_i32 = arith.constant 0 : i32
    %c0_i32_0 = arith.constant 0 : i32
    %c0_i32_1 = arith.constant 0 : i32
    return %arg0, %c0_i32, %c0_i32_0 : i32, i32, i32
  }
  func.func @transform_12(%arg0: i32) -> (i32, i32, i32) {
    %c0_i32 = arith.constant 0 : i32
    %c0_i32_0 = arith.constant 0 : i32
    %c0_i32_1 = arith.constant 0 : i32
    return %arg0, %c0_i32, %c0_i32_0 : i32, i32, i32
  }
  func.func @transform_13(%arg0: i32) -> (i32, i32, i32) {
    %c0_i32 = arith.constant 0 : i32
    %c0_i32_0 = arith.constant 0 : i32
    %c0_i32_1 = arith.constant 0 : i32
    return %arg0, %c0_i32, %c0_i32_0 : i32, i32, i32
  }
  func.func @transform_14(%arg0: i32) -> (i32, i32, i32) {
    %c0_i32 = arith.constant 0 : i32
    %c0_i32_0 = arith.constant 0 : i32
    %c0_i32_1 = arith.constant 0 : i32
    return %arg0, %c0_i32, %c0_i32_0 : i32, i32, i32
  }
  func.func @transform_15(%arg0: i32) -> (i32, i32, i32) {
    %c0_i32 = arith.constant 0 : i32
    %c0_i32_0 = arith.constant 0 : i32
    %c0_i32_1 = arith.constant 0 : i32
    return %arg0, %c0_i32, %c0_i32_0 : i32, i32, i32
  }
  func.func @transform_16(%arg0: i32) -> (i32, i32) {
    %c0_i32 = arith.constant 0 : i32
    %c0_i32_0 = arith.constant 0 : i32
    %c0_i32_1 = arith.constant 0 : i32
    return %c0_i32, %c0_i32_0 : i32, i32
  }
  func.func @transform_17(%arg0: i32) -> (i32, i32) {
    %c0_i32 = arith.constant 0 : i32
    %c0_i32_0 = arith.constant 0 : i32
    %c0_i32_1 = arith.constant 0 : i32
    return %c0_i32, %c0_i32_0 : i32, i32
  }
  func.func @transform_18(%arg0: i32) -> (i32, i32) {
    %c0_i32 = arith.constant 0 : i32
    %c0_i32_0 = arith.constant 0 : i32
    %c0_i32_1 = arith.constant 0 : i32
    return %c0_i32, %c0_i32_0 : i32, i32
  }
  func.func @transform_19(%arg0: i32) -> (i32, i32) {
    %c0_i32 = arith.constant 0 : i32
    %c0_i32_0 = arith.constant 0 : i32
    %c0_i32_1 = arith.constant 0 : i32
    return %c0_i32, %c0_i32_0 : i32, i32
  }
  func.func @transform_20(%arg0: i32) -> (i32, i32) {
    %c0_i32 = arith.constant 0 : i32
    %c0_i32_0 = arith.constant 0 : i32
    %c0_i32_1 = arith.constant 0 : i32
    return %c0_i32, %c0_i32_0 : i32, i32
  }
}

</mosaic_0001>

<bundles_post_ra>
// kernel: tpu_custom_call.1
= control target key start
LH: loop header
LB: loop body
LE: loop exit
PB: predicated region body
PF: predicated region fallthrough
CT: control target
= control target key end

     0   :  { %s8341_s0 = inlined_call_operand.hbm [shape: bf16[16,256], index: 0, kind: input, shape index: {}]   ;;  %s8342_s1 = inlined_call_operand.hbm [shape: f32[2,1,8], index: 1, kind: input, shape index: {}]   ;;  %s8343_s2 = inlined_call_operand.hbm [shape: f32[1,256], index: 2, kind: input, shape index: {}]   ;;  %s8344_s3 = inlined_call_operand.hbm [shape: f32[1,256], index: 3, kind: input, shape index: {}]   ;;  %s8345_s4 = inlined_call_operand.hbm [shape: bf16[2,256,768], index: 4, kind: input, shape index: {}]   ;;  %s8346_s5 = inlined_call_operand.hbm [shape: f32[2,1,768], index: 5, kind: input, shape index: {}]   ;;  %s8347_s6 = inlined_call_operand.hbm [shape: bf16[2,256,256], index: 6, kind: input, shape index: {}]   ;;  %s8348_s7 = inlined_call_operand.vmem [shape: f32[2,1,256], index: 7, kind: input, shape index: {}]   ;;  %s8349_s8 = inlined_call_operand.hbm [shape: f32[2,1,256], index: 8, kind: input, shape index: {}]   ;;  %s8350_s9 = inlined_call_operand.hbm [shape: f32[2,1,256], index: 9, kind: input, shape index: {}]   ;;  %s8351_s10 = inlined_call_operand.hbm [shape: bf16[2,256,1024], index: 10, kind: input, shape index: {}]   ;;  %s8352_s11 = inlined_call_operand.vmem [shape: f32[2,1,1024], index: 11, kind: input, shape index: {}]   ;;  %s8353_s12 = inlined_call_operand.hbm [shape: bf16[2,1024,256], index: 12, kind: input, shape index: {}]   ;;  %s8354_s13 = inlined_call_operand.hbm [shape: f32[2,1,256], index: 13, kind: input, shape index: {}]   ;;  %s8355_s14 = inlined_call_operand.vmem [shape: f32[2,1,256], index: 14, kind: input, shape index: {}]   ;;  %s8356_s15 = inlined_call_operand.hbm [shape: f32[2,1,256], index: 15, kind: input, shape index: {}]   ;;  %s8357_s16 = inlined_call_operand.hbm [shape: bf16[256,128], index: 16, kind: input, shape index: {}]   ;;  %s8358_s17 = inlined_call_operand.vmem [shape: f32[1,128], index: 17, kind: input, shape index: {}]   ;;  %s8359_s18 = inlined_call_operand.vmem [shape: f32[2,128], index: 18, kind: input, shape index: {}]   ;;  %s8360_s19 = inlined_call_operand.hbm [shape: f32[2,128], index: 19, kind: output, shape index: {0}]   ;;  %s8361_s20 = inlined_call_operand.hbm [shape: f32[1,1], index: 20, kind: output, shape index: {1}]  }
   0x1   :  { %8388 = sst [smem:[#allocation38_spill]] %s8341_s0 }
   0x2   :  { %8389 = sst [smem:[#allocation39_spill]] %s8342_s1 }
   0x3   :  { %8390 = sst [smem:[#allocation40_spill]] %s8343_s2 }
   0x4   :  { %8391 = sst [smem:[#allocation41_spill]] %s8344_s3 }
   0x5   :  { %8392 = sst [smem:[#allocation42_spill]] %s8345_s4 }
   0x6   :  { %8393 = sst [smem:[#allocation43_spill]] %s8346_s5 }
   0x7   :  { %8394 = sst [smem:[#allocation44_spill]] %s8347_s6 }
   0x8   :  { %8395 = sst [smem:[#allocation45_spill]] %s8348_s7 }
   0x9   :  { %8396 = sst [smem:[#allocation46_spill]] %s8352_s11 }
   0xa   :  { %8397 = sst [smem:[#allocation47_spill]] %s8355_s14 }
   0xb   :  { %8398 = sst [smem:[#allocation48_spill]] %s8356_s15 }
   0xc   :  { %8399 = sst [smem:[#allocation49_spill]] %s8358_s17 }
   0xd   :  { %8400 = sst [smem:[#allocation50_spill]] %s8359_s18 }
   0xe   :  { %8401 = sst [smem:[#allocation51_spill]] %s8360_s19 }
   0xf   :  { %8402 = sst [smem:[#allocation52_spill]] %s8361_s20 }
  0x10   :  { %26 = vsyncpa [#allocation4], 0 }
  0x11   :  { %27 = vsyncpa [#allocation7], 0 }
  0x12   :  { %28 = vsyncpa [#allocation10], 0 }
  0x13   :  { %29 = vsyncpa [#allocation5], 0 }
  0x14   :  { %30 = vsyncpa [#allocation23], 0  ;;  %s7173_s1 = smov 0   ;;  %s7175_s22 = smov 0  }
  0x15   :  { %s7177_s23 = smov 0   ;;  %s7179_s24 = smov 0  }
  0x16 LB: > { %8403 = sst [smem:[#allocation31_spill]] %s7029_s22  ;;  %s7192_s2 = sadd.s32 4294967295, %s7037_s24   ;;  %s7037_s24 = sphi %s7179_s24, %s8461_s24   ;;  %s7033_s23 = sphi %s7177_s23, %s8464_s23   ;;  %s7029_s22 = sphi %s7175_s22, %s8463_s22   ;;  %s7025_s1 = sphi %s7173_s1, %s8462_s1  }
  0x17   : > { %8404 = sst [smem:[#allocation32_spill]] %s7033_s23  ;;  %p140_p0 = scmp.ne.s32.totalorder %s7029_s22, %s7025_s1 }
  0x18   : > { %8405 = sst [smem:[#allocation33_spill]] %s7192_s2  ;;  %p8369_p1 = scmp.eq.s32.totalorder %s7192_s2, 0 }
  0x19   : > { %p5363_p2 = scmp.ge.s32.totalorder %s7037_s24, 1  ;;  %p542_p3 = scmp.lt.s32.totalorder %s7037_s24, 3 }
  0x1a   : > { %p7201_p5 = por %p8369_p1, %p140_p0  ;;  %s7039_s26 = smov [#allocation3]  }
  0x1b   : > { %p7205_p6 = pnand %p5363_p2, %p542_p3  ;;  %s554_s27 = sshll.u32 %s7039_s26, 4  ;;  %s555_s27 = int_to_ptr.vmem [resolvable:$true] %s554_s27 }
  0x1c   : > { %s8406_s25 = scalar_select %p7201_p5, 1, 0 }
  0x1d   : > { %s8408_s3 = scalar_select %p7205_p6, 1, 0 }
  0x1e   : > { %8407 = sst [smem:[#allocation34_spill]] %s8406_s25  ;;  %p5971_p7 = pneg %p7205_p6 }
  0x1f   : > { %8409 = sst [smem:[#allocation35_spill]] %s8408_s3  ;;  %s7218_s4 = sadd.s32 1, %s7037_s24  }
  0x20   : > { %p7213_p8 = pnand %p5971_p7, %p8369_p1  ;;  %8411 = sst [smem:[#allocation36_spill]] %s7218_s4 }
  0x21   : > { %s127_s29 = sadd.s32 1, %s7033_s23  ;;  %s124_s30 = ssub.s32 %s7037_s24, %s7218_s4 }
  0x22   : > { %s8410_s28 = scalar_select %p7213_p8, 1, 0 }
  0x23   : > { %p7225_p9 = pneg %p7213_p8  ;;  %s6560_s21 = scalar_lea.vmem %s555_s27, 256 }
  0x24   : > { %p6561_p10 = scmp.ne.s32.totalorder %s555_s27, %s6560_s21  ;;  %p6568_p13 = scmp.lt.s32.totalorder %s555_s27, %s555_s27 }
  0x25   : > { %s8412_s0 = scalar_select %p7225_p9, 1, 0 }
  0x26   : > { %p6563_p11 = pnand %p6561_p10, %p7225_p9  ;;  %p6569_p0 = scmp.lt.s32.totalorder %s6560_s21, %s6560_s21 }
  0x28   : > { %p6564_p12 = pneg %p6563_p11  ;;  %p6570_p2 = por %p6569_p0, %p6568_p13 }
  0x2a   : > { %p6571_p3 = pnand %p6570_p2, %p6564_p12 }
  0x2c   : > { %6574 = shalt.err (!%p6571_p3)
}
  0x2d   : > { %s8365_s1 = smov 128   ;;  %s8367_s26 = smov 8  }
  0x2e   : > { %s8413_s20 = sld [smem:[#allocation38_spill]]  ;;  %p125_p7 = scmp.eq.s32.totalorder %s124_s30, 0 }
  0x2f   : > { %p134_p10 = scmp.ne.s32.totalorder %s7033_s23, %s7029_s22  ;;  %p135_p11 = scmp.eq.s32.totalorder %s7037_s24, 0 }
  0x30   : > { %p6020_p12 = scmp.lt.s32.totalorder %s7037_s24, 2  ;;  %s622_s18 = sand.u32 1, %s7037_s24  }
  0x31   : > { %s7244_s19 = scalar_select %p125_p7, %s7033_s23, %s127_s29  }
  0x32   : > { %p136_p13 = por %p135_p11, %p134_p10  ;;  %s7248_s17 = sand.u32 1, %s7033_s23  }
  0x33   : > { %8414 = sst [smem:[#allocation37_spill]] %s7244_s19  ;;  %s5917_s14 = smul.u32 768, %s7248_s17 }
  0x34   : > { %5974 = dma.hbm_to_vmem [thread:$0]  (!%p7213_p8), %s8413_s20, 256, %s555_s27, [#allocation4], %s8365_s1, %s8365_s1, %s8367_s26  }
  0x35   : > { %p7251_p0 = pnand %p6020_p12, %p136_p13  ;;  %s5918_s7 = smul.u32 12288, %s7037_s24 }
  0x36   : > { %s8416_s27 = sld [smem:[#allocation42_spill]]  ;;  %s626_s29 = scalar_lea.vmem [#allocation11], %s5917_s14 }
  0x37   : > { %s633_s21 = sshll.u32 %s626_s29, 4  ;;  %s7263_s1 = scalar_lea.sflag [#allocation4], %s622_s18  ;;  %s7261_s21 = int_to_ptr.vmem [resolvable:$true] %s633_s21 }
  0x38   : > { %p7269_p3 = pneg %p7251_p0 }
  0x3a   : > { %s8417_s19 = scalar_select %p7269_p3, 1, 0 }
  0x3c   : > { %s7259_s30 = scalar_lea.hbm %s8416_s27, %s5918_s7  ;;  %s6580_s14 = scalar_lea.hbm %s8416_s27, 24576 }
  0x3d   : > { %s6575_s26 = scalar_lea.hbm %s7259_s30, 12288  ;;  %p6581_p11 = scmp.lt.s32.totalorder %s7259_s30, %s8416_s27 }
  0x3e   : > { %p6576_p2 = scmp.ne.s32.totalorder %s7259_s30, %s6575_s26  ;;  %p6582_p12 = scmp.lt.s32.totalorder %s6580_s14, %s6575_s26 }
  0x40   : > { %p6578_p7 = pnand %p7269_p3, %p6576_p2  ;;  %p6583_p13 = por %p6582_p12, %p6581_p11 }
  0x42   : > { %p6579_p10 = pneg %p6578_p7 }
  0x44   : > { %p6584_p4 = pnand %p6583_p13, %p6579_p10 }
  0x46   : > { %6587 = shalt.err (!%p6584_p4)
}
  0x47   : > { %s6588_s18 = scalar_lea.vmem %s7261_s21, 12288  ;;  %s7042_s23 = smov [#allocation11]  }
  0x48   : > { %p6589_p1 = scmp.ne.s32.totalorder %s7261_s21, %s6588_s18  ;;  %s6593_s7 = sshll.u32 %s7042_s23, 4  ;;  %s6594_s7 = int_to_ptr.vmem [resolvable:$false] %s6593_s7 }
  0x49   : > { %s6595_s4 = scalar_lea.vmem %s6594_s7, 24576  ;;  %p6596_p5 = scmp.lt.s32.totalorder %s7261_s21, %s6594_s7 }
  0x4a   : > { %p6591_p2 = pnand %p6589_p1, %p7269_p3  ;;  %p6597_p6 = scmp.lt.s32.totalorder %s6595_s4, %s6588_s18 }
  0x4c   : > { %p6592_p7 = pneg %p6591_p2  ;;  %p6598_p8 = por %p6597_p6, %p6596_p5 }
  0x4e   : > { %p6599_p9 = pnand %p6598_p8, %p6592_p7 }
  0x50   : > { %6602 = shalt.err (!%p6599_p9)
}
  0x51   : > { %s7043_s26 = smov 384   ;;  %s7044_s14 = smov 24  }
  0x52   : > { %5990 = dma.hbm_to_vmem [thread:$0]  (!%p7251_p0), %s7259_s30, 12288, %s7261_s21, %s7263_s1, %s7043_s26, %s7043_s26, %s7044_s14  }
  0x53   : > { %s5919_s23 = smul.u32 6, %s7248_s17  ;;  %s5372_s20 = sshll.u32 %s7248_s17, 8 }
  0x54   : > { %s5920_s29 = smul.u32 96, %s7037_s24  ;;  %s5824_s18 = sshll.u32 %s7037_s24, 12 }
  0x55   : > { %s8418_s5 = sld [smem:[#allocation43_spill]]  ;;  %s647_s25 = scalar_lea.vmem [#allocation12], %s5919_s23 }
  0x56   : > { %s655_s22 = sshll.u32 %s647_s25, 4  ;;  %s8419_s6 = sld [smem:[#allocation44_spill]]  ;;  %s656_s22 = int_to_ptr.vmem [resolvable:$true] %s655_s22 }
  0x5b   : > { %s7299_s27 = scalar_lea.hbm %s8418_s5, %s5920_s29  ;;  %s6608_s14 = scalar_lea.hbm %s8418_s5, 192 }
  0x5c   : > { %s7304_s15 = scalar_lea.hbm %s8419_s6, %s5824_s18  ;;  %s6603_s30 = scalar_lea.hbm %s7299_s27, 96 }
  0x5d   : > { %p6604_p1 = scmp.ne.s32.totalorder %s7299_s27, %s6603_s30  ;;  %p6609_p6 = scmp.lt.s32.totalorder %s7299_s27, %s8418_s5 }
  0x5e   : > { %p6610_p8 = scmp.lt.s32.totalorder %s6608_s14, %s6603_s30 }
  0x5f   : > { %p6606_p4 = pnand %p6604_p1, %p7269_p3 }
  0x60   : > { %p6611_p9 = por %p6610_p8, %p6609_p6 }
  0x61   : > { %p6607_p5 = pneg %p6606_p4 }
  0x63   : > { %p6612_p10 = pnand %p6611_p9, %p6607_p5 }
  0x65   : > { %6615 = shalt.err (!%p6612_p10)
}
  0x66   : > { %s6616_s2 = scalar_lea.vmem %s656_s22, 96  ;;  %s7045_s25 = smov [#allocation12]  }
  0x67   : > { %p6617_p11 = scmp.ne.s32.totalorder %s656_s22, %s6616_s2  ;;  %s6621_s3 = sshll.u32 %s7045_s25, 4  ;;  %s6622_s3 = int_to_ptr.vmem [resolvable:$false] %s6621_s3 }
  0x68   : > { %s6623_s23 = scalar_lea.vmem %s6622_s3, 192  ;;  %p6624_p2 = scmp.lt.s32.totalorder %s656_s22, %s6622_s3 }
  0x69   : > { %p6619_p12 = pnand %p6617_p11, %p7269_p3  ;;  %p6625_p7 = scmp.lt.s32.totalorder %s6623_s23, %s6616_s2 }
  0x6b   : > { %p6620_p13 = pneg %p6619_p12  ;;  %p6626_p1 = por %p6625_p7, %p6624_p2 }
  0x6d   : > { %p6627_p4 = pnand %p6626_p1, %p6620_p13 }
  0x6f   : > { %6630 = shalt.err (!%p6627_p4)
}
  0x70   : > { %5993 = dma.hbm_to_vmem [thread:$0]  (!%p7251_p0), %s7299_s27, 96, %s656_s22, %s7263_s1  }
  0x71   : > { %s666_s18 = scalar_lea.vmem [#allocation13], %s5372_s20  ;;  %s7326_s30 = sshll.u32 %s7248_s17, 1 }
  0x72   : > { %s673_s4 = sshll.u32 %s666_s18, 4  ;;  %s6631_s21 = scalar_lea.hbm %s7304_s15, 4096  ;;  %s674_s4 = int_to_ptr.vmem [resolvable:$true] %s673_s4 }
  0x73   : > { %p6632_p5 = scmp.ne.s32.totalorder %s7304_s15, %s6631_s21  ;;  %s6636_s29 = scalar_lea.hbm %s8419_s6, 8192 }
  0x74   : > { %p6637_p9 = scmp.lt.s32.totalorder %s7304_s15, %s8419_s6  ;;  %p6638_p10 = scmp.lt.s32.totalorder %s6636_s29, %s6631_s21 }
  0x75   : > { %p6634_p6 = pnand %p6632_p5, %p7269_p3 }
  0x76   : > { %p6639_p11 = por %p6638_p10, %p6637_p9 }
  0x77   : > { %p6635_p8 = pneg %p6634_p6 }
  0x79   : > { %p6640_p12 = pnand %p6639_p11, %p6635_p8 }
  0x7b   : > { %6643 = shalt.err (!%p6640_p12)
}
  0x7c   : > { %s6644_s22 = scalar_lea.vmem %s674_s4, 4096  ;;  %s7046_s27 = smov [#allocation13]  }
  0x7d   : > { %p6645_p13 = scmp.ne.s32.totalorder %s674_s4, %s6644_s22  ;;  %s6649_s20 = sshll.u32 %s7046_s27, 4  ;;  %s6650_s20 = int_to_ptr.vmem [resolvable:$false] %s6649_s20 }
  0x7e   : > { %s6651_s25 = scalar_lea.vmem %s6650_s20, 8192  ;;  %p6652_p1 = scmp.lt.s32.totalorder %s674_s4, %s6650_s20 }
  0x7f   : > { %p6647_p2 = pnand %p6645_p13, %p7269_p3  ;;  %p6653_p4 = scmp.lt.s32.totalorder %s6651_s25, %s6644_s22 }
  0x81   : > { %p6648_p7 = pneg %p6647_p2  ;;  %p6654_p5 = por %p6653_p4, %p6652_p1 }
  0x83   : > { %p6655_p6 = pnand %p6654_p5, %p6648_p7 }
  0x85   : > { %6658 = shalt.err (!%p6655_p6)
}
  0x86   : > { %s8420_s3 = smov 8   ;;  %s8421_s23 = smov 128  }
  0x87   : > { %5996 = dma.hbm_to_vmem [thread:$0]  (!%p7251_p0), %s7304_s15, 4096, %s674_s4, %s7263_s1, %s8421_s23, %s8421_s23, %s8420_s3  }
  0x88   : > { %s7349_s18 = sshll.u32 %s7037_s24, 5  ;;  %s694_s21 = scalar_lea.vmem [#allocation14], %s7326_s30 }
  0x89   : > { %s702_s26 = sshll.u32 %s694_s21, 4  ;;  %s700_s7 = scalar_lea.hbm %s8349_s8, %s7349_s18  ;;  %s703_s26 = int_to_ptr.vmem [resolvable:$true] %s702_s26 }
  0x8a   : > { %s6659_s2 = scalar_lea.hbm %s700_s7, 32  ;;  %s6664_s20 = scalar_lea.hbm %s8349_s8, 64 }
  0x8b   : > { %p6660_p8 = scmp.ne.s32.totalorder %s700_s7, %s6659_s2  ;;  %p6665_p11 = scmp.lt.s32.totalorder %s700_s7, %s8349_s8 }
  0x8c   : > { %p6666_p12 = scmp.lt.s32.totalorder %s6664_s20, %s6659_s2 }
  0x8d   : > { %p6662_p9 = pnand %p6660_p8, %p7269_p3 }
  0x8e   : > { %p6667_p13 = por %p6666_p12, %p6665_p11 }
  0x8f   : > { %p6663_p10 = pneg %p6662_p9 }
  0x91   : > { %p6668_p2 = pnand %p6667_p13, %p6663_p10 }
  0x93   : > { %6671 = shalt.err (!%p6668_p2)
}
  0x94   : > { %s6672_s25 = scalar_lea.vmem %s703_s26, 32  ;;  %s7047_s21 = smov [#allocation14]  }
  0x95   : > { %p6673_p7 = scmp.ne.s32.totalorder %s703_s26, %s6672_s25  ;;  %s6677_s14 = sshll.u32 %s7047_s21, 4  ;;  %s6678_s14 = int_to_ptr.vmem [resolvable:$false] %s6677_s14 }
  0x96   : > { %s6679_s29 = scalar_lea.vmem %s6678_s14, 64  ;;  %p6680_p5 = scmp.lt.s32.totalorder %s703_s26, %s6678_s14 }
  0x97   : > { %p6675_p1 = pnand %p6673_p7, %p7269_p3  ;;  %p6681_p6 = scmp.lt.s32.totalorder %s6679_s29, %s6672_s25 }
  0x99   : > { %p6676_p4 = pneg %p6675_p1  ;;  %p6682_p8 = por %p6681_p6, %p6680_p5 }
  0x9b   : > { %p6683_p9 = pnand %p6682_p8, %p6676_p4 }
  0x9d   : > { %6686 = shalt.err (!%p6683_p9)
}
  0x9e   : > { %5999 = dma.hbm_to_vmem [thread:$0]  (!%p7251_p0), %s700_s7, 32, %s703_s26, %s7263_s1  }
  0x9f   : > { %s7373_s27 = scalar_lea.hbm %s8350_s9, %s7349_s18  ;;  %s713_s20 = scalar_lea.vmem [#allocation15], %s7326_s30 }
  0xa0   : > { %s721_s15 = sshll.u32 %s713_s20, 4  ;;  %s6687_s25 = scalar_lea.hbm %s7373_s27, 32  ;;  %s722_s15 = int_to_ptr.vmem [resolvable:$true] %s721_s15 }
  0xa1   : > { %p6688_p10 = scmp.ne.s32.totalorder %s7373_s27, %s6687_s25  ;;  %s6692_s26 = scalar_lea.hbm %s8350_s9, 64 }
  0xa2   : > { %p6693_p13 = scmp.lt.s32.totalorder %s7373_s27, %s8350_s9  ;;  %p6694_p2 = scmp.lt.s32.totalorder %s6692_s26, %s6687_s25 }
  0xa3   : > { %p6690_p11 = pnand %p6688_p10, %p7269_p3 }
  0xa4   : > { %p6695_p7 = por %p6694_p2, %p6693_p13 }
  0xa5   : > { %p6691_p12 = pneg %p6690_p11 }
  0xa7   : > { %p6696_p1 = pnand %p6695_p7, %p6691_p12 }
  0xa9   : > { %6699 = shalt.err (!%p6696_p1)
}
  0xaa   : > { %s6700_s2 = scalar_lea.vmem %s722_s15, 32  ;;  %s7048_s22 = smov [#allocation15]  }
  0xab   : > { %p6701_p4 = scmp.ne.s32.totalorder %s722_s15, %s6700_s2  ;;  %s6705_s20 = sshll.u32 %s7048_s22, 4  ;;  %s6706_s20 = int_to_ptr.vmem [resolvable:$false] %s6705_s20 }
  0xac   : > { %s6707_s4 = scalar_lea.vmem %s6706_s20, 64  ;;  %p6708_p8 = scmp.lt.s32.totalorder %s722_s15, %s6706_s20 }
  0xad   : > { %p6703_p5 = pnand %p6701_p4, %p7269_p3  ;;  %p6709_p9 = scmp.lt.s32.totalorder %s6707_s4, %s6700_s2 }
  0xaf   : > { %p6704_p6 = pneg %p6703_p5  ;;  %p6710_p10 = por %p6709_p9, %p6708_p8 }
  0xb1   : > { %p6711_p11 = pnand %p6710_p10, %p6704_p6 }
  0xb3   : > { %6714 = shalt.err (!%p6711_p11)
}
  0xb4   : > { %6002 = dma.hbm_to_vmem [thread:$0]  (!%p7251_p0), %s7373_s27, 32, %s722_s15, %s7263_s1  }
  0xb5   : > { %s5827_s25 = sshll.u32 %s7037_s24, 14  ;;  %s8422_s21 = sshll.u32 %s7248_s17, 10 }
  0xb6   : > { %s732_s14 = scalar_lea.vmem [#allocation16], %s8422_s21  ;;  %s7402_s4 = scalar_lea.hbm %s8351_s10, %s5827_s25 }
  0xb7   : > { %s739_s26 = sshll.u32 %s732_s14, 4  ;;  %s6715_s2 = scalar_lea.hbm %s7402_s4, 16384  ;;  %s7404_s26 = int_to_ptr.vmem [resolvable:$true] %s739_s26 }
  0xb8   : > { %p6716_p12 = scmp.ne.s32.totalorder %s7402_s4, %s6715_s2  ;;  %s6720_s22 = scalar_lea.hbm %s8351_s10, 32768 }
  0xb9   : > { %p6721_p7 = scmp.lt.s32.totalorder %s7402_s4, %s8351_s10  ;;  %p6722_p1 = scmp.lt.s32.totalorder %s6720_s22, %s6715_s2 }
  0xba   : > { %p6718_p13 = pnand %p6716_p12, %p7269_p3 }
  0xbb   : > { %p6723_p4 = por %p6722_p1, %p6721_p7 }
  0xbc   : > { %p6719_p2 = pneg %p6718_p13 }
  0xbe   : > { %p6724_p5 = pnand %p6723_p4, %p6719_p2 }
  0xc0   : > { %6727 = shalt.err (!%p6724_p5)
}
  0xc1   : > { %s6728_s14 = scalar_lea.vmem %s7404_s26, 16384  ;;  %s7049_s7 = smov [#allocation16]  }
  0xc2   : > { %p6729_p6 = scmp.ne.s32.totalorder %s7404_s26, %s6728_s14  ;;  %s6733_s29 = sshll.u32 %s7049_s7, 4  ;;  %s6734_s29 = int_to_ptr.vmem [resolvable:$false] %s6733_s29 }
  0xc3   : > { %s6735_s27 = scalar_lea.vmem %s6734_s29, 32768  ;;  %p6736_p10 = scmp.lt.s32.totalorder %s7404_s26, %s6734_s29 }
  0xc4   : > { %p6731_p8 = pnand %p6729_p6, %p7269_p3  ;;  %p6737_p11 = scmp.lt.s32.totalorder %s6735_s27, %s6728_s14 }
  0xc6   : > { %p6732_p9 = pneg %p6731_p8  ;;  %p6738_p12 = por %p6737_p11, %p6736_p10 }
  0xc8   : > { %p6739_p13 = pnand %p6738_p12, %p6732_p9 }
  0xca   : > { %6742 = shalt.err (!%p6739_p13)
}
  0xcb   : > { %s7050_s2 = smov 512   ;;  %s7051_s15 = smov 32  }
  0xcc   : > { %6005 = dma.hbm_to_vmem [thread:$0]  (!%p7251_p0), %s7402_s4, 16384, %s7404_s26, %s7263_s1, %s7050_s2, %s7050_s2, %s7051_s15  }
  0xcd   : > { %s7052_s22 = smov [#allocation6]   ;;  %p8423_p7 = scmp.ne.s32.totalorder %s8412_s0, 0 }
  0xce   : > { %s567_s20 = sshll.u32 %s7052_s22, 4  ;;  %s568_s20 = int_to_ptr.vmem [resolvable:$true] %s567_s20 }
  0xcf   : > { %s6754_s21 = scalar_lea.vmem %s568_s20, 32  ;;  %p6762_p5 = scmp.lt.s32.totalorder %s568_s20, %s568_s20 }
  0xd0   : > { %p6755_p2 = scmp.ne.s32.totalorder %s568_s20, %s6754_s21  ;;  %p6763_p6 = scmp.lt.s32.totalorder %s6754_s21, %s6754_s21 }
  0xd2   : > { %p6757_p1 = pnand %p6755_p2, %p8423_p7  ;;  %p6764_p8 = por %p6763_p6, %p6762_p5 }
  0xd4   : > { %p6758_p4 = pneg %p6757_p1 }
  0xd6   : > { %p6765_p9 = pnand %p6764_p8, %p6758_p4 }
  0xd8   : > { %6768 = shalt.err (!%p6765_p9)
}
  0xd9   : > { %s7053_s14 = smov 16   ;;  %s7054_s7 = smov 1  }
  0xda   : > { %p8424_p10 = scmp.ne.s32.totalorder %s8410_s28, 0  ;;  %s8425_s29 = sld [smem:[#allocation39_spill]] }
  0xdb   : > { %s7439_s15 = scalar_lea.hbm %s8353_s12, %s5827_s25  ;;  %s8426_s22 = sshll.u32 %s7248_s17, 10 }
  0xdc   : > { %s760_s21 = scalar_lea.vmem [#allocation17], %s8426_s22  ;;  %s6769_s6 = scalar_lea.hbm %s7439_s15, 16384 }
  0xdd   : > { %s767_s5 = sshll.u32 %s760_s21, 4  ;;  %p6770_p11 = scmp.ne.s32.totalorder %s7439_s15, %s6769_s6  ;;  %s768_s5 = int_to_ptr.vmem [resolvable:$true] %s767_s5 }
  0xde   : > { %s6774_s24 = scalar_lea.hbm %s8353_s12, 32768  ;;  %p6775_p2 = scmp.lt.s32.totalorder %s7439_s15, %s8353_s12 }
  0xdf   : > { %p6772_p12 = pnand %p6770_p11, %p7269_p3  ;;  %p6776_p1 = scmp.lt.s32.totalorder %s6774_s24, %s6769_s6 }
  0xe0   : > { %5977 = dma.hbm_to_vmem [thread:$0]  (!%p8424_p10), %s8425_s29, 32, %s568_s20, [#allocation7], %s7053_s14, %s7053_s14, %s7054_s7  }
  0xe1   : > { %p6773_p13 = pneg %p6772_p12  ;;  %p6777_p4 = por %p6776_p1, %p6775_p2 }
  0xe3   : > { %p6778_p5 = pnand %p6777_p4, %p6773_p13 }
  0xe5   : > { %6781 = shalt.err (!%p6778_p5)
}
  0xe6   : > { %s6782_s17 = scalar_lea.vmem %s768_s5, 16384  ;;  %s7055_s25 = smov [#allocation17]  }
  0xe7   : > { %p6783_p6 = scmp.ne.s32.totalorder %s768_s5, %s6782_s17  ;;  %s6787_s4 = sshll.u32 %s7055_s25, 4  ;;  %s6788_s4 = int_to_ptr.vmem [resolvable:$false] %s6787_s4 }
  0xe8   : > { %s6789_s29 = scalar_lea.vmem %s6788_s4, 32768  ;;  %p6790_p11 = scmp.lt.s32.totalorder %s768_s5, %s6788_s4 }
  0xe9   : > { %p6785_p8 = pnand %p6783_p6, %p7269_p3  ;;  %p6791_p12 = scmp.lt.s32.totalorder %s6789_s29, %s6782_s17 }
  0xeb   : > { %p6786_p9 = pneg %p6785_p8  ;;  %p6792_p10 = por %p6791_p12, %p6790_p11 }
  0xed   : > { %p6793_p7 = pnand %p6792_p10, %p6786_p9 }
  0xef   : > { %6796 = shalt.err (!%p6793_p7)
}
  0xf0   : > { %6008 = dma.hbm_to_vmem [thread:$0]  (!%p7251_p0), %s7439_s15, 16384, %s768_s5, %s7263_s1, %s8421_s23, %s8421_s23, %s8420_s3  }
  0xf1   : > { %s7056_s6 = smov [#allocation8]   ;;  %s7467_s21 = scalar_lea.hbm %s8354_s13, %s7349_s18 }
  0xf2   : > { %s581_s27 = sshll.u32 %s7056_s6, 4  ;;  %p8427_p10 = scmp.ne.s32.totalorder %s8412_s0, 0  ;;  %s582_s27 = int_to_ptr.vmem [resolvable:$true] %s581_s27 }
  0xf3   : > { %s6808_s26 = scalar_lea.vmem %s582_s27, 32  ;;  %p6816_p1 = scmp.lt.s32.totalorder %s582_s27, %s582_s27 }
  0xf4   : > { %p6809_p7 = scmp.ne.s32.totalorder %s582_s27, %s6808_s26  ;;  %p6817_p4 = scmp.lt.s32.totalorder %s6808_s26, %s6808_s26 }
  0xf6   : > { %p6811_p13 = pnand %p6809_p7, %p8427_p10  ;;  %p6818_p5 = por %p6817_p4, %p6816_p1 }
  0xf8   : > { %p6812_p2 = pneg %p6811_p13 }
  0xfa   : > { %p6819_p6 = pnand %p6818_p5, %p6812_p2 }
  0xfc   : > { %6822 = shalt.err (!%p6819_p6)
}
  0xfd   : > { %p8428_p8 = scmp.ne.s32.totalorder %s8410_s28, 0  ;;  %s8429_s23 = sld [smem:[#allocation40_spill]] }
  0xfe   : > { %s781_s15 = scalar_lea.vmem [#allocation18], %s7326_s30  ;;  %s7057_s24 = smov [#allocation9]  }
  0xff   : > { %s789_s20 = sshll.u32 %s781_s15, 4  ;;  %s592_s14 = sshll.u32 %s7057_s24, 4  ;;  %s790_s20 = int_to_ptr.vmem [resolvable:$true] %s789_s20  ;;  %s593_s14 = int_to_ptr.vmem [resolvable:$true] %s592_s14 }
 0x100   : > { %s6823_s7 = scalar_lea.hbm %s7467_s21, 32  ;;  %s6828_s4 = scalar_lea.hbm %s8354_s13, 64 }
 0x101   : > { %p6824_p9 = scmp.ne.s32.totalorder %s7467_s21, %s6823_s7  ;;  %p6829_p7 = scmp.lt.s32.totalorder %s7467_s21, %s8354_s13 }
 0x102   : > { %p6830_p13 = scmp.lt.s32.totalorder %s6828_s4, %s6823_s7 }
 0x103   : > { %5980 = dma.hbm_to_vmem [thread:$0]  (!%p8428_p8), %s8429_s23, 32, %s582_s27, [#allocation7]  }
 0x104   : > { %p6826_p11 = pnand %p6824_p9, %p7269_p3  ;;  %p6831_p2 = por %p6830_p13, %p6829_p7 }
 0x106   : > { %p6827_p12 = pneg %p6826_p11 }
 0x108   : > { %p6832_p1 = pnand %p6831_p2, %p6827_p12 }
 0x10a   : > { %6835 = shalt.err (!%p6832_p1)
}
 0x10b   : > { %s6836_s27 = scalar_lea.vmem %s790_s20, 32  ;;  %s7058_s2 = smov [#allocation18]  }
 0x10c   : > { %p6837_p4 = scmp.ne.s32.totalorder %s790_s20, %s6836_s27  ;;  %s6841_s22 = sshll.u32 %s7058_s2, 4  ;;  %s6842_s22 = int_to_ptr.vmem [resolvable:$false] %s6841_s22 }
 0x10d   : > { %s6843_s26 = scalar_lea.vmem %s6842_s22, 64  ;;  %p6844_p9 = scmp.lt.s32.totalorder %s790_s20, %s6842_s22 }
 0x10e   : > { %p6839_p5 = pnand %p6837_p4, %p7269_p3  ;;  %p6845_p11 = scmp.lt.s32.totalorder %s6843_s26, %s6836_s27 }
 0x110   : > { %p6840_p6 = pneg %p6839_p5  ;;  %p6846_p8 = por %p6845_p11, %p6844_p9 }
 0x112   : > { %p6847_p10 = pnand %p6846_p8, %p6840_p6 }
 0x114   : > { %6850 = shalt.err (!%p6847_p10)
}
 0x115   : > { %6011 = dma.hbm_to_vmem [thread:$0]  (!%p7251_p0), %s7467_s21, 32, %s790_s20, %s7263_s1  }
 0x116   : > { %s6862_s5 = scalar_lea.vmem %s593_s14, 32  ;;  %p8430_p7 = scmp.ne.s32.totalorder %s8412_s0, 0 }
 0x117   : > { %p6863_p12 = scmp.ne.s32.totalorder %s593_s14, %s6862_s5  ;;  %p6870_p1 = scmp.lt.s32.totalorder %s593_s14, %s593_s14 }
 0x118   : > { %p6871_p4 = scmp.lt.s32.totalorder %s6862_s5, %s6862_s5 }
 0x119   : > { %p6865_p13 = pnand %p6863_p12, %p8430_p7 }
 0x11a   : > { %p6872_p5 = por %p6871_p4, %p6870_p1 }
 0x11b   : > { %p6866_p2 = pneg %p6865_p13 }
 0x11d   : > { %p6873_p3 = pnand %p6872_p5, %p6866_p2 }
 0x11f   : > { %6876 = shalt.err (!%p6873_p3)
}
 0x120   : > { %p8431_p8 = scmp.ne.s32.totalorder %s8410_s28, 0  ;;  %s8432_s15 = sld [smem:[#allocation41_spill]] }
 0x121   : > { %s7059_s24 = smov [#allocation20]  }
 0x122   : > { %s602_s21 = sshll.u32 %s7059_s24, 4  ;;  %s603_s21 = int_to_ptr.vmem [resolvable:$true] %s602_s21 }
 0x123   : > { %s6888_s20 = scalar_lea.vmem %s603_s21, 2048  ;;  %p6896_p11 = scmp.lt.s32.totalorder %s603_s21, %s603_s21 }
 0x124   : > { %p6889_p10 = scmp.ne.s32.totalorder %s603_s21, %s6888_s20  ;;  %p6897_p12 = scmp.lt.s32.totalorder %s6888_s20, %s6888_s20 }
 0x126   : > { %5983 = dma.hbm_to_vmem [thread:$0]  (!%p8431_p8), %s8432_s15, 32, %s593_s14, [#allocation10]  }
 0x127   : > { %p6891_p6 = pnand %p6889_p10, %p8430_p7  ;;  %p6898_p13 = por %p6897_p12, %p6896_p11 }
 0x129   : > { %p6892_p9 = pneg %p6891_p6 }
 0x12b   : > { %p6899_p2 = pnand %p6898_p13, %p6892_p9 }
 0x12d   : > { %6902 = shalt.err (!%p6899_p2)
}
 0x12e   : > { %s7060_s7 = smov 64   ;;  %s7061_s17 = smov 4  }
 0x12f   : > { %5986 = dma.hbm_to_vmem [thread:$0]  (!%p8431_p8), %s8357_s16, 2048, %s603_s21, [#allocation7], %s7060_s7, %s7060_s7, %s7061_s17  }
 0x130   : > { %s8433_s29 = sld [smem:[#allocation48_spill]]  ;;  %s807_s27 = scalar_lea.vmem [#allocation19], %s7326_s30 }
 0x131   : > { %s815_s2 = sshll.u32 %s807_s27, 4  ;;  %p8434_p7 = scmp.ne.s32.totalorder %s8417_s19, 0  ;;  %s816_s2 = int_to_ptr.vmem [resolvable:$true] %s815_s2 }
 0x136   : > { %s813_s6 = scalar_lea.hbm %s8433_s29, %s7349_s18  ;;  %s6908_s28 = scalar_lea.hbm %s8433_s29, 64 }
 0x137   : > { %s6903_s22 = scalar_lea.hbm %s813_s6, 32  ;;  %p6909_p5 = scmp.lt.s32.totalorder %s813_s6, %s8433_s29 }
 0x138   : > { %p6904_p3 = scmp.ne.s32.totalorder %s813_s6, %s6903_s22  ;;  %p6910_p8 = scmp.lt.s32.totalorder %s6908_s28, %s6903_s22 }
 0x13a   : > { %p6906_p1 = pnand %p6904_p3, %p8434_p7  ;;  %p6911_p10 = por %p6910_p8, %p6909_p5 }
 0x13c   : > { %p6907_p4 = pneg %p6906_p1 }
 0x13e   : > { %p6912_p6 = pnand %p6911_p10, %p6907_p4 }
 0x140   : > { %6915 = shalt.err (!%p6912_p6)
}
 0x141   : > { %s6916_s30 = scalar_lea.vmem %s816_s2, 32  ;;  %s7062_s18 = smov [#allocation19]  }
 0x142   : > { %p6917_p9 = scmp.ne.s32.totalorder %s816_s2, %s6916_s30  ;;  %s6921_s15 = sshll.u32 %s7062_s18, 4  ;;  %s6922_s15 = int_to_ptr.vmem [resolvable:$false] %s6921_s15 }
 0x143   : > { %s6923_s24 = scalar_lea.vmem %s6922_s15, 64  ;;  %p6924_p13 = scmp.lt.s32.totalorder %s816_s2, %s6922_s15 }
 0x144   : > { %p6919_p11 = pnand %p6917_p9, %p8434_p7  ;;  %p6925_p2 = scmp.lt.s32.totalorder %s6923_s24, %s6916_s30 }
 0x146   : > { %p6920_p12 = pneg %p6919_p11  ;;  %p6926_p3 = por %p6925_p2, %p6924_p13 }
 0x148   : > { %p6927_p1 = pnand %p6926_p3, %p6920_p12 }
 0x14a   : > { %6930 = shalt.err (!%p6927_p1)
}
 0x14b   : > { %6014 = dma.hbm_to_vmem [thread:$0]  (!%p7251_p0), %s813_s6, 32, %s816_s2, %s7263_s1  }
 0x14c   : > { %s8435_s21 = sld [smem:[#allocation35_spill]] }
 0x152   : > { %p8436_p4 = scmp.ne.s32.totalorder %s8435_s21, 0 }
 0x153   : > { %s8437_s20 = sld [smem:[#allocation33_spill]] (!%p8436_p4) }
 0x154   : > { %824 = sbr.rel (%p8436_p4) target bundleno = 4333 (0x10ed), region = 96 }
 0x159   : > { %p8438_p5 = scmp.eq.s32.totalorder %s8437_s20, 0 }
 0x15b   : > { %6996 = dma.done.wait (%p8438_p5), [#allocation4], 256   ;;  %p8439_p7 = pmov %p8438_p5 }
 0x15c   : > { %p8440_p8 = pmov %p8438_p5 }
 0x15d   : > { %6998 = vsyncadd (%p8439_p7), [#allocation4], 4294967040 }
 0x15e   : > { %7000 = dma.done.wait (%p8440_p8), [#allocation7], 64   ;;  %p8441_p10 = pmov %p8438_p5 }
 0x15f   : > { %p8442_p6 = pmov %p8438_p5 }
 0x160   : > { %7002 = vsyncadd (%p8441_p10), [#allocation7], 4294967232 }
 0x161   : > { %7004 = dma.done.wait (%p8442_p6), [#allocation10], 32   ;;  %p8443_p0 = pmov %p8438_p5 }
 0x162   : > { %s8444_s11 = sld [smem:[#allocation31_spill]]  ;;  %s842_s1 = sand.u32 1, %s8437_s20  }
 0x163   : > { %7006 = vsyncadd (%p8443_p0), [#allocation10], 4294967264  ;;  %s8445_s19 = sld [smem:[#allocation34_spill]]  ;;  %s843_s14 = scalar_lea.sflag [#allocation4], %s842_s1 }
 0x168   : > { %s844_s7 = sand.u32 1, %s8444_s11  }
 0x169   : > { %s5921_s17 = smul.u32 768, %s844_s7  ;;  %p8446_p9 = scmp.ne.s32.totalorder %s8445_s19, 0 }
 0x16b   : > { %s7542_s25 = scalar_lea.vmem [#allocation11], %s5921_s17 }
 0x16c   : > { %7008 = dma.done.wait (%p8446_p9), %s843_s14, 49376  }
 0x16d   : > { %7010 = vsyncadd (%p8446_p9), %s843_s14, 4294917920  ;;  %s5922_s4 = smul.u32 6, %s844_s7  ;;  %s5398_s0 = sshll.u32 %s844_s7, 8 }
 0x16e   : > { %s7548_s6 = sshll.u32 %s844_s7, 1  ;;  %s5401_s27 = sshll.u32 %s844_s7, 10 }
 0x16f   : > { %s7550_s2 = scalar_lea.vmem [#allocation12], %s5922_s4  ;;  %s7552_s22 = scalar_lea.vmem [#allocation13], %s5398_s0 }
 0x170   : > { %s873_s26 = scalar_lea.vmem [#allocation14], %s7548_s6  ;;  %s882_s5 = scalar_lea.vmem [#allocation15], %s7548_s6 }
 0x171   : > { %s7556_s28 = scalar_lea.vmem [#allocation16], %s5401_s27  ;;  %s7558_s3 = scalar_lea.vmem [#allocation17], %s5401_s27 }
 0x172   : > { %p8447_p11 = pmov %p8443_p0 }
 0x173   : > { %p8448_p12 = pmov %p8443_p0 }
 0x174   : > { %7012 = dma.done.wait (%p8447_p11), [#allocation7], 2048  }
 0x175   : > { %7014 = vsyncadd (%p8448_p12), [#allocation7], 4294965248  ;;  %p1026_p13 = scmp.lt.s32.totalorder %s8437_s20, 1  ;;  %s8449_s19 = sld [smem:[#allocation45_spill]] }
 0x176   : > { %s8450_s14 = sld [smem:[#allocation46_spill]]  ;;  %p8452_p2 = scmp.ne.s32.totalorder %s8437_s20, 0 }
 0x177   : > { %s1027_s18 = scalar_select %p1026_p13, %s8437_s20, 1 }
 0x178   : > { %s8451_s30 = sld [smem:[#allocation47_spill]] }
 0x179   : > { %s5406_s15 = sshll.u32 %s1027_s18, 1  ;;  %s5407_s24 = sshll.u32 %s1027_s18, 3 }
 0x17a   : > { %1042 = sbr.rel (%p8452_p2) target bundleno = 701 (0x2bd), region = 156 }
 0x17b   : > { %s7571_s1 = scalar_lea.vmem %s8449_s19, %s5406_s15 }
 0x17c   : > { %s7576_s4 = scalar_lea.vmem %s8450_s14, %s5407_s24 }
 0x17e   : > { %s7581_s23 = scalar_lea.vmem %s8451_s30, %s5406_s15 }
 0x17f   : > { %v1043_v0 = vld [vmem:[#allocation3] sm:$0xff]  ;;  %v1044_v1 = vld [vmem:[#allocation3 + $0x8] sm:$0xff]  ;;  %v1085_v26 = vlaneseq  ;;  %v1049_v32 = vld [vmem:[#allocation8] sm:$0x3] }
 0x180   : > { %v1045_v2 = vunpack.c.l.bf16 %v1043_v0  ;;  %v1046_v3 = vunpack.c.h.bf16 %v1043_v0  ;;  %v1047_v4 = vunpack.c.l.bf16 %v1044_v1  ;;  %v1048_v5 = vunpack.c.h.bf16 %v1044_v1  ;;  %v1050_v33 = vld [vmem:[#allocation9] sm:$0x3] }
 0x181   : > { %v1086_v29 = vshrl.u32 %v1085_v26, 7 }
 0x182   : > { %v1051_v6 = vadd.f32 %v1046_v3, %v1045_v2  ;;  %v1054_v7 = vadd.f32 %v1048_v5, %v1047_v4 }
 0x183   : > { %v1087_v30 = vsub.s32 0, %v1086_v29  ;;  %v1091_v31 = vsub.s32 1, %v1086_v29 }
 0x184   : > { %1052 = vadd.xlane.f32.xlu0 %v1051_v6 }
 0x185   : > { %v1088_v34 = vrot.slane %v1049_v32, %v1087_v30  ;;  %v1092_v35 = vrot.slane %v1049_v32, %v1091_v31  ;;  %v1103_v37 = vrot.slane %v1050_v33, %v1087_v30  ;;  %v1107_v38 = vrot.slane %v1050_v33, %v1091_v31 }
 0x188   : > { %1055 = vadd.xlane.f32.xlu0 %v1054_v7 }
 0x20d   : > { %v1053_v8 = vpop.xlane.xlu0 %1052 }
 0x20e   : > { %v1058_v9 = vmul.f32 0.00390625, %v1053_v8 }
 0x210   : > { %v1060_v10 = vsub.f32 %v1045_v2, %v1058_v9  ;;  %v1061_v11 = vsub.f32 %v1046_v3, %v1058_v9 }
 0x211   : > { %v1056_v12 = vpop.xlane.xlu0 %1055 }
 0x212   : > { %v1059_v13 = vmul.f32 0.00390625, %v1056_v12  ;;  %v1064_v14 = vmul.f32 %v1060_v10, %v1060_v10  ;;  %v1065_v15 = vmul.f32 %v1061_v11, %v1061_v11 }
 0x214   : > { %v1062_v16 = vsub.f32 %v1047_v4, %v1059_v13  ;;  %v1063_v17 = vsub.f32 %v1048_v5, %v1059_v13  ;;  %v1068_v18 = vadd.f32 %v1065_v15, %v1064_v14 }
 0x216   : > { %1069 = vadd.xlane.f32.xlu1 %v1068_v18  ;;  %v1066_v19 = vmul.f32 %v1062_v16, %v1062_v16  ;;  %v1067_v20 = vmul.f32 %v1063_v17, %v1063_v17 }
 0x218   : > { %v1071_v21 = vadd.f32 %v1067_v20, %v1066_v19 }
 0x21a   : > { %1072 = vadd.xlane.f32.xlu1 %v1071_v21 }
 0x29f   : > { %v1070_v22 = vpop.xlane.xlu1 %1069 }
 0x2a0   : > { %v1074_v23 = vmul.f32 0.00390625, %v1070_v22 }
 0x2a2   : > { %v1076_v24 = vadd.f32 1e-12, %v1074_v23 }
 0x2a3   : > { %v1073_v25 = vpop.xlane.xlu1 %1072 }
 0x2a4   : > { %6082 = vrsqrt.f32 %v1076_v24  ;;  %v1075_v27 = vmul.f32 0.00390625, %v1073_v25 }
 0x2a6   : > { %v1077_v28 = vadd.f32 1e-12, %v1075_v27 }
 0x2a8   : > { %6084 = vrsqrt.f32 %v1077_v28 }
 0x2b1   : > { %v6083_v36 = vpop.eup %6082 }
 0x2b2   : > { %v1080_v39 = vmul.f32 %v6083_v36, %v1060_v10  ;;  %v1081_v40 = vmul.f32 %v6083_v36, %v1061_v11 }
 0x2b4   : > { %v1095_v41 = vmul.f32 %v1088_v34, %v1080_v39  ;;  %v1096_v42 = vmul.f32 %v1092_v35, %v1081_v40 }
 0x2b5   : > { %v6085_v43 = vpop.eup %6084 }
 0x2b6   : > { %v1110_v44 = vadd.f32 %v1103_v37, %v1095_v41  ;;  %v1111_v45 = vadd.f32 %v1107_v38, %v1096_v42  ;;  %v1082_v46 = vmul.f32 %v6085_v43, %v1062_v16  ;;  %v1083_v47 = vmul.f32 %v6085_v43, %v1063_v17 }
 0x2b8   : > { %1114 = vst [vmem:[#allocation2 + $0x10] sm:$0xff] %v1110_v44  ;;  %1115 = vst [vmem:[#allocation2] sm:$0xff] %v1111_v45  ;;  %v1097_v48 = vmul.f32 %v1088_v34, %v1082_v46  ;;  %v1098_v49 = vmul.f32 %v1092_v35, %v1083_v47 }
 0x2ba   : > { %v1112_v50 = vadd.f32 %v1103_v37, %v1097_v48  ;;  %v1113_v51 = vadd.f32 %v1107_v38, %v1098_v49 }
 0x2bc   : > { %1116 = vst [vmem:[#allocation2 + $0x18] sm:$0xff] %v1112_v50  ;;  %1117 = vst [vmem:[#allocation2 + $0x8] sm:$0xff] %v1113_v51 }
 0x2bd PF: > { %v6086_v52 = vld [vmem:[%s7542_s25 + $0x15c] ss:$24 sps:$4 sm:$0xff]   ;;  %v6088_v53 = vld [vmem:[%s7542_s25 + $0x158] ss:$24 sps:$4 sm:$0xff]   ;;  %v6092_v56 = vld [vmem:[%s7542_s25 + $0x12c] ss:$24 sps:$4 sm:$0xff]  }
 0x2be   : > { %1775 = vmatprep.subr.bf16.mxu1 %v6086_v52  ;;  %v6089_v54 = vld [vmem:[%s7542_s25 + $0x154] ss:$24 sps:$4 sm:$0xff]   ;;  %v6091_v55 = vld [vmem:[%s7542_s25 + $0x150] ss:$24 sps:$4 sm:$0xff]   ;;  %v6095_v58 = vld [vmem:[%s7542_s25 + $0x124] ss:$24 sps:$4 sm:$0xff]  }
 0x2bf   : > { %1776 = vmatpush1.bf16.msra.mxu1 %v6088_v53  ;;  %v6094_v57 = vld [vmem:[%s7542_s25 + $0x128] ss:$24 sps:$4 sm:$0xff]   ;;  %1732 = vmatprep.subr.bf16.mxu0 %v6089_v54  ;;  %v6098_v60 = vld [vmem:[%s7542_s25 + $0xfc] ss:$24 sps:$4 sm:$0xff]   ;;  %v6100_v61 = vld [vmem:[%s7542_s25 + $0xf8] ss:$24 sps:$4 sm:$0xff]  }
 0x2c0   : > { %1733 = vmatpush1.bf16.msra.mxu0 %v6091_v55  ;;  %1777 = vmatprep.subr.bf16.mxu1 %v6092_v56  ;;  %v6097_v59 = vld [vmem:[%s7542_s25 + $0x120] ss:$24 sps:$4 sm:$0xff]   ;;  %v6101_v62 = vld [vmem:[%s7542_s25 + $0xf4] ss:$24 sps:$4 sm:$0xff]   ;;  %v6103_v0 = vld [vmem:[%s7542_s25 + $0xf0] ss:$24 sps:$4 sm:$0xff]  }
 0x2c1   : > { %1734 = vmatprep.subr.bf16.mxu0 %v6095_v58  ;;  %v6104_v63 = vld [vmem:[%s7542_s25 + $0xcc] ss:$24 sps:$4 sm:$0xff]   ;;  %v6106_v2 = vld [vmem:[%s7542_s25 + $0xc8] ss:$24 sps:$4 sm:$0xff]   ;;  %v6110_v3 = vld [vmem:[%s7542_s25 + $0x9c] ss:$24 sps:$4 sm:$0xff]  }
 0x2c2   : > { %v6107_v1 = vld [vmem:[%s7542_s25 + $0xc4] ss:$24 sps:$4 sm:$0xff]   ;;  %v6109_v4 = vld [vmem:[%s7542_s25 + $0xc0] ss:$24 sps:$4 sm:$0xff]   ;;  %v6113_v5 = vld [vmem:[%s7542_s25 + $0x94] ss:$24 sps:$4 sm:$0xff]  }
 0x2c3   : > { %1778 = vmatpush1.bf16.msra.mxu1 %v6094_v57  ;;  %v6112_v6 = vld [vmem:[%s7542_s25 + $0x98] ss:$24 sps:$4 sm:$0xff]   ;;  %v6116_v7 = vld [vmem:[%s7542_s25 + $0x6c] ss:$24 sps:$4 sm:$0xff]   ;;  %v6118_v10 = vld [vmem:[%s7542_s25 + $0x68] ss:$24 sps:$4 sm:$0xff]  }
 0x2c4   : > { %1779 = vmatprep.subr.bf16.mxu1 %v6098_v60  ;;  %1735 = vmatpush1.bf16.msra.mxu0 %v6097_v59  ;;  %v6115_v8 = vld [vmem:[%s7542_s25 + $0x90] ss:$24 sps:$4 sm:$0xff]   ;;  %v6119_v9 = vld [vmem:[%s7542_s25 + $0x64] ss:$24 sps:$4 sm:$0xff]   ;;  %v6121_v12 = vld [vmem:[%s7542_s25 + $0x60] ss:$24 sps:$4 sm:$0xff]   ;;  %v1222_v59 = vlaneseq }
 0x2c5   : > { %1736 = vmatprep.subr.bf16.mxu0 %v6101_v62  ;;  %v6122_v11 = vld [vmem:[%s7542_s25 + $0x3c] ss:$24 sps:$4 sm:$0xff]   ;;  %v6124_v14 = vld [vmem:[%s7542_s25 + $0x38] ss:$24 sps:$4 sm:$0xff]   ;;  %v6128_v15 = vld [vmem:[%s7542_s25 + $0xc] ss:$24 sps:$4 sm:$0xff]  }
 0x2c6   : > { %v6125_v13 = vld [vmem:[%s7542_s25 + $0x34] ss:$24 sps:$4 sm:$0xff]   ;;  %v6127_v16 = vld [vmem:[%s7542_s25 + $0x30] ss:$24 sps:$4 sm:$0xff]   ;;  %v6131_v17 = vld [vmem:[%s7542_s25 + $0x4] ss:$24 sps:$4 sm:$0xff]  }
 0x2c7   : > { %1780 = vmatpush1.bf16.msra.mxu1 %v6100_v61  ;;  %v6130_v18 = vld [vmem:[%s7542_s25 + $0x8] ss:$24 sps:$4 sm:$0xff]   ;;  %v6134_v19 = vld [vmem:[%s7542_s25 + $0x2dc] ss:$24 sps:$4 sm:$0xff]   ;;  %v6136_v22 = vld [vmem:[%s7542_s25 + $0x2d8] ss:$24 sps:$4 sm:$0xff]  }
 0x2c8   : > { %1781 = vmatprep.subr.bf16.mxu1 %v6104_v63  ;;  %1737 = vmatpush1.bf16.msra.mxu0 %v6103_v0  ;;  %v6133_v20 = vld [vmem:[%s7542_s25] ss:$24 sps:$4 sm:$0xff]   ;;  %v6137_v21 = vld [vmem:[%s7542_s25 + $0x2d4] ss:$24 sps:$4 sm:$0xff]   ;;  %v6139_v24 = vld [vmem:[%s7542_s25 + $0x2d0] ss:$24 sps:$4 sm:$0xff]  }
 0x2c9   : > { %1738 = vmatprep.subr.bf16.mxu0 %v6107_v1  ;;  %v6140_v23 = vld [vmem:[%s7542_s25 + $0x2ac] ss:$24 sps:$4 sm:$0xff]   ;;  %v6142_v26 = vld [vmem:[%s7542_s25 + $0x2a8] ss:$24 sps:$4 sm:$0xff]   ;;  %v6146_v27 = vld [vmem:[%s7542_s25 + $0x27c] ss:$24 sps:$4 sm:$0xff]  }
 0x2ca   : > { %v6143_v25 = vld [vmem:[%s7542_s25 + $0x2a4] ss:$24 sps:$4 sm:$0xff]   ;;  %v6145_v28 = vld [vmem:[%s7542_s25 + $0x2a0] ss:$24 sps:$4 sm:$0xff]   ;;  %v6149_v29 = vld [vmem:[%s7542_s25 + $0x274] ss:$24 sps:$4 sm:$0xff]  }
 0x2cb   : > { %1782 = vmatpush1.bf16.msra.mxu1 %v6106_v2  ;;  %v6148_v30 = vld [vmem:[%s7542_s25 + $0x278] ss:$24 sps:$4 sm:$0xff]   ;;  %v6152_v31 = vld [vmem:[%s7542_s25 + $0x24c] ss:$24 sps:$4 sm:$0xff]   ;;  %v6154_v33 = vld [vmem:[%s7542_s25 + $0x248] ss:$24 sps:$4 sm:$0xff]  }
 0x2cc   : > { %1783 = vmatprep.subr.bf16.mxu1 %v6110_v3  ;;  %1739 = vmatpush1.bf16.msra.mxu0 %v6109_v4  ;;  %v6151_v32 = vld [vmem:[%s7542_s25 + $0x270] ss:$24 sps:$4 sm:$0xff]   ;;  %v6155_v34 = vld [vmem:[%s7542_s25 + $0x244] ss:$24 sps:$4 sm:$0xff]   ;;  %v6157_v36 = vld [vmem:[%s7542_s25 + $0x240] ss:$24 sps:$4 sm:$0xff]  }
 0x2cd   : > { %1740 = vmatprep.subr.bf16.mxu0 %v6113_v5  ;;  %v1119_v35 = vld [vmem:[#allocation2] sm:$0xff]  ;;  %v6158_v37 = vld [vmem:[%s7542_s25 + $0x21c] ss:$24 sps:$4 sm:$0xff]   ;;  %v6169_v47 = vld [vmem:[%s7542_s25 + $0x1e0] ss:$24 sps:$4 sm:$0xff]   ;;  %v7063_v58 = vmov 0.0  }
 0x2ce   : > { %v1121_v38 = vld [vmem:[#allocation2 + $0x8] sm:$0xff]  ;;  %v6164_v42 = vld [vmem:[%s7542_s25 + $0x1ec] ss:$24 sps:$4 sm:$0xff]   ;;  %v6166_v45 = vld [vmem:[%s7542_s25 + $0x1e8] ss:$24 sps:$4 sm:$0xff]   ;;  %vm7064_vm0 = vmmov 0  }
 0x2cf   : > { %1784 = vmatpush1.bf16.msra.mxu1 %v6112_v6  ;;  %v6161_v39 = vld [vmem:[%s7542_s25 + $0x214] ss:$24 sps:$4 sm:$0xff]   ;;  %v1220_v40 = vpack.c.bf16 %v1121_v38, %v1119_v35  ;;  %v6160_v41 = vld [vmem:[%s7542_s25 + $0x218] ss:$24 sps:$4 sm:$0xff]   ;;  %v6167_v44 = vld [vmem:[%s7542_s25 + $0x1e4] ss:$24 sps:$4 sm:$0xff]  }
 0x2d0   : > { %1785 = vmatprep.subr.bf16.mxu1 %v6116_v7  ;;  %1741 = vmatpush1.bf16.msra.mxu0 %v6115_v8  ;;  %v6163_v43 = vld [vmem:[%s7542_s25 + $0x210] ss:$24 sps:$4 sm:$0xff]   ;;  %v6170_v46 = vld [vmem:[%s7542_s25 + $0x1bc] ss:$24 sps:$4 sm:$0xff]   ;;  %v6176_v50 = vld [vmem:[%s7542_s25 + $0x18c] ss:$24 sps:$4 sm:$0xff]  }
 0x2d1   : > { %1742 = vmatprep.subr.bf16.mxu0 %v6119_v9  ;;  %1807 = vmatprep.mubr.bf16.mxu1 %v1220_v40  ;;  %v6173_v48 = vld [vmem:[%s7542_s25 + $0x1b4] ss:$24 sps:$4 sm:$0xff]   ;;  %v6172_v49 = vld [vmem:[%s7542_s25 + $0x1b8] ss:$24 sps:$4 sm:$0xff]   ;;  %v6179_v52 = vld [vmem:[%s7542_s25 + $0x184] ss:$24 sps:$4 sm:$0xff]  }
 0x2d2   : > { %1764 = vmatprep.mubr.bf16.mxu0 %v1220_v40  ;;  %v6175_v51 = vld [vmem:[%s7542_s25 + $0x1b0] ss:$24 sps:$4 sm:$0xff]   ;;  %v7648_v54 = vld [vmem:[#allocation2 + $0x10] sm:$0xff]  ;;  %v7659_v60 = vshrl.u32 %v1222_v59, 7  ;;  %v6217_v38 = vld [vmem:[%s7542_s25 + $0x254] ss:$24 sps:$4 sm:$0xff]  }
 0x2d3   : > { %1786 = vmatpush1.bf16.msra.mxu1 %v6118_v10  ;;  %v6178_v53 = vld [vmem:[%s7542_s25 + $0x188] ss:$24 sps:$4 sm:$0xff]   ;;  %vm1963_vm1 = vcmask 64512   ;;  %vm1993_vm2 = vcmask 1043456   ;;  %s8453_s20 = scalar_lea.vmem [#allocation18], %s7548_s6 }
 0x2d4   : > { %1787 = vmatprep.subr.bf16.mxu1 %v6122_v11  ;;  %1743 = vmatpush1.bf16.msra.mxu0 %v6121_v12  ;;  %v1120_v55 = vld [vmem:[#allocation2 + $0x18] sm:$0xff]  ;;  %v1232_v61 = vsub.s32 2, %v7659_v60  ;;  %v7666_v63 = vsub.s32 0, %v7659_v60 }
 0x2d5   : > { %1744 = vmatprep.subr.bf16.mxu0 %v6125_v13  ;;  %v6181_v56 = vld [vmem:[%s7542_s25 + $0x180] ss:$24 sps:$4 sm:$0xff]   ;;  %v7652_v57 = vpack.c.bf16 %v1120_v55, %v7648_v54  ;;  %v6209_v35 = vld [vmem:[%s7542_s25 + $0x2b0] ss:$24 sps:$4 sm:$0xff]  }
 0x2d6   : > { %v7663_v62 = vld [vmem:[%s7550_s2] sm:$0x3f] }
 0x2d7   : > { %1788 = vmatpush1.bf16.msra.mxu1 %v6124_v14  ;;  %v1233_v0 = vrot.slane %v7663_v62, %v1232_v61  ;;  %v1225_v2 = vrot.slane %v7663_v62, %v7666_v63 }
 0x2d8   : > { %1789 = vmatprep.subr.bf16.mxu1 %v6128_v15  ;;  %1745 = vmatpush1.bf16.msra.mxu0 %v6127_v16  ;;  %v6182_v16 = vld [vmem:[%s7542_s25 + $0x160] ss:$24 sps:$4 sm:$0xff]  }
 0x2d9   : > { %1746 = vmatprep.subr.bf16.mxu0 %v6131_v17  ;;  %v6184_v17 = vld [vmem:[%s7542_s25 + $0x164] ss:$24 sps:$4 sm:$0xff]  }
 0x2db   : > { %1790 = vmatpush1.bf16.msra.mxu1 %v6130_v18  ;;  %v6187_v18 = vld [vmem:[%s7542_s25 + $0x134] ss:$24 sps:$4 sm:$0xff]  }
 0x2dc   : > { %1791 = vmatprep.subr.bf16.mxu1 %v6134_v19  ;;  %1747 = vmatpush1.bf16.msra.mxu0 %v6133_v20  ;;  %v6185_v19 = vld [vmem:[%s7542_s25 + $0x130] ss:$24 sps:$4 sm:$0xff]   ;;  %v6190_v20 = vld [vmem:[%s7542_s25 + $0x104] ss:$24 sps:$4 sm:$0xff]  }
 0x2dd   : > { %1748 = vmatprep.subr.bf16.mxu0 %v6137_v21  ;;  %v6188_v21 = vld [vmem:[%s7542_s25 + $0x100] ss:$24 sps:$4 sm:$0xff]  }
 0x2df   : > { %1792 = vmatpush2.bf16.msra.mxu1 %v6136_v22  ;;  %v6193_v22 = vld [vmem:[%s7542_s25 + $0xd4] ss:$24 sps:$4 sm:$0xff]  }
 0x2e0   : > { %1793 = vmatprep.subr.bf16.mxu1 %v6140_v23  ;;  %1749 = vmatpush2.bf16.msra.mxu0 %v6139_v24  ;;  %v6191_v23 = vld [vmem:[%s7542_s25 + $0xd0] ss:$24 sps:$4 sm:$0xff]   ;;  %v6196_v24 = vld [vmem:[%s7542_s25 + $0xa4] ss:$24 sps:$4 sm:$0xff]  }
 0x2e1   : > { %1750 = vmatprep.subr.bf16.mxu0 %v6143_v25  ;;  %v6194_v25 = vld [vmem:[%s7542_s25 + $0xa0] ss:$24 sps:$4 sm:$0xff]  }
 0x2e3   : > { %1794 = vmatpush2.bf16.msra.mxu1 %v6142_v26  ;;  %v6199_v26 = vld [vmem:[%s7542_s25 + $0x74] ss:$24 sps:$4 sm:$0xff]  }
 0x2e4   : > { %1795 = vmatprep.subr.bf16.mxu1 %v6146_v27  ;;  %1751 = vmatpush2.bf16.msra.mxu0 %v6145_v28  ;;  %v6197_v27 = vld [vmem:[%s7542_s25 + $0x70] ss:$24 sps:$4 sm:$0xff]   ;;  %v6202_v28 = vld [vmem:[%s7542_s25 + $0x44] ss:$24 sps:$4 sm:$0xff]  }
 0x2e5   : > { %1752 = vmatprep.subr.bf16.mxu0 %v6149_v29  ;;  %v6200_v29 = vld [vmem:[%s7542_s25 + $0x40] ss:$24 sps:$4 sm:$0xff]  }
 0x2e7   : > { %1796 = vmatpush2.bf16.msra.mxu1 %v6148_v30  ;;  %v6205_v30 = vld [vmem:[%s7542_s25 + $0x14] ss:$24 sps:$4 sm:$0xff]  }
 0x2e8   : > { %1797 = vmatprep.subr.bf16.mxu1 %v6152_v31  ;;  %1753 = vmatpush2.bf16.msra.mxu0 %v6151_v32  ;;  %v6203_v31 = vld [vmem:[%s7542_s25 + $0x10] ss:$24 sps:$4 sm:$0xff]   ;;  %v6208_v32 = vld [vmem:[%s7542_s25 + $0x2e4] ss:$24 sps:$4 sm:$0xff]  }
 0x2e9   : > { %1754 = vmatprep.subr.bf16.mxu0 %v6155_v34  ;;  %v6211_v34 = vld [vmem:[%s7542_s25 + $0x2b4] ss:$24 sps:$4 sm:$0xff]  }
 0x2eb   : > { %1798 = vmatpush2.bf16.msra.mxu1 %v6154_v33  ;;  %v6206_v33 = vld [vmem:[%s7542_s25 + $0x2e0] ss:$24 sps:$4 sm:$0xff]  }
 0x2ec   : > { %1799 = vmatprep.subr.bf16.mxu1 %v6158_v37  ;;  %1755 = vmatpush2.bf16.msra.mxu0 %v6157_v36  ;;  %v6214_v36 = vld [vmem:[%s7542_s25 + $0x284] ss:$24 sps:$4 sm:$0xff]   ;;  %v6212_v37 = vld [vmem:[%s7542_s25 + $0x280] ss:$24 sps:$4 sm:$0xff]  }
 0x2ed   : > { %1756 = vmatprep.subr.bf16.mxu0 %v6161_v39  ;;  %v6215_v39 = vld [vmem:[%s7542_s25 + $0x250] ss:$24 sps:$4 sm:$0xff]  }
 0x2ef   : > { %1800 = vmatpush2.bf16.msra.mxu1 %v6160_v41  ;;  %v6218_v41 = vld [vmem:[%s7542_s25 + $0x220] ss:$24 sps:$4 sm:$0xff]  }
 0x2f0   : > { %1801 = vmatprep.subr.bf16.mxu1 %v6164_v42  ;;  %1757 = vmatpush2.bf16.msra.mxu0 %v6163_v43  ;;  %v6223_v42 = vld [vmem:[%s7542_s25 + $0x1f4] ss:$24 sps:$4 sm:$0xff]   ;;  %v6221_v43 = vld [vmem:[%s7542_s25 + $0x1f0] ss:$24 sps:$4 sm:$0xff]  }
 0x2f1   : > { %1758 = vmatprep.subr.bf16.mxu0 %v6167_v44  ;;  %v6226_v44 = vld [vmem:[%s7542_s25 + $0x1c4] ss:$24 sps:$4 sm:$0xff]  }
 0x2f3   : > { %1802 = vmatpush2.bf16.msra.mxu1 %v6166_v45  ;;  %v6224_v45 = vld [vmem:[%s7542_s25 + $0x1c0] ss:$24 sps:$4 sm:$0xff]  }
 0x2f4   : > { %1803 = vmatprep.subr.bf16.mxu1 %v6170_v46  ;;  %1759 = vmatpush2.bf16.msra.mxu0 %v6169_v47  ;;  %v6229_v46 = vld [vmem:[%s7542_s25 + $0x194] ss:$24 sps:$4 sm:$0xff]   ;;  %v6227_v47 = vld [vmem:[%s7542_s25 + $0x190] ss:$24 sps:$4 sm:$0xff]  }
 0x2f5   : > { %1760 = vmatprep.subr.bf16.mxu0 %v6173_v48 }
 0x2f7   : > { %1804 = vmatpush2.bf16.msra.mxu1 %v6172_v49 }
 0x2f8   : > { %1805 = vmatprep.subr.bf16.mxu1 %v6176_v50  ;;  %1761 = vmatpush2.bf16.msra.mxu0 %v6175_v51  ;;  %v7718_v50 = vld [vmem:[#allocation6] ss:$0 sm:$0xff] }
 0x2f9   : > { %1762 = vmatprep.subr.bf16.mxu0 %v6179_v52 }
 0x2fb   : > { %1806 = vmatpush2.bf16.msra.mxu1 %v6178_v53 }
 0x2fc   : > { %1763 = vmatpush2.bf16.msra.mxu0 %v6181_v56  ;;  %5869 = vmatprep.subr.bf16.mxu1 %v7063_v58 }
 0x2fd   : > { %1818 = vmatprep.subr.bf16.mxu0 %v6184_v17 }
 0x2fe   : > { %1808 = vmatmul.mubr.bf16.vlgmr.msra.gmra.mxu1 %v7652_v57 }
 0x2ff   : > { %1765 = vmatmul.mubr.bf16.vlgmr.msra.gmra.mxu0 %v7652_v57  ;;  %5871 = vmatprep.mubr.msk.bf16.mxu1 %vm7064_vm0, %v7063_v58 }
 0x300   : > { %1850 = vmatprep.mubr.bf16.mxu0 %v1220_v40  ;;  %1819 = vmatpush1.bf16.msra.mxu0 %v6182_v16  ;;  %v6220_v40 = vld [vmem:[%s7542_s25 + $0x224] ss:$24 sps:$4 sm:$0xff]   ;;  %s8454_s25 = scalar_lea.vmem [#allocation19], %s7548_s6  ;;  %s8455_s6 = sld [smem:[#allocation33_spill]] }
 0x301   : > { %1820 = vmatprep.subr.bf16.mxu0 %v6187_v18 }
 0x304   : > { %1821 = vmatpush1.bf16.msra.mxu0 %v6185_v19 }
 0x305   : > { %1822 = vmatprep.subr.bf16.mxu0 %v6190_v20 }
 0x306   : > { %p5800_p3 = scmp.ne.s32.totalorder %s8455_s6, 1 }
 0x308   : > { %1823 = vmatpush1.bf16.msra.mxu0 %v6188_v21 }
 0x309   : > { %1824 = vmatprep.subr.bf16.mxu0 %v6193_v22 }
 0x30c   : > { %1825 = vmatpush1.bf16.msra.mxu0 %v6191_v23 }
 0x30d   : > { %1826 = vmatprep.subr.bf16.mxu0 %v6196_v24 }
 0x310   : > { %1827 = vmatpush1.bf16.msra.mxu0 %v6194_v25 }
 0x311   : > { %1828 = vmatprep.subr.bf16.mxu0 %v6199_v26  ;;  %v1244_v26 = vsub.s32 5, %v7659_v60 }
 0x314   : > { %1829 = vmatpush1.bf16.msra.mxu0 %v6197_v27 }
 0x315   : > { %1830 = vmatprep.subr.bf16.mxu0 %v6202_v28  ;;  %v1245_v28 = vrot.slane %v7663_v62, %v1244_v26 }
 0x318   : > { %1831 = vmatpush1.bf16.msra.mxu0 %v6200_v29 }
 0x319   : > { %1832 = vmatprep.subr.bf16.mxu0 %v6205_v30 }
 0x31c   : > { %1833 = vmatpush1.bf16.msra.mxu0 %v6203_v31 }
 0x31d   : > { %1834 = vmatprep.subr.bf16.mxu0 %v6208_v32 }
 0x320   : > { %1835 = vmatpush2.bf16.msra.mxu0 %v6206_v33 }
 0x321   : > { %1836 = vmatprep.subr.bf16.mxu0 %v6211_v34 }
 0x324   : > { %1837 = vmatpush2.bf16.msra.mxu0 %v6209_v35 }
 0x325   : > { %1838 = vmatprep.subr.bf16.mxu0 %v6214_v36 }
 0x328   : > { %1839 = vmatpush2.bf16.msra.mxu0 %v6212_v37 }
 0x329   : > { %1840 = vmatprep.subr.bf16.mxu0 %v6217_v38 }
 0x32c   : > { %1841 = vmatpush2.bf16.msra.mxu0 %v6215_v39 }
 0x32d   : > { %1842 = vmatprep.subr.bf16.mxu0 %v6220_v40  ;;  %v1236_v40 = vsub.s32 3, %v7659_v60 }
 0x330   : > { %1843 = vmatpush2.bf16.msra.mxu0 %v6218_v41 }
 0x331   : > { %1844 = vmatprep.subr.bf16.mxu0 %v6223_v42 }
 0x334   : > { %1845 = vmatpush2.bf16.msra.mxu0 %v6221_v43  ;;  %v1237_v43 = vrot.slane %v7663_v62, %v1236_v40 }
 0x335   : > { %1846 = vmatprep.subr.bf16.mxu0 %v6226_v44  ;;  %v7752_v44 = vsub.s32 1, %v7659_v60 }
 0x338   : > { %1847 = vmatpush2.bf16.msra.mxu0 %v6224_v45 }
 0x339   : > { %1848 = vmatprep.subr.bf16.mxu0 %v6229_v46 }
 0x33c   : > { %1849 = vmatpush2.bf16.msra.mxu0 %v6227_v47 }
 0x33f   : > { %1851 = vmatmul.mubr.bf16.vlgmr.msra.gmra.mxu0 %v7652_v57 }
 0x3be   : > { %v1809_v1 = vpop.f32.mrf.mxu1 }
 0x3bf   : > { %v1810_v3 = vadd.f32 %v1809_v1, %v1233_v0  ;;  %v1766_v6 = vpop.f32.mrf.mxu0  ;;  %v7722_v1 = vld [vmem:[#allocation6 + $0x1] ss:$0 sm:$0xff] }
 0x3c0   : > { %v7673_v4 = vpop.f32.mrf.mxu1  ;;  %v1767_v7 = vadd.f32 %v1766_v6, %v1225_v2 }
 0x3c1   : > { %v1865_v5 = vpack.c.bf16 %v1810_v3, %v1810_v3  ;;  %v7676_v11 = vpop.f32.mrf.mxu0  ;;  %v1812_v46 = vadd.f32 %v7673_v4, %v1237_v43 }
 0x3c2   : > { %v1813_v8 = vpop.f32.mrf.mxu1  ;;  %v1863_v10 = vpack.c.bf16 %v1767_v7, %v1767_v7 }
 0x3c3   : > { %5870 = vmatpush3.bf16.xpose.msra.mxu1 %v1865_v5  ;;  %v1814_v9 = vadd.f32 %v1813_v8, %v1233_v0  ;;  %v1770_v13 = vpop.f32.mrf.mxu0  ;;  %v1240_v8 = vsub.s32 4, %v7659_v60 }
 0x3c4   : > { %5875 = vmatprep.subr.bf16.mxu1 %v7063_v58  ;;  %v1771_v14 = vadd.f32 %v1770_v13, %v1225_v2  ;;  %v7716_v48 = vpop.f32.mrf.mxu1 }
 0x3c5   : > { %v1866_v12 = vpack.c.bf16 %v1814_v9, %v1814_v9  ;;  %v1241_v9 = vrot.slane %v7663_v62, %v1240_v8 }
 0x3c6   : > { %v1864_v15 = vpack.c.bf16 %v1771_v14, %v1771_v14 }
 0x3ca   : > { %5872 = vmatmul.mubr.bf16.vlgmr.msra.gmra.mxu1 %v1863_v10  ;;  %v7730_v10 = vpop.f32.mrf.mxu0 }
 0x3cb   : > { %5876 = vmatpush3.bf16.xpose.msra.mxu1 %v1866_v12  ;;  %5877 = vmatprep.mubr.msk.bf16.mxu1 %vm7064_vm0, %v7063_v58 }
 0x3cc   : > { %5881 = vmatprep.subr.bf16.mxu1 %v7063_v58 }
 0x3d2   : > { %5878 = vmatmul.mubr.bf16.vlgmr.msra.gmra.mxu1 %v1864_v15 }
 0x3d3   : > { %5883 = vmatprep.mubr.msk.bf16.mxu1 %vm7064_vm0, %v7063_v58 }
 0x3ff   : > { %v1852_v14 = vpop.f32.mrf.mxu0 }
 0x400   : > { %v1853_v15 = vadd.f32 %v1852_v14, %v1241_v9 }
 0x401   : > { %v1854_v27 = vpop.f32.mrf.mxu0 }
 0x402   : > { %v1988_v17 = vpack.c.bf16 %v1853_v15, %v1853_v15 }
 0x403   : > { %v1856_v29 = vpop.f32.mrf.mxu0 }
 0x404   : > { %v1995_v18 = vsel %vm1993_vm2, %v1988_v17, 0  ;;  %v1857_v30 = vadd.f32 %v1856_v29, %v1241_v9 }
 0x405   : > { %5882 = vmatpush3.bf16.msra.mxu1 %v1995_v18  ;;  %v1858_v31 = vpop.f32.mrf.mxu0 }
 0x406   : > { %5887 = vmatprep.subr.bf16.mxu1 %v7063_v58  ;;  %v1989_v32 = vpack.c.bf16 %v1857_v30, %v1857_v30  ;;  %v1859_v33 = vadd.f32 %v1858_v31, %v1245_v28 }
 0x408   : > { %v2041_v34 = vsel %vm1993_vm2, %v1989_v32, 0  ;;  %v2213_v35 = vpack.c.bf16 %v1859_v33, %v1859_v33 }
 0x40a   : > { %v7742_v36 = vsel %vm1993_vm2, %v2213_v35, 0 }
 0x48a   : > { %v1901_v49 = vpop.f32.mrf.mxu1 }
 0x48b   : > { %v1947_v51 = vmul.f32 0.088388346, %v1901_v49  ;;  %v1229_v49 = vrot.slane %v7663_v62, %v7752_v44 }
 0x48c   : > { %v5873_v52 = vpop.f32.mrf.mxu1 }
 0x48d   : > { %v1961_v53 = vadd.f32 %v7718_v50, %v1947_v51  ;;  %v2102_v52 = vpack.c.bf16 %v1812_v46, %v1812_v46  ;;  %v1773_v62 = vadd.f32 %v7730_v10, %v1229_v49  ;;  %v6265_v46 = vld [vmem:[%s7552_s22 + $0xc4] ss:$8 sps:$4 sm:$0xff]  }
 0x48e   : > { %v1904_v55 = vpop.f32.mrf.mxu1 }
 0x48f   : > { %v1964_v56 = vsel %vm1963_vm1, %v1961_v53, -inf  ;;  %v1816_v55 = vadd.f32 %v7716_v48, %v1237_v43  ;;  %v6262_v43 = vld [vmem:[%s7552_s22 + $0xd4] ss:$8 sps:$4 sm:$0xff]  }
 0x490   : > { %1965 = vmax.xlane.f32.xlu0 %v1964_v56  ;;  %v5874_v59 = vpop.f32.mrf.mxu1 }
 0x491   : > { %v2103_v4 = vpack.c.bf16 %v1816_v55, %v1816_v55  ;;  %v1855_v59 = vadd.f32 %v1854_v27, %v1245_v28 }
 0x492   : > { %v1941_v0 = vpop.f32.mrf.mxu1 }
 0x493   : > { %v1948_v2 = vmul.f32 0.088388346, %v1941_v0  ;;  %v2212_v0 = vpack.c.bf16 %v1855_v59, %v1855_v59 }
 0x494   : > { %v5879_v57 = vpop.f32.mrf.mxu1 }
 0x495   : > { %v1962_v3 = vadd.f32 %v7722_v1, %v1948_v2  ;;  %v2101_v2 = vpack.c.bf16 %v1773_v62, %v1773_v62 }
 0x496   : > { %v1944_v5 = vpop.f32.mrf.mxu1 }
 0x497   : > { %v1967_v6 = vsel %vm1963_vm1, %v1962_v3, -inf }
 0x498   : > { %1968 = vmax.xlane.f32.xlu0 %v1967_v6  ;;  %v5880_v7 = vpop.f32.mrf.mxu1 }
 0x519   : > { %v1966_v12 = vpop.xlane.xlu0 %1965 }
 0x51a   : > { %v1970_v13 = vsub.f32 %v1961_v53, %v1966_v12  ;;  %v1769_v53 = vadd.f32 %v7676_v11, %v1229_v49  ;;  %v2218_v11 = vsel %vm1993_vm2, %v2212_v0, 0  ;;  %v6268_v49 = vld [vmem:[%s7552_s22 + $0xb4] ss:$8 sps:$4 sm:$0xff]  }
 0x51b   : > { %v6232_v0 = vld [vmem:[%s7552_s22 + $0x74] ss:$8 sps:$4 sm:$0xff]  }
 0x51c   : > { %v1972_v16 = vmul.f32 1.442695, %v1970_v13  ;;  %v2100_v56 = vpack.c.bf16 %v1769_v53, %v1769_v53  ;;  %v6269_v53 = vld [vmem:[%s7552_s22 + $0xa0] ss:$8 sps:$4 sm:$0xff]  }
 0x51e   : > { %6470 = vpow2.f32 %v1972_v16 }
 0x521   : > { %v1969_v19 = vpop.xlane.xlu0 %1968 }
 0x522   : > { %v1971_v20 = vsub.f32 %v1962_v3, %v1969_v19 }
 0x524   : > { %v1974_v21 = vmul.f32 1.442695, %v1971_v20 }
 0x526   : > { %6472 = vpow2.f32 %v1974_v21 }
 0x52b   : > { %v6471_v22 = vpop.eup %6470 }
 0x52c   : > { %v1976_v23 = vsel %vm1963_vm1, %v6471_v22, 0.0 }
 0x52d   : > { %1977 = vadd.xlane.f32.xlu1 %v1976_v23 }
 0x533   : > { %v6473_v24 = vpop.eup %6472 }
 0x534   : > { %v1979_v25 = vsel %vm1963_vm1, %v6473_v24, 0.0 }
 0x535   : > { %1980 = vadd.xlane.f32.xlu1 %v1979_v25 }
 0x5b6   : > { %v1978_v37 = vpop.xlane.xlu1 %1977 }
 0x5b7   : > { %6474 = vrcp.f32 %v1978_v37  ;;  %v7065_v37 = vmov 0  }
 0x5b8   : > { %2435 = vmatprep.mubr.bf16.mxu0 %v7065_v37 }
 0x5be   : > { %v1981_v38 = vpop.xlane.xlu1 %1980 }
 0x5bf   : > { %6476 = vrcp.f32 %v1981_v38  ;;  %v6254_v38 = vld [vmem:[%s7552_s22 + $0xf0] ss:$8 sps:$4 sm:$0xff]  }
 0x5c4   : > { %v6475_v39 = vpop.eup %6474 }
 0x5c5   : > { %v1983_v41 = vmul.f32 %v6475_v39, %v6471_v22  ;;  %v6256_v39 = vld [vmem:[%s7552_s22 + $0xf4] ss:$8 sps:$4 sm:$0xff]  }
 0x5c6   : > { %2403 = vmatprep.subr.bf16.mxu0 %v6256_v39 }
 0x5c7   : > { %v1986_v42 = vpack.c.bf16 %v1983_v41, %v1983_v41  ;;  %v6259_v41 = vld [vmem:[%s7552_s22 + $0xe4] ss:$8 sps:$4 sm:$0xff]   ;;  %2404 = vmatpush1.bf16.msra.mxu0 %v6254_v38 }
 0x5c8   : > { %2405 = vmatprep.subr.bf16.mxu0 %v6259_v41 }
 0x5c9   : > { %5884 = vmatmul.mubr.msk.bf16.vlgmr.msra.gmra.mxu1 %vm1963_vm1, %v1986_v42  ;;  %v6257_v42 = vld [vmem:[%s7552_s22 + $0xe0] ss:$8 sps:$4 sm:$0xff]  }
 0x5ca   : > { %5888 = vmatpush3.bf16.msra.mxu1 %v2041_v34  ;;  %5889 = vmatprep.mubr.msk.bf16.mxu1 %vm7064_vm0, %v7063_v58 }
 0x5cb   : > { %5893 = vmatprep.subr.bf16.mxu1 %v7063_v58  ;;  %2406 = vmatpush1.bf16.msra.mxu0 %v6257_v42 }
 0x5cc   : > { %v6477_v45 = vpop.eup %6476  ;;  %2407 = vmatprep.subr.bf16.mxu0 %v6262_v43 }
 0x5cd   : > { %v1985_v47 = vmul.f32 %v6477_v45, %v6473_v24  ;;  %v6260_v45 = vld [vmem:[%s7552_s22 + $0xd0] ss:$8 sps:$4 sm:$0xff]  }
 0x5cf   : > { %v1987_v51 = vpack.c.bf16 %v1985_v47, %v1985_v47  ;;  %2408 = vmatpush1.bf16.msra.mxu0 %v6260_v45  ;;  %v6263_v47 = vld [vmem:[%s7552_s22 + $0xc0] ss:$8 sps:$4 sm:$0xff]  }
 0x5d0   : > { %2409 = vmatprep.subr.bf16.mxu0 %v6265_v46 }
 0x5d1   : > { %5890 = vmatmul.mubr.msk.bf16.vlgmr.msra.gmra.mxu1 %vm1963_vm1, %v1987_v51  ;;  %v6266_v51 = vld [vmem:[%s7552_s22 + $0xb0] ss:$8 sps:$4 sm:$0xff]  }
 0x5d2   : > { %5894 = vmatpush3.bf16.xpose.msra.mxu1 %v2102_v52  ;;  %5895 = vmatprep.mubr.msk.bf16.mxu1 %vm7064_vm0, %v7063_v58  ;;  %v6271_v52 = vld [vmem:[%s7552_s22 + $0xa4] ss:$8 sps:$4 sm:$0xff]  }
 0x5d3   : > { %5899 = vmatprep.subr.bf16.mxu1 %v7063_v58  ;;  %2410 = vmatpush1.bf16.msra.mxu0 %v6263_v47 }
 0x5d4   : > { %2411 = vmatprep.subr.bf16.mxu0 %v6268_v49 }
 0x5d7   : > { %2412 = vmatpush1.bf16.msra.mxu0 %v6266_v51 }
 0x5d8   : > { %2413 = vmatprep.subr.bf16.mxu0 %v6271_v52 }
 0x5d9   : > { %5896 = vmatmul.mubr.bf16.vlgmr.msra.gmra.mxu1 %v2100_v56 }
 0x5da   : > { %5900 = vmatpush3.bf16.xpose.msra.mxu1 %v2103_v4  ;;  %5901 = vmatprep.mubr.msk.bf16.mxu1 %vm7064_vm0, %v7063_v58 }
 0x5db   : > { %5905 = vmatprep.subr.bf16.mxu1 %v7063_v58  ;;  %2414 = vmatpush1.bf16.msra.mxu0 %v6269_v53 }
 0x5e1   : > { %5902 = vmatmul.mubr.bf16.vlgmr.msra.gmra.mxu1 %v2101_v2 }
 0x5e2   : > { %5906 = vmatpush3.bf16.msra.mxu1 %v2218_v11  ;;  %5907 = vmatprep.mubr.msk.bf16.mxu1 %vm7064_vm0, %v7063_v58 }
 0x5e3   : > { %5911 = vmatprep.subr.bf16.mxu1 %v7063_v58 }
 0x689   : > { %v7772_v48 = vpop.f32.mrf.mxu1 }
 0x68b   : > { %v5885_v57 = vpop.f32.mrf.mxu1 }
 0x68c   : > { %v6230_v57 = vld [vmem:[%s7552_s22 + $0x70] ss:$8 sps:$4 sm:$0xff]  }
 0x68d   : > { %v2034_v3 = vpop.f32.mrf.mxu1 }
 0x68f   : > { %v5886_v5 = vpop.f32.mrf.mxu1 }
 0x690   : > { %v6235_v5 = vld [vmem:[%s7552_s22 + $0x64] ss:$8 sps:$4 sm:$0xff]  }
 0x691   : > { %v7774_v6 = vpop.f32.mrf.mxu1 }
 0x692   : > { %v2083_v7 = vpack.c.bf16 %v7774_v6, %v7772_v48 }
 0x693   : > { %v5891_v9 = vpop.f32.mrf.mxu1 }
 0x694   : > { %v6233_v9 = vld [vmem:[%s7552_s22 + $0x60] ss:$8 sps:$4 sm:$0xff]  }
 0x695   : > { %v2080_v10 = vpop.f32.mrf.mxu1 }
 0x696   : > { %v6241_v10 = vld [vmem:[%s7552_s22 + $0x44] ss:$8 sps:$4 sm:$0xff]  }
 0x697   : > { %v5892_v12 = vpop.f32.mrf.mxu1 }
 0x698   : > { %v6239_v12 = vld [vmem:[%s7552_s22 + $0x40] ss:$8 sps:$4 sm:$0xff]  }
 0x699   : > { %v2138_v13 = vpop.f32.mrf.mxu1 }
 0x69a   : > { %v2184_v14 = vmul.f32 0.088388346, %v2138_v13  ;;  %v6244_v13 = vld [vmem:[%s7552_s22 + $0x34] ss:$8 sps:$4 sm:$0xff]  }
 0x69b   : > { %v5897_v15 = vpop.f32.mrf.mxu1 }
 0x69c   : > { %v2186_v16 = vadd.f32 %v7718_v50, %v2184_v14  ;;  %v6242_v14 = vld [vmem:[%s7552_s22 + $0x30] ss:$8 sps:$4 sm:$0xff]   ;;  %v6247_v15 = vld [vmem:[%s7552_s22 + $0x24] ss:$8 sps:$4 sm:$0xff]  }
 0x69d   : > { %v2141_v17 = vpop.f32.mrf.mxu1 }
 0x69e   : > { %v2188_v18 = vsel %vm1963_vm1, %v2186_v16, -inf  ;;  %v6250_v17 = vld [vmem:[%s7552_s22 + $0x14] ss:$8 sps:$4 sm:$0xff]  }
 0x69f   : > { %2189 = vmax.xlane.f32.xlu0 %v2188_v18  ;;  %v5898_v19 = vpop.f32.mrf.mxu1  ;;  %v6248_v18 = vld [vmem:[%s7552_s22 + $0x10] ss:$8 sps:$4 sm:$0xff]  }
 0x6a0   : > { %v6253_v19 = vld [vmem:[%s7552_s22 + $0x4] ss:$8 sps:$4 sm:$0xff]  }
 0x6a1   : > { %v2178_v20 = vpop.f32.mrf.mxu1 }
 0x6a2   : > { %v2185_v21 = vmul.f32 0.088388346, %v2178_v20  ;;  %v6251_v20 = vld [vmem:[%s7552_s22] ss:$8 sps:$4 sm:$0xff]  }
 0x6a3   : > { %v5903_v22 = vpop.f32.mrf.mxu1 }
 0x6a4   : > { %v2187_v23 = vadd.f32 %v7722_v1, %v2185_v21  ;;  %v6272_v21 = vld [vmem:[%s7552_s22 + $0x90] ss:$8 sps:$4 sm:$0xff]   ;;  %v6274_v22 = vld [vmem:[%s7552_s22 + $0x94] ss:$8 sps:$4 sm:$0xff]  }
 0x6a5   : > { %v2181_v24 = vpop.f32.mrf.mxu1  ;;  %2415 = vmatprep.subr.bf16.mxu0 %v6274_v22  ;;  %v2699_v22 = vld [vmem:[%s7556_s28 + $0x168] sm:$0xff] }
 0x6a6   : > { %v2191_v25 = vsel %vm1963_vm1, %v2187_v23, -inf  ;;  %2416 = vmatpush1.bf16.msra.mxu0 %v6272_v21  ;;  %v6277_v24 = vld [vmem:[%s7552_s22 + $0x84] ss:$8 sps:$4 sm:$0xff]   ;;  %v2695_v21 = vld [vmem:[%s7556_s28 + $0x148] sm:$0xff] }
 0x6a7   : > { %2192 = vmax.xlane.f32.xlu1 %v2191_v25  ;;  %v5904_v27 = vpop.f32.mrf.mxu1  ;;  %2417 = vmatprep.subr.bf16.mxu0 %v6277_v24 }
 0x728   : > { %v2190_v28 = vpop.xlane.xlu0 %2189 }
 0x729   : > { %v2194_v29 = vsub.f32 %v2186_v16, %v2190_v28  ;;  %v6245_v16 = vld [vmem:[%s7552_s22 + $0x20] ss:$8 sps:$4 sm:$0xff]  }
 0x72b   : > { %v2196_v50 = vmul.f32 1.442695, %v2194_v29 }
 0x72d   : > { %6478 = vpow2.f32 %v2196_v50 }
 0x730   : > { %v2193_v30 = vpop.xlane.xlu1 %2192 }
 0x731   : > { %v2195_v31 = vsub.f32 %v2187_v23, %v2193_v30  ;;  %v6275_v23 = vld [vmem:[%s7552_s22 + $0x80] ss:$8 sps:$4 sm:$0xff]  }
 0x732   : > { %2418 = vmatpush1.bf16.msra.mxu0 %v6275_v23 }
 0x733   : > { %v2198_v32 = vmul.f32 1.442695, %v2195_v31 }
 0x735   : > { %6480 = vpow2.f32 %v2198_v32 }
 0x73a   : > { %v6479_v33 = vpop.eup %6478 }
 0x73b   : > { %v2200_v1 = vsel %vm1963_vm1, %v6479_v33, 0.0 }
 0x73c   : > { %2201 = vadd.xlane.f32.xlu0 %v2200_v1 }
 0x742   : > { %v6481_v34 = vpop.eup %6480 }
 0x743   : > { %v2203_v35 = vsel %vm1963_vm1, %v6481_v34, 0.0 }
 0x744   : > { %2204 = vadd.xlane.f32.xlu1 %v2203_v35 }
 0x7c5   : > { %v2202_v55 = vpop.xlane.xlu0 %2201 }
 0x7c6   : > { %6482 = vrcp.f32 %v2202_v55  ;;  %v6526_v55 = vld [vmem:[#allocation2] sm:$0xff] }
 0x7cd   : > { %v2205_v56 = vpop.xlane.xlu1 %2204 }
 0x7ce   : > { %6484 = vrcp.f32 %v2205_v56 }
 0x7d3   : > { %v6483_v4 = vpop.eup %6482 }
 0x7d4   : > { %v2207_v59 = vmul.f32 %v6483_v4, %v6479_v33 }
 0x7d6   : > { %v2210_v62 = vpack.c.bf16 %v2207_v59, %v2207_v59 }
 0x7d8   : > { %5908 = vmatmul.mubr.msk.bf16.vlgmr.msra.gmra.mxu1 %vm1963_vm1, %v2210_v62  ;;  %v6527_v62 = vld [vmem:[#allocation2 + $0x18] sm:$0xff] }
 0x7d9   : > { %5912 = vmatpush3.bf16.msra.mxu1 %v7742_v36  ;;  %5913 = vmatprep.mubr.msk.bf16.mxu1 %vm7064_vm0, %v7063_v58  ;;  %v6238_v36 = vld [vmem:[%s7552_s22 + $0x54] ss:$8 sps:$4 sm:$0xff]   ;;  %v6236_v58 = vld [vmem:[%s7552_s22 + $0x50] ss:$8 sps:$4 sm:$0xff]  }
 0x7da   : > { %2526 = vmatprep.subr.bf16.mxu1 %v6232_v0 }
 0x7db   : > { %v6485_v2 = vpop.eup %6484 }
 0x7dc   : > { %v2209_v11 = vmul.f32 %v6485_v2, %v6481_v34  ;;  %v6528_v2 = vld [vmem:[#allocation2 + $0x8] sm:$0xff] }
 0x7de   : > { %v2211_v3 = vpack.c.bf16 %v2209_v11, %v2209_v11 }
 0x7e0   : > { %5914 = vmatmul.mubr.msk.bf16.vlgmr.msra.gmra.mxu1 %vm1963_vm1, %v2211_v3  ;;  %v2714_v3 = vld [vmem:[%s7556_s28 + $0x1e0] sm:$0xff] }
 0x7e1   : > { %2527 = vmatpush1.bf16.msra.mxu1 %v6230_v57  ;;  %2558 = vmatprep.mubr.bf16.mxu1 %v7065_v37  ;;  %v2710_v57 = vld [vmem:[%s7556_s28 + $0x1c0] sm:$0xff] }
 0x7e2   : > { %2528 = vmatprep.subr.bf16.mxu1 %v6235_v5  ;;  %v2711_v5 = vld [vmem:[%s7556_s28 + $0x1c8] sm:$0xff] }
 0x7e5   : > { %2529 = vmatpush1.bf16.msra.mxu1 %v6233_v9  ;;  %v5600_v9 = vcombine.low %v2710_v57, %v2714_v3 }
 0x7e6   : > { %2530 = vmatprep.subr.bf16.mxu1 %v6238_v36  ;;  %v5601_v36 = vcombine.high %v2710_v57, %v2714_v3  ;;  %v2654_v3 = vld [vmem:[%s7556_s28] sm:$0xff] }
 0x7e8   : > { %3466 = vmatprep.subr.bf16.mxu0 %v5601_v36  ;;  %v2659_v36 = vld [vmem:[%s7556_s28 + $0x28] sm:$0xff] }
 0x7e9   : > { %2531 = vmatpush1.bf16.msra.mxu1 %v6236_v58  ;;  %v2715_v58 = vld [vmem:[%s7556_s28 + $0x1e8] sm:$0xff] }
 0x7ea   : > { %2532 = vmatprep.subr.bf16.mxu1 %v6241_v10  ;;  %v2702_v10 = vld [vmem:[%s7556_s28 + $0x180] sm:$0xff] }
 0x7ed   : > { %2533 = vmatpush1.bf16.msra.mxu1 %v6239_v12  ;;  %v2706_v12 = vld [vmem:[%s7556_s28 + $0x1a0] sm:$0xff] }
 0x7ee   : > { %2534 = vmatprep.subr.bf16.mxu1 %v6244_v13  ;;  %v5602_v13 = vcombine.low %v2711_v5, %v2715_v58  ;;  %v5592_v23 = vcombine.low %v2702_v10, %v2706_v12 }
 0x7f1   : > { %2535 = vmatpush1.bf16.msra.mxu1 %v6242_v14  ;;  %v5603_v14 = vcombine.high %v2711_v5, %v2715_v58  ;;  %v2658_v5 = vld [vmem:[%s7556_s28 + $0x20] sm:$0xff] }
 0x7f2   : > { %2536 = vmatprep.subr.bf16.mxu1 %v6247_v15  ;;  %v5593_v15 = vcombine.high %v2702_v10, %v2706_v12  ;;  %v5545_v12 = vcombine.high %v2654_v3, %v2658_v5 }
 0x7f5   : > { %2537 = vmatpush1.bf16.msra.mxu1 %v6245_v16  ;;  %v2703_v16 = vld [vmem:[%s7556_s28 + $0x188] sm:$0xff] }
 0x7f6   : > { %2538 = vmatprep.subr.bf16.mxu1 %v6250_v17  ;;  %v2707_v17 = vld [vmem:[%s7556_s28 + $0x1a8] sm:$0xff] }
 0x7f7   : > { %v5594_v24 = vcombine.low %v2703_v16, %v2707_v17 }
 0x7f9   : > { %2539 = vmatpush1.bf16.msra.mxu1 %v6248_v18  ;;  %v2694_v18 = vld [vmem:[%s7556_s28 + $0x140] sm:$0xff] }
 0x7fa   : > { %2540 = vmatprep.subr.bf16.mxu1 %v6253_v19  ;;  %v5595_v19 = vcombine.high %v2703_v16, %v2707_v17  ;;  %v2775_v16 = vld [vmem:[%s7556_s28 + $0x3c8] sm:$0xff] }
 0x7fb   : > { %v2779_v17 = vld [vmem:[%s7556_s28 + $0x3e8] sm:$0xff] }
 0x7fd   : > { %2541 = vmatpush1.bf16.msra.mxu1 %v6251_v20  ;;  %v2698_v20 = vld [vmem:[%s7556_s28 + $0x160] sm:$0xff] }
 0x7fe   : > { %3509 = vmatprep.subr.bf16.mxu1 %v5603_v14  ;;  %v2774_v14 = vld [vmem:[%s7556_s28 + $0x3c0] sm:$0xff] }
 0x800   : > { %2559 = vmatmul.mubr.bf16.vlgmr.msra.gmra.mxu1 %v2083_v7  ;;  %v2569_v7 = vld [vmem:[%s7571_s1] sm:$0x3] }
 0x801   : > { %v2574_v1 = vrot.slane %v2569_v7, %v7666_v63  ;;  %v2578_v37 = vrot.slane %v2569_v7, %v7752_v44  ;;  %3510 = vmatpush1.bf16.msra.mxu1 %v5602_v13  ;;  %v2678_v7 = vld [vmem:[%s7556_s28 + $0xc0] sm:$0xff] }
 0x802   : > { %3511 = vmatprep.subr.bf16.mxu1 %v5595_v19 }
 0x805   : > { %3512 = vmatpush1.bf16.msra.mxu1 %v5594_v24 }
 0x898   : > { %v2254_v25 = vpop.f32.mrf.mxu1 }
 0x89a   : > { %v5909_v27 = vpop.f32.mrf.mxu1 }
 0x89b   : > { %v5587_v27 = vcombine.high %v2695_v21, %v2699_v22 }
 0x89c   : > { %v2257_v28 = vpop.f32.mrf.mxu1 }
 0x89d   : > { %v2686_v28 = vld [vmem:[%s7556_s28 + $0x100] sm:$0xff]  ;;  %3513 = vmatprep.subr.bf16.mxu1 %v5587_v27 }
 0x89e   : > { %v5910_v29 = vpop.f32.mrf.mxu1 }
 0x89f   : > { %v2690_v29 = vld [vmem:[%s7556_s28 + $0x120] sm:$0xff] }
 0x8a0   : > { %v2300_v50 = vpop.f32.mrf.mxu1 }
 0x8a1   : > { %v2306_v30 = vpack.c.bf16 %v2300_v50, %v2254_v25  ;;  %v5585_v25 = vcombine.high %v2694_v18, %v2698_v20  ;;  %v2687_v50 = vld [vmem:[%s7556_s28 + $0x108] sm:$0xff] }
 0x8a2   : > { %v5915_v31 = vpop.f32.mrf.mxu1 }
 0x8a3   : > { %2436 = vmatmul.mubr.bf16.vlgmr.msra.gmra.mxu0 %v2306_v30  ;;  %v2691_v30 = vld [vmem:[%s7556_s28 + $0x128] sm:$0xff]  ;;  %v5584_v31 = vcombine.low %v2694_v18, %v2698_v20  ;;  %v5544_v18 = vcombine.low %v2654_v3, %v2658_v5 }
 0x8a4   : > { %v2303_v32 = vpop.f32.mrf.mxu1  ;;  %3467 = vmatpush1.bf16.msra.mxu0 %v5600_v9  ;;  %v2655_v9 = vld [vmem:[%s7556_s28 + $0x8] sm:$0xff] }
 0x8a5   : > { %3468 = vmatprep.subr.bf16.mxu0 %v5593_v15  ;;  %v5586_v32 = vcombine.low %v2695_v21, %v2699_v22  ;;  %v5547_v13 = vcombine.high %v2655_v9, %v2659_v36  ;;  %v2778_v15 = vld [vmem:[%s7556_s28 + $0x3e0] sm:$0xff]  ;;  %v5546_v19 = vcombine.low %v2655_v9, %v2659_v36  ;;  %v5667_v21 = vcombine.high %v2775_v16, %v2779_v17  ;;  %v2743_v9 = vld [vmem:[%s7556_s28 + $0x2c8] sm:$0xff] }
 0x8a6   : > { %v5916_v48 = vpop.f32.mrf.mxu1  ;;  %v5665_v20 = vcombine.high %v2774_v14, %v2778_v15  ;;  %v5664_v22 = vcombine.low %v2774_v14, %v2778_v15  ;;  %v2747_v36 = vld [vmem:[%s7556_s28 + $0x2e8] sm:$0xff] }
 0x8a7   : > { %v5577_v48 = vcombine.high %v2686_v28, %v2690_v29  ;;  %3514 = vmatpush1.bf16.msra.mxu1 %v5586_v32  ;;  %v2739_v14 = vld [vmem:[%s7556_s28 + $0x2a8] sm:$0xff] }
 0x8a8   : > { %3469 = vmatpush1.bf16.msra.mxu0 %v5592_v23  ;;  %v5666_v23 = vcombine.low %v2775_v16, %v2779_v17  ;;  %v5634_v16 = vcombine.low %v2743_v9, %v2747_v36 }
 0x8a9   : > { %3470 = vmatprep.subr.bf16.mxu0 %v5585_v25 }
 0x8ac   : > { %3471 = vmatpush1.bf16.msra.mxu0 %v5584_v31 }
 0x8ad   : > { %3472 = vmatprep.subr.bf16.mxu0 %v5577_v48 }
 0x8c0   : > { %v2560_v6 = vpop.f32.mrf.mxu1 }
 0x8c2   : > { %v2562_v33 = vpop.f32.mrf.mxu1 }
 0x8c4   : > { %v2564_v38 = vpop.f32.mrf.mxu1 }
 0x8c6   : > { %v2566_v47 = vpop.f32.mrf.mxu1 }
 0x963   : > { %v2437_v34 = vpop.f32.mrf.mxu0 }
 0x964   : > { %v2561_v35 = vadd.f32 %v2560_v6, %v2437_v34  ;;  %v5579_v6 = vcombine.high %v2687_v50, %v2691_v30  ;;  %v2683_v34 = vld [vmem:[%s7556_s28 + $0xe8] sm:$0xff] }
 0x965   : > { %v2439_v39 = vpop.f32.mrf.mxu0 }
 0x966   : > { %v2581_v41 = vadd.f32 %v2574_v1, %v2561_v35  ;;  %v2563_v42 = vadd.f32 %v2562_v33, %v2439_v39  ;;  %v2682_v33 = vld [vmem:[%s7556_s28 + $0xe0] sm:$0xff]  ;;  %v5576_v35 = vcombine.low %v2686_v28, %v2690_v29  ;;  %3515 = vmatprep.subr.bf16.mxu1 %v5579_v6 }
 0x967   : > { %v2441_v43 = vpop.f32.mrf.mxu0 }
 0x968   : > { %v2582_v45 = vadd.f32 %v2578_v37, %v2563_v42  ;;  %v2565_v46 = vadd.f32 %v2564_v38, %v2441_v43  ;;  %v7828_v53 = vadd.f32 %v2581_v41, %v7648_v54  ;;  %v5569_v38 = vcombine.high %v2678_v7, %v2682_v33  ;;  %v2670_v41 = vld [vmem:[%s7556_s28 + $0x80] sm:$0xff]  ;;  %v2671_v43 = vld [vmem:[%s7556_s28 + $0x88] sm:$0xff]  ;;  %3473 = vmatpush1.bf16.msra.mxu0 %v5576_v35 }
 0x969   : > { %v2443_v49 = vpop.f32.mrf.mxu0  ;;  %v2674_v42 = vld [vmem:[%s7556_s28 + $0xa0] sm:$0xff] }
 0x96a   : > { %v2583_v51 = vadd.f32 %v2574_v1, %v2565_v46  ;;  %v2567_v52 = vadd.f32 %v2566_v47, %v2443_v49  ;;  %v7830_v56 = vadd.f32 %v6526_v55, %v2582_v45  ;;  %v2679_v1 = vld [vmem:[%s7556_s28 + $0xc8] sm:$0xff]  ;;  %v5568_v46 = vcombine.low %v2678_v7, %v2682_v33  ;;  %3474 = vmatprep.subr.bf16.mxu0 %v5569_v38  ;;  %v2666_v55 = vld [vmem:[%s7556_s28 + $0x60] sm:$0xff] }
 0x96b   : > { %v5571_v39 = vcombine.high %v2679_v1, %v2683_v34  ;;  %v2675_v45 = vld [vmem:[%s7556_s28 + $0xa8] sm:$0xff]  ;;  %v5570_v47 = vcombine.low %v2679_v1, %v2683_v34  ;;  %v5561_v49 = vcombine.high %v2670_v41, %v2674_v42  ;;  %v2766_v33 = vld [vmem:[%s7556_s28 + $0x380] sm:$0xff] }
 0x96c   : > { %v2584_v4 = vadd.f32 %v2578_v37, %v2567_v52  ;;  %v2591_v59 = vadd.f32 %v7830_v56, %v7828_v53  ;;  %v7834_v0 = vadd.f32 %v6527_v62, %v2583_v51  ;;  %v5578_v37 = vcombine.low %v2687_v50, %v2691_v30  ;;  %v2662_v52 = vld [vmem:[%s7556_s28 + $0x40] sm:$0xff]  ;;  %3475 = vmatpush1.bf16.msra.mxu0 %v5568_v46  ;;  %v2767_v1 = vld [vmem:[%s7556_s28 + $0x388] sm:$0xff] }
 0x96d   : > { %v5563_v51 = vcombine.high %v2671_v43, %v2675_v45  ;;  %v5560_v62 = vcombine.low %v2670_v41, %v2674_v42  ;;  %3476 = vmatprep.subr.bf16.mxu0 %v5561_v49  ;;  %v5552_v58 = vcombine.low %v2662_v52, %v2666_v55  ;;  %v2762_v41 = vld [vmem:[%s7556_s28 + $0x360] sm:$0xff]  ;;  %v2759_v42 = vld [vmem:[%s7556_s28 + $0x348] sm:$0xff] }
 0x96e   : > { %2592 = vadd.xlane.f32.xlu0 %v2591_v59  ;;  %v7836_v11 = vadd.f32 %v6528_v2, %v2584_v4  ;;  %3516 = vmatpush1.bf16.msra.mxu1 %v5578_v37  ;;  %v2663_v4 = vld [vmem:[%s7556_s28 + $0x48] sm:$0xff]  ;;  %v5562_v2 = vcombine.low %v2671_v43, %v2675_v45 }
 0x96f   : > { %3517 = vmatprep.subr.bf16.mxu1 %v5571_v39  ;;  %v2667_v59 = vld [vmem:[%s7556_s28 + $0x68] sm:$0xff]  ;;  %v2758_v39 = vld [vmem:[%s7556_s28 + $0x340] sm:$0xff] }
 0x970   : > { %v2594_v54 = vadd.f32 %v7836_v11, %v7834_v0  ;;  %v5555_v57 = vcombine.high %v2663_v4, %v2667_v59  ;;  %3477 = vmatpush1.bf16.msra.mxu0 %v5560_v62  ;;  %v5554_v10 = vcombine.low %v2663_v4, %v2667_v59  ;;  %v5649_v43 = vcombine.high %v2758_v39, %v2762_v41  ;;  %v2763_v45 = vld [vmem:[%s7556_s28 + $0x368] sm:$0xff] }
 0x971   : > { %v5648_v46 = vcombine.low %v2758_v39, %v2762_v41  ;;  %v5651_v49 = vcombine.high %v2759_v42, %v2763_v45  ;;  %v2755_v62 = vld [vmem:[%s7556_s28 + $0x328] sm:$0xff] }
 0x972   : > { %2595 = vadd.xlane.f32.xlu1 %v2594_v54  ;;  %3518 = vmatpush1.bf16.msra.mxu1 %v5570_v47  ;;  %v5553_v54 = vcombine.high %v2662_v52, %v2666_v55  ;;  %v5650_v47 = vcombine.low %v2759_v42, %v2763_v45  ;;  %v2754_v52 = vld [vmem:[%s7556_s28 + $0x320] sm:$0xff]  ;;  %v2751_v55 = vld [vmem:[%s7556_s28 + $0x308] sm:$0xff] }
 0x973   : > { %3519 = vmatprep.subr.bf16.mxu1 %v5563_v51  ;;  %v2750_v51 = vld [vmem:[%s7556_s28 + $0x300] sm:$0xff]  ;;  %v5643_v3 = vcombine.high %v2751_v55, %v2755_v62 }
 0x974   : > { %3478 = vmatprep.subr.bf16.mxu0 %v5553_v54  ;;  %v5640_v4 = vcombine.low %v2750_v51, %v2754_v52  ;;  %v5641_v59 = vcombine.high %v2750_v51, %v2754_v52  ;;  %v2746_v54 = vld [vmem:[%s7556_s28 + $0x2e0] sm:$0xff]  ;;  %v2589_v52 = vld [vmem:[%s873_s26] sm:$0x3]  ;;  %s8456_s26 = sld [smem:[#allocation49_spill]] (!%p5800_p3) }
 0x975   : > { %3479 = vmatpush1.bf16.msra.mxu0 %v5552_v58  ;;  %v2734_v58 = vld [vmem:[%s7556_s28 + $0x280] sm:$0xff] }
 0x976   : > { %3520 = vmatpush1.bf16.msra.mxu1 %v5562_v2  ;;  %3480 = vmatprep.subr.bf16.mxu0 %v5545_v12  ;;  %v2742_v2 = vld [vmem:[%s7556_s28 + $0x2c0] sm:$0xff] }
 0x977   : > { %3521 = vmatprep.subr.bf16.mxu1 %v5555_v57  ;;  %v5642_v57 = vcombine.low %v2751_v55, %v2755_v62  ;;  %v5633_v5 = vcombine.high %v2742_v2, %v2746_v54  ;;  %v2738_v12 = vld [vmem:[%s7556_s28 + $0x2a0] sm:$0xff]  ;;  %v5632_v15 = vcombine.low %v2742_v2, %v2746_v54  ;;  %v2632_v62 = vrot.slane %v2589_v52, %v7752_v44 }
 0x978   : > { %v5625_v17 = vcombine.high %v2734_v58, %v2738_v12  ;;  %v2628_v54 = vrot.slane %v2589_v52, %v7666_v63 }
 0x979   : > { %3481 = vmatpush1.bf16.msra.mxu0 %v5544_v18 }
 0x97a   : > { %3522 = vmatpush1.bf16.msra.mxu1 %v5554_v10  ;;  %3482 = vmatprep.subr.bf16.mxu0 %v5665_v20  ;;  %v5635_v10 = vcombine.high %v2743_v9, %v2747_v36  ;;  %v2730_v20 = vld [vmem:[%s7556_s28 + $0x260] sm:$0xff] }
 0x97b   : > { %3523 = vmatprep.subr.bf16.mxu1 %v5547_v13  ;;  %v2735_v13 = vld [vmem:[%s7556_s28 + $0x288] sm:$0xff] }
 0x97c   : > { %v5627_v18 = vcombine.high %v2735_v13, %v2739_v14 }
 0x97d   : > { %3483 = vmatpush2.bf16.msra.mxu0 %v5664_v22  ;;  %v2731_v22 = vld [vmem:[%s7556_s28 + $0x268] sm:$0xff] }
 0x97e   : > { %3524 = vmatpush1.bf16.msra.mxu1 %v5546_v19  ;;  %v2726_v19 = vld [vmem:[%s7556_s28 + $0x240] sm:$0xff] }
 0x97f   : > { %3525 = vmatprep.subr.bf16.mxu1 %v5667_v21  ;;  %v2727_v21 = vld [vmem:[%s7556_s28 + $0x248] sm:$0xff] }
 0x982   : > { %3526 = vmatpush2.bf16.msra.mxu1 %v5666_v23  ;;  %v5624_v23 = vcombine.low %v2734_v58, %v2738_v12 }
 0x9f7   : > { %v2593_v24 = vpop.xlane.xlu0 %2592 }
 0x9f8   : > { %v2598_v25 = vmul.f32 0.00390625, %v2593_v24  ;;  %v5626_v24 = vcombine.low %v2735_v13, %v2739_v14 }
 0x9fa   : > { %v7877_v27 = vsub.f32 %v7828_v53, %v2598_v25  ;;  %v7880_v28 = vsub.f32 %v7830_v56, %v2598_v25  ;;  %v5617_v25 = vcombine.high %v2726_v19, %v2730_v20 }
 0x9fb   : > { %v2596_v29 = vpop.xlane.xlu1 %2595 }
 0x9fc   : > { %v2599_v50 = vmul.f32 0.00390625, %v2596_v29  ;;  %v2604_v30 = vmul.f32 %v7877_v27, %v7877_v27  ;;  %v2605_v31 = vmul.f32 %v7880_v28, %v7880_v28  ;;  %v5619_v29 = vcombine.high %v2727_v21, %v2731_v22 }
 0x9fe   : > { %v7887_v32 = vsub.f32 %v7834_v0, %v2599_v50  ;;  %v7890_v48 = vsub.f32 %v7836_v11, %v2599_v50  ;;  %v2608_v53 = vadd.f32 %v2605_v31, %v2604_v30  ;;  %v2770_v0 = vld [vmem:[%s7556_s28 + $0x3a0] sm:$0xff]  ;;  %v2771_v11 = vld [vmem:[%s7556_s28 + $0x3a8] sm:$0xff] }
 0x9ff   : > { %v5657_v34 = vcombine.high %v2766_v33, %v2770_v0  ;;  %v5656_v35 = vcombine.low %v2766_v33, %v2770_v0  ;;  %v5658_v37 = vcombine.low %v2767_v1, %v2771_v11  ;;  %v5659_v38 = vcombine.high %v2767_v1, %v2771_v11  ;;  %v2718_v50 = vld [vmem:[%s7556_s28 + $0x200] sm:$0xff]  ;;  %v2719_v31 = vld [vmem:[%s7556_s28 + $0x208] sm:$0xff]  ;;  %v2716_v11 = vld [vmem:[%s7556_s28 + $0x1f0] sm:$0xff] }
 0xa00   : > { %2609 = vadd.xlane.f32.xlu0 %v2608_v53  ;;  %v2606_v56 = vmul.f32 %v7887_v32, %v7887_v32  ;;  %v2607_v6 = vmul.f32 %v7890_v48, %v7890_v48  ;;  %v2722_v30 = vld [vmem:[%s7556_s28 + $0x220] sm:$0xff]  ;;  %v2723_v53 = vld [vmem:[%s7556_s28 + $0x228] sm:$0xff] }
 0xa01   : > { %3484 = vmatprep.subr.bf16.mxu0 %v5657_v34  ;;  %3527 = vmatprep.subr.bf16.mxu1 %v5659_v38  ;;  %v5611_v33 = vcombine.high %v2719_v31, %v2723_v53  ;;  %v5608_v0 = vcombine.low %v2718_v50, %v2722_v30  ;;  %v5610_v1 = vcombine.low %v2719_v31, %v2723_v53  ;;  %v2712_v34 = vld [vmem:[%s7556_s28 + $0x1d0] sm:$0xff]  ;;  %v2717_v38 = vld [vmem:[%s7556_s28 + $0x1f8] sm:$0xff] }
 0xa02   : > { %v2611_v7 = vadd.f32 %v2607_v6, %v2606_v56  ;;  %3485 = vmatpush2.bf16.msra.mxu0 %v5656_v35  ;;  %3528 = vmatpush2.bf16.msra.mxu1 %v5658_v37  ;;  %v5616_v56 = vcombine.low %v2726_v19, %v2730_v20  ;;  %v5618_v6 = vcombine.low %v2727_v21, %v2731_v22  ;;  %v2713_v35 = vld [vmem:[%s7556_s28 + $0x1d8] sm:$0xff]  ;;  %v2696_v20 = vld [vmem:[%s7556_s28 + $0x150] sm:$0xff] }
 0xa03   : > { %3486 = vmatprep.subr.bf16.mxu0 %v5649_v43  ;;  %3529 = vmatprep.subr.bf16.mxu1 %v5651_v49  ;;  %v5605_v37 = vcombine.high %v2712_v34, %v2716_v11  ;;  %v5604_v39 = vcombine.low %v2712_v34, %v2716_v11  ;;  %v5606_v41 = vcombine.low %v2713_v35, %v2717_v38  ;;  %v2688_v53 = vld [vmem:[%s7556_s28 + $0x110] sm:$0xff] }
 0xa04   : > { %2612 = vadd.xlane.f32.xlu1 %v2611_v7  ;;  %v5609_v7 = vcombine.high %v2718_v50, %v2722_v30  ;;  %v5607_v42 = vcombine.high %v2713_v35, %v2717_v38  ;;  %v2680_v11 = vld [vmem:[%s7556_s28 + $0xd0] sm:$0xff]  ;;  %v2685_v38 = vld [vmem:[%s7556_s28 + $0xf8] sm:$0xff] }
 0xa05   : > { %v2684_v35 = vld [vmem:[%s7556_s28 + $0xf0] sm:$0xff] }
 0xa06   : > { %3487 = vmatpush2.bf16.msra.mxu0 %v5648_v46  ;;  %3530 = vmatpush2.bf16.msra.mxu1 %v5650_v47 }
 0xa07   : > { %3488 = vmatprep.subr.bf16.mxu0 %v5641_v59  ;;  %3531 = vmatprep.subr.bf16.mxu1 %v5643_v3 }
 0xa0a   : > { %3489 = vmatpush2.bf16.msra.mxu0 %v5640_v4  ;;  %3532 = vmatpush2.bf16.msra.mxu1 %v5642_v57  ;;  %v2590_v4 = vld [vmem:[%s882_s5] sm:$0x3] }
 0xa0b   : > { %3490 = vmatprep.subr.bf16.mxu0 %v5633_v5  ;;  %3533 = vmatprep.subr.bf16.mxu1 %v5635_v10  ;;  %v2647_v3 = vrot.slane %v2590_v4, %v7752_v44  ;;  %v2643_v5 = vrot.slane %v2590_v4, %v7666_v63 }
 0xa0e   : > { %3491 = vmatpush2.bf16.msra.mxu0 %v5632_v15  ;;  %3534 = vmatpush2.bf16.msra.mxu1 %v5634_v16  ;;  %v2704_v16 = vld [vmem:[%s7556_s28 + $0x190] sm:$0xff] }
 0xa0f   : > { %3492 = vmatprep.subr.bf16.mxu0 %v5625_v17  ;;  %3535 = vmatprep.subr.bf16.mxu1 %v5627_v18  ;;  %v2705_v17 = vld [vmem:[%s7556_s28 + $0x198] sm:$0xff] }
 0xa10   : > { %v2709_v18 = vld [vmem:[%s7556_s28 + $0x1b8] sm:$0xff] }
 0xa11   : > { %v5599_v22 = vcombine.high %v2705_v17, %v2709_v18  ;;  %v5598_v50 = vcombine.low %v2705_v17, %v2709_v18  ;;  %v2776_v18 = vld [vmem:[%s7556_s28 + $0x3d0] sm:$0xff] }
 0xa12   : > { %3493 = vmatpush2.bf16.msra.mxu0 %v5624_v23  ;;  %3536 = vmatpush2.bf16.msra.mxu1 %v5626_v24  ;;  %v2700_v23 = vld [vmem:[%s7556_s28 + $0x170] sm:$0xff]  ;;  %v2697_v24 = vld [vmem:[%s7556_s28 + $0x158] sm:$0xff] }
 0xa13   : > { %3494 = vmatprep.subr.bf16.mxu0 %v5617_v25  ;;  %3537 = vmatprep.subr.bf16.mxu1 %v5619_v29  ;;  %v2701_v25 = vld [vmem:[%s7556_s28 + $0x178] sm:$0xff]  ;;  %v5589_v30 = vcombine.high %v2696_v20, %v2700_v23 }
 0xa14   : > { %v5591_v31 = vcombine.high %v2697_v24, %v2701_v25 }
 0xa16   : > { %3495 = vmatpush2.bf16.msra.mxu0 %v5616_v56  ;;  %3538 = vmatpush2.bf16.msra.mxu1 %v5618_v6  ;;  %v2692_v56 = vld [vmem:[%s7556_s28 + $0x130] sm:$0xff]  ;;  %v2689_v6 = vld [vmem:[%s7556_s28 + $0x118] sm:$0xff] }
 0xa17   : > { %3496 = vmatprep.subr.bf16.mxu0 %v5609_v7  ;;  %3539 = vmatprep.subr.bf16.mxu1 %v5611_v33  ;;  %v2693_v7 = vld [vmem:[%s7556_s28 + $0x138] sm:$0xff]  ;;  %v5588_v33 = vcombine.low %v2696_v20, %v2700_v23 }
 0xa18   : > { %v5583_v34 = vcombine.high %v2689_v6, %v2693_v7  ;;  %v2777_v20 = vld [vmem:[%s7556_s28 + $0x3d8] sm:$0xff] }
 0xa1a   : > { %3497 = vmatpush2.bf16.msra.mxu0 %v5608_v0  ;;  %3540 = vmatpush2.bf16.msra.mxu1 %v5610_v1  ;;  %v5590_v0 = vcombine.low %v2697_v24, %v2701_v25  ;;  %v5581_v1 = vcombine.high %v2688_v53, %v2692_v56 }
 0xa1b   : > { %3552 = vmatprep.subr.bf16.mxu0 %v5605_v37  ;;  %3595 = vmatprep.subr.bf16.mxu1 %v5607_v42  ;;  %v2681_v37 = vld [vmem:[%s7556_s28 + $0xd8] sm:$0xff]  ;;  %v5573_v42 = vcombine.high %v2680_v11, %v2684_v35 }
 0xa1c   : > { %v5574_v52 = vcombine.low %v2681_v37, %v2685_v38 }
 0xa89   : > { %v2610_v43 = vpop.xlane.xlu0 %2609 }
 0xa8a   : > { %v2614_v45 = vmul.f32 0.00390625, %v2610_v43  ;;  %v5575_v43 = vcombine.high %v2681_v37, %v2685_v38 }
 0xa8c   : > { %v2616_v46 = vadd.f32 1e-12, %v2614_v45  ;;  %v2672_v45 = vld [vmem:[%s7556_s28 + $0x90] sm:$0xff] }
 0xa8d   : > { %v2613_v47 = vpop.xlane.xlu1 %2612 }
 0xa8e   : > { %6486 = vrsqrt.f32 %v2616_v46  ;;  %v2615_v49 = vmul.f32 0.00390625, %v2613_v47  ;;  %v2676_v46 = vld [vmem:[%s7556_s28 + $0xb0] sm:$0xff]  ;;  %v2673_v47 = vld [vmem:[%s7556_s28 + $0x98] sm:$0xff] }
 0xa90   : > { %v2617_v51 = vadd.f32 1e-12, %v2615_v49  ;;  %v2677_v49 = vld [vmem:[%s7556_s28 + $0xb8] sm:$0xff] }
 0xa91   : > { %v5567_v4 = vcombine.high %v2673_v47, %v2677_v49 }
 0xa92   : > { %6488 = vrsqrt.f32 %v2617_v51  ;;  %v5572_v51 = vcombine.low %v2680_v11, %v2684_v35 }
 0xa9b   : > { %v6487_v55 = vpop.eup %6486 }
 0xa9c   : > { %v2621_v59 = vmul.f32 %v6487_v55, %v7880_v28  ;;  %v2620_v2 = vmul.f32 %v6487_v55, %v7877_v27  ;;  %v5565_v55 = vcombine.high %v2672_v45, %v2676_v46 }
 0xa9e   : > { %v2636_v36 = vmul.f32 %v2632_v62, %v2621_v59  ;;  %v2635_v58 = vmul.f32 %v2628_v54, %v2620_v2  ;;  %v2664_v59 = vld [vmem:[%s7556_s28 + $0x50] sm:$0xff]  ;;  %v2665_v2 = vld [vmem:[%s7556_s28 + $0x58] sm:$0xff] }
 0xa9f   : > { %v6489_v57 = vpop.eup %6488 }
 0xaa0   : > { %v2623_v9 = vmul.f32 %v6489_v57, %v7890_v48  ;;  %v2622_v28 = vmul.f32 %v6489_v57, %v7887_v32  ;;  %v7940_v27 = vadd.f32 %v2647_v3, %v2636_v36  ;;  %v7944_v14 = vadd.f32 %v2643_v5, %v2635_v58  ;;  %v2708_v48 = vld [vmem:[%s7556_s28 + $0x1b0] sm:$0xff]  ;;  %v2657_v58 = vld [vmem:[%s7556_s28 + $0x18] sm:$0xff] }
 0xaa1   : > { %v5597_v21 = vcombine.high %v2704_v16, %v2708_v48  ;;  %v5596_v29 = vcombine.low %v2704_v16, %v2708_v48  ;;  %v5564_v57 = vcombine.low %v2672_v45, %v2676_v46  ;;  %v2656_v36 = vld [vmem:[%s7556_s28 + $0x10] sm:$0xff] }
 0xaa2   : > { %v2638_v10 = vmul.f32 %v2632_v62, %v2623_v9  ;;  %v2637_v12 = vmul.f32 %v2628_v54, %v2622_v28  ;;  %v2668_v62 = vld [vmem:[%s7556_s28 + $0x70] sm:$0xff]  ;;  %v2669_v54 = vld [vmem:[%s7556_s28 + $0x78] sm:$0xff] }
 0xaa3   : > { %v5559_v9 = vcombine.high %v2665_v2, %v2669_v54  ;;  %v2660_v28 = vld [vmem:[%s7556_s28 + $0x30] sm:$0xff]  ;;  %v5558_v16 = vcombine.low %v2665_v2, %v2669_v54 }
 0xaa4   : > { %v7942_v13 = vadd.f32 %v2647_v3, %v2638_v10  ;;  %v7946_v15 = vadd.f32 %v2643_v5, %v2637_v12  ;;  %v5566_v3 = vcombine.low %v2673_v47, %v2677_v49  ;;  %v5557_v5 = vcombine.high %v2664_v59, %v2668_v62  ;;  %v2661_v10 = vld [vmem:[%s7556_s28 + $0x38] sm:$0xff] }
 0xaa5   : > { %v5556_v12 = vcombine.low %v2664_v59, %v2668_v62  ;;  %v5549_v48 = vcombine.high %v2656_v36, %v2660_v28  ;;  %v5551_v17 = vcombine.high %v2657_v58, %v2661_v10  ;;  %v5550_v23 = vcombine.low %v2657_v58, %v2661_v10 }
 0xaa6   : > { %v2784_v32 = vpack.c.bf16 %v7942_v13, %v7940_v27  ;;  %v7956_v19 = vpack.c.bf16 %v7946_v15, %v7944_v14 }
 0xaa8   : > { %3498 = vmatprep.mubr.bf16.mxu0 %v2784_v32  ;;  %3541 = vmatprep.mubr.bf16.mxu1 %v2784_v32 }
 0xaa9   : > { %3499 = vmatmul.mubr.bf16.vlgmr.msra.gmra.mxu0 %v7956_v19  ;;  %3542 = vmatmul.mubr.bf16.vlgmr.msra.gmra.mxu1 %v7956_v19 }
 0xaaa   : > { %3553 = vmatpush1.bf16.msra.mxu0 %v5604_v39  ;;  %3596 = vmatpush1.bf16.msra.mxu1 %v5606_v41  ;;  %v5580_v39 = vcombine.low %v2688_v53, %v2692_v56  ;;  %v5582_v41 = vcombine.low %v2689_v6, %v2693_v7 }
 0xaab   : > { %3584 = vmatprep.mubr.bf16.mxu0 %v2784_v32  ;;  %3627 = vmatprep.mubr.bf16.mxu1 %v2784_v32  ;;  %v2780_v32 = vld [vmem:[%s7556_s28 + $0x3f0] sm:$0xff] }
 0xaac   : > { %3554 = vmatprep.subr.bf16.mxu0 %v5597_v21  ;;  %3597 = vmatprep.subr.bf16.mxu1 %v5599_v22  ;;  %v2781_v21 = vld [vmem:[%s7556_s28 + $0x3f8] sm:$0xff]  ;;  %v5548_v22 = vcombine.low %v2656_v36, %v2660_v28  ;;  %v5669_v24 = vcombine.high %v2776_v18, %v2780_v32  ;;  %v5668_v53 = vcombine.low %v2776_v18, %v2780_v32 }
 0xaad   : > { %v5671_v25 = vcombine.high %v2777_v20, %v2781_v21  ;;  %v5670_v56 = vcombine.low %v2777_v20, %v2781_v21 }
 0xaae   : > { %3555 = vmatpush1.bf16.msra.mxu0 %v5596_v29  ;;  %3598 = vmatpush1.bf16.msra.mxu1 %v5598_v50  ;;  %v2768_v29 = vld [vmem:[%s7556_s28 + $0x390] sm:$0xff] }
 0xaaf   : > { %3556 = vmatprep.subr.bf16.mxu0 %v5589_v30  ;;  %3599 = vmatprep.subr.bf16.mxu1 %v5591_v31  ;;  %v2772_v50 = vld [vmem:[%s7556_s28 + $0x3b0] sm:$0xff]  ;;  %v2769_v30 = vld [vmem:[%s7556_s28 + $0x398] sm:$0xff] }
 0xab0   : > { %v2773_v31 = vld [vmem:[%s7556_s28 + $0x3b8] sm:$0xff]  ;;  %v5661_v6 = vcombine.high %v2768_v29, %v2772_v50  ;;  %v5660_v11 = vcombine.low %v2768_v29, %v2772_v50 }
 0xab1   : > { %v5663_v7 = vcombine.high %v2769_v30, %v2773_v31  ;;  %v5662_v35 = vcombine.low %v2769_v30, %v2773_v31 }
 0xab2   : > { %3557 = vmatpush1.bf16.msra.mxu0 %v5588_v33  ;;  %3600 = vmatpush1.bf16.msra.mxu1 %v5590_v0  ;;  %v2760_v33 = vld [vmem:[%s7556_s28 + $0x350] sm:$0xff] }
 0xab3   : > { %3558 = vmatprep.subr.bf16.mxu0 %v5581_v1  ;;  %3601 = vmatprep.subr.bf16.mxu1 %v5583_v34  ;;  %v2764_v0 = vld [vmem:[%s7556_s28 + $0x370] sm:$0xff]  ;;  %v2761_v1 = vld [vmem:[%s7556_s28 + $0x358] sm:$0xff] }
 0xab4   : > { %v2765_v34 = vld [vmem:[%s7556_s28 + $0x378] sm:$0xff]  ;;  %v5653_v37 = vcombine.high %v2760_v33, %v2764_v0  ;;  %v5652_v45 = vcombine.low %v2760_v33, %v2764_v0 }
 0xab5   : > { %v5655_v38 = vcombine.high %v2761_v1, %v2765_v34  ;;  %v5654_v46 = vcombine.low %v2761_v1, %v2765_v34  ;;  %v6278_v33 = vld [vmem:[%s7558_s3 + $0x70] ss:$8 sps:$4 sm:$0xff]   ;;  %v6286_v1 = vld [vmem:[%s7558_s3 + $0x64] ss:$8 sps:$4 sm:$0xff]  }
 0xab6   : > { %3559 = vmatpush1.bf16.msra.mxu0 %v5580_v39  ;;  %3602 = vmatpush1.bf16.msra.mxu1 %v5582_v41  ;;  %v2752_v39 = vld [vmem:[%s7556_s28 + $0x310] sm:$0xff]  ;;  %v6289_v34 = vld [vmem:[%s7558_s3 + $0x164] ss:$8 sps:$4 sm:$0xff]  }
 0xab7   : > { %3560 = vmatprep.subr.bf16.mxu0 %v5573_v42  ;;  %3603 = vmatprep.subr.bf16.mxu1 %v5575_v43  ;;  %v2756_v41 = vld [vmem:[%s7556_s28 + $0x330] sm:$0xff]  ;;  %v2753_v42 = vld [vmem:[%s7556_s28 + $0x318] sm:$0xff] }
 0xab8   : > { %v2757_v43 = vld [vmem:[%s7556_s28 + $0x338] sm:$0xff]  ;;  %v5645_v47 = vcombine.high %v2752_v39, %v2756_v41  ;;  %v5644_v59 = vcombine.low %v2752_v39, %v2756_v41 }
 0xab9   : > { %v5647_v49 = vcombine.high %v2753_v42, %v2757_v43  ;;  %v5646_v62 = vcombine.low %v2753_v42, %v2757_v43  ;;  %v6281_v0 = vld [vmem:[%s7558_s3 + $0x170] ss:$8 sps:$4 sm:$0xff]   ;;  %v6301_v42 = vld [vmem:[%s7558_s3 + $0x144] ss:$8 sps:$4 sm:$0xff]   ;;  %v6296_v43 = vld [vmem:[%s7558_s3 + $0x40] ss:$8 sps:$4 sm:$0xff]  }
 0xaba   : > { %3561 = vmatpush1.bf16.msra.mxu0 %v5572_v51  ;;  %3604 = vmatpush1.bf16.msra.mxu1 %v5574_v52  ;;  %v2744_v51 = vld [vmem:[%s7556_s28 + $0x2d0] sm:$0xff] }
 0xabb   : > { %3562 = vmatprep.subr.bf16.mxu0 %v5565_v55  ;;  %3605 = vmatprep.subr.bf16.mxu1 %v5567_v4  ;;  %v2748_v52 = vld [vmem:[%s7556_s28 + $0x2f0] sm:$0xff]  ;;  %v2745_v55 = vld [vmem:[%s7556_s28 + $0x2d8] sm:$0xff] }
 0xabc   : > { %v2749_v4 = vld [vmem:[%s7556_s28 + $0x2f8] sm:$0xff]  ;;  %v5637_v2 = vcombine.high %v2744_v51, %v2748_v52  ;;  %v5636_v36 = vcombine.low %v2744_v51, %v2748_v52  ;;  %v6310_v52 = vld [vmem:[%s7558_s3 + $0x24] ss:$8 sps:$4 sm:$0xff]  }
 0xabd   : > { %v5639_v54 = vcombine.high %v2745_v55, %v2749_v4  ;;  %v5638_v28 = vcombine.low %v2745_v55, %v2749_v4  ;;  %v6290_v39 = vld [vmem:[%s7558_s3 + $0x50] ss:$8 sps:$4 sm:$0xff]   ;;  %v6313_v55 = vld [vmem:[%s7558_s3 + $0x124] ss:$8 sps:$4 sm:$0xff]   ;;  %v6308_v4 = vld [vmem:[%s7558_s3 + $0x20] ss:$8 sps:$4 sm:$0xff]  }
 0xabe   : > { %3563 = vmatpush1.bf16.msra.mxu0 %v5564_v57  ;;  %3606 = vmatpush1.bf16.msra.mxu1 %v5566_v3  ;;  %v2736_v57 = vld [vmem:[%s7556_s28 + $0x290] sm:$0xff] }
 0xabf   : > { %3564 = vmatprep.subr.bf16.mxu0 %v5557_v5  ;;  %3607 = vmatprep.subr.bf16.mxu1 %v5559_v9  ;;  %v2740_v3 = vld [vmem:[%s7556_s28 + $0x2b0] sm:$0xff]  ;;  %v2737_v5 = vld [vmem:[%s7556_s28 + $0x298] sm:$0xff] }
 0xac0   : > { %v2741_v9 = vld [vmem:[%s7556_s28 + $0x2b8] sm:$0xff]  ;;  %v5629_v58 = vcombine.high %v2736_v57, %v2740_v3  ;;  %v5628_v18 = vcombine.low %v2736_v57, %v2740_v3  ;;  %v6322_v3 = vld [vmem:[%s7558_s3 + $0x4] ss:$8 sps:$4 sm:$0xff]  }
 0xac1   : > { %v5631_v10 = vcombine.high %v2737_v5, %v2741_v9  ;;  %v5630_v32 = vcombine.low %v2737_v5, %v2741_v9  ;;  %v6293_v41 = vld [vmem:[%s7558_s3 + $0x150] ss:$8 sps:$4 sm:$0xff]   ;;  %v6325_v5 = vld [vmem:[%s7558_s3 + $0x104] ss:$8 sps:$4 sm:$0xff]   ;;  %v6320_v9 = vld [vmem:[%s7558_s3] ss:$8 sps:$4 sm:$0xff]  }
 0xac2   : > { %3565 = vmatpush1.bf16.msra.mxu0 %v5556_v12  ;;  %3608 = vmatpush1.bf16.msra.mxu1 %v5558_v16  ;;  %v2728_v12 = vld [vmem:[%s7556_s28 + $0x250] sm:$0xff] }
 0xac3   : > { %3566 = vmatprep.subr.bf16.mxu0 %v5549_v48  ;;  %3609 = vmatprep.subr.bf16.mxu1 %v5551_v17  ;;  %v2732_v16 = vld [vmem:[%s7556_s28 + $0x270] sm:$0xff]  ;;  %v2729_v48 = vld [vmem:[%s7556_s28 + $0x258] sm:$0xff] }
 0xac4   : > { %v2733_v17 = vld [vmem:[%s7556_s28 + $0x278] sm:$0xff]  ;;  %v5621_v20 = vcombine.high %v2728_v12, %v2732_v16  ;;  %v5620_v29 = vcombine.low %v2728_v12, %v2732_v16  ;;  %v6334_v16 = vld [vmem:[%s7558_s3 + $0xe4] ss:$8 sps:$4 sm:$0xff]  }
 0xac5   : > { %v5623_v21 = vcombine.high %v2729_v48, %v2733_v17  ;;  %v5622_v50 = vcombine.low %v2729_v48, %v2733_v17  ;;  %v6305_v51 = vld [vmem:[%s7558_s3 + $0x130] ss:$8 sps:$4 sm:$0xff]   ;;  %v6337_v48 = vld [vmem:[%s7558_s3 + $0x1e4] ss:$8 sps:$4 sm:$0xff]   ;;  %v6332_v17 = vld [vmem:[%s7558_s3 + $0xe0] ss:$8 sps:$4 sm:$0xff]  }
 0xac6   : > { %3567 = vmatpush1.bf16.msra.mxu0 %v5548_v22  ;;  %3610 = vmatpush1.bf16.msra.mxu1 %v5550_v23  ;;  %v2720_v22 = vld [vmem:[%s7556_s28 + $0x210] sm:$0xff] }
 0xac7   : > { %3568 = vmatprep.subr.bf16.mxu0 %v5669_v24  ;;  %3611 = vmatprep.subr.bf16.mxu1 %v5671_v25  ;;  %v2724_v23 = vld [vmem:[%s7556_s28 + $0x230] sm:$0xff]  ;;  %v2721_v24 = vld [vmem:[%s7556_s28 + $0x218] sm:$0xff] }
 0xac8   : > { %v2725_v25 = vld [vmem:[%s7556_s28 + $0x238] sm:$0xff]  ;;  %v5613_v30 = vcombine.high %v2720_v22, %v2724_v23 }
 0xac9   : > { %v5615_v31 = vcombine.high %v2721_v24, %v2725_v25  ;;  %v6317_v57 = vld [vmem:[%s7558_s3 + $0x110] ss:$8 sps:$4 sm:$0xff]  }
 0xaca   : > { %3569 = vmatpush2.bf16.msra.mxu0 %v5668_v53  ;;  %3612 = vmatpush2.bf16.msra.mxu1 %v5670_v56  ;;  %v5612_v53 = vcombine.low %v2720_v22, %v2724_v23  ;;  %v5614_v56 = vcombine.low %v2721_v24, %v2725_v25  ;;  %v6329_v12 = vld [vmem:[%s7558_s3 + $0x1f0] ss:$8 sps:$4 sm:$0xff]   ;;  %v6346_v23 = vld [vmem:[%s7558_s3 + $0xc4] ss:$8 sps:$4 sm:$0xff]   ;;  %v6344_v25 = vld [vmem:[%s7558_s3 + $0xc0] ss:$8 sps:$4 sm:$0xff]  }
 0xacb   : > { %3570 = vmatprep.subr.bf16.mxu0 %v5661_v6  ;;  %3613 = vmatprep.subr.bf16.mxu1 %v5663_v7  ;;  %v6280_v6 = vld [vmem:[%s7558_s3 + $0x74] ss:$8 sps:$4 sm:$0xff]   ;;  %v6341_v22 = vld [vmem:[%s7558_s3 + $0x1d0] ss:$8 sps:$4 sm:$0xff]   ;;  %v6349_v24 = vld [vmem:[%s7558_s3 + $0x1c4] ss:$8 sps:$4 sm:$0xff]  }
 0xacc   : > { %v6283_v7 = vld [vmem:[%s7558_s3 + $0x174] ss:$8 sps:$4 sm:$0xff]  }
 0xace   : > { %3571 = vmatpush2.bf16.msra.mxu0 %v5660_v11  ;;  %3614 = vmatpush2.bf16.msra.mxu1 %v5662_v35  ;;  %v6284_v11 = vld [vmem:[%s7558_s3 + $0x60] ss:$8 sps:$4 sm:$0xff]  }
 0xacf   : > { %3572 = vmatprep.subr.bf16.mxu0 %v5653_v37  ;;  %3615 = vmatprep.subr.bf16.mxu1 %v5655_v38  ;;  %v6287_v35 = vld [vmem:[%s7558_s3 + $0x160] ss:$8 sps:$4 sm:$0xff]   ;;  %v6292_v37 = vld [vmem:[%s7558_s3 + $0x54] ss:$8 sps:$4 sm:$0xff]  }
 0xad0   : > { %v6295_v38 = vld [vmem:[%s7558_s3 + $0x154] ss:$8 sps:$4 sm:$0xff]  }
 0xad2   : > { %3573 = vmatpush2.bf16.msra.mxu0 %v5652_v45  ;;  %3616 = vmatpush2.bf16.msra.mxu1 %v5654_v46  ;;  %v6299_v45 = vld [vmem:[%s7558_s3 + $0x140] ss:$8 sps:$4 sm:$0xff]   ;;  %v6304_v46 = vld [vmem:[%s7558_s3 + $0x34] ss:$8 sps:$4 sm:$0xff]  }
 0xad3   : > { %3574 = vmatprep.subr.bf16.mxu0 %v5645_v47  ;;  %3617 = vmatprep.subr.bf16.mxu1 %v5647_v49  ;;  %v6307_v47 = vld [vmem:[%s7558_s3 + $0x134] ss:$8 sps:$4 sm:$0xff]   ;;  %v6302_v49 = vld [vmem:[%s7558_s3 + $0x30] ss:$8 sps:$4 sm:$0xff]  }
 0xad6   : > { %3575 = vmatpush2.bf16.msra.mxu0 %v5644_v59  ;;  %3618 = vmatpush2.bf16.msra.mxu1 %v5646_v62  ;;  %v6311_v59 = vld [vmem:[%s7558_s3 + $0x120] ss:$8 sps:$4 sm:$0xff]   ;;  %v6316_v62 = vld [vmem:[%s7558_s3 + $0x14] ss:$8 sps:$4 sm:$0xff]  }
 0xad7   : > { %3576 = vmatprep.subr.bf16.mxu0 %v5637_v2  ;;  %3619 = vmatprep.subr.bf16.mxu1 %v5639_v54  ;;  %v6319_v2 = vld [vmem:[%s7558_s3 + $0x114] ss:$8 sps:$4 sm:$0xff]   ;;  %v6314_v54 = vld [vmem:[%s7558_s3 + $0x10] ss:$8 sps:$4 sm:$0xff]  }
 0xada   : > { %3577 = vmatpush2.bf16.msra.mxu0 %v5636_v36  ;;  %3620 = vmatpush2.bf16.msra.mxu1 %v5638_v28  ;;  %v6323_v36 = vld [vmem:[%s7558_s3 + $0x100] ss:$8 sps:$4 sm:$0xff]   ;;  %v6328_v28 = vld [vmem:[%s7558_s3 + $0xf4] ss:$8 sps:$4 sm:$0xff]  }
 0xadb   : > { %3578 = vmatprep.subr.bf16.mxu0 %v5629_v58  ;;  %3621 = vmatprep.subr.bf16.mxu1 %v5631_v10  ;;  %v6331_v58 = vld [vmem:[%s7558_s3 + $0x1f4] ss:$8 sps:$4 sm:$0xff]   ;;  %v6326_v10 = vld [vmem:[%s7558_s3 + $0xf0] ss:$8 sps:$4 sm:$0xff]  }
 0xade   : > { %3579 = vmatpush2.bf16.msra.mxu0 %v5628_v18  ;;  %3622 = vmatpush2.bf16.msra.mxu1 %v5630_v32  ;;  %v6335_v18 = vld [vmem:[%s7558_s3 + $0x1e0] ss:$8 sps:$4 sm:$0xff]   ;;  %v6340_v32 = vld [vmem:[%s7558_s3 + $0xd4] ss:$8 sps:$4 sm:$0xff]  }
 0xadf   : > { %3580 = vmatprep.subr.bf16.mxu0 %v5621_v20  ;;  %3623 = vmatprep.subr.bf16.mxu1 %v5623_v21  ;;  %v6343_v20 = vld [vmem:[%s7558_s3 + $0x1d4] ss:$8 sps:$4 sm:$0xff]   ;;  %v6338_v21 = vld [vmem:[%s7558_s3 + $0xd0] ss:$8 sps:$4 sm:$0xff]  }
 0xae2   : > { %3581 = vmatpush2.bf16.msra.mxu0 %v5620_v29  ;;  %3624 = vmatpush2.bf16.msra.mxu1 %v5622_v50  ;;  %v6347_v29 = vld [vmem:[%s7558_s3 + $0x1c0] ss:$8 sps:$4 sm:$0xff]   ;;  %v6352_v50 = vld [vmem:[%s7558_s3 + $0xb4] ss:$8 sps:$4 sm:$0xff]  }
 0xae3   : > { %3582 = vmatprep.subr.bf16.mxu0 %v5613_v30  ;;  %3625 = vmatprep.subr.bf16.mxu1 %v5615_v31  ;;  %v6355_v30 = vld [vmem:[%s7558_s3 + $0x1b4] ss:$8 sps:$4 sm:$0xff]   ;;  %v6350_v31 = vld [vmem:[%s7558_s3 + $0xb0] ss:$8 sps:$4 sm:$0xff]  }
 0xae6   : > { %3583 = vmatpush2.bf16.msra.mxu0 %v5612_v53  ;;  %3626 = vmatpush2.bf16.msra.mxu1 %v5614_v56  ;;  %v6353_v53 = vld [vmem:[%s7558_s3 + $0x1b0] ss:$8 sps:$4 sm:$0xff]   ;;  %v6358_v56 = vld [vmem:[%s7558_s3 + $0xa4] ss:$8 sps:$4 sm:$0xff]  }
 0xae7   : > { %4570 = vmatprep.subr.bf16.mxu0 %v6280_v6  ;;  %4613 = vmatprep.subr.bf16.mxu1 %v6283_v7  ;;  %v6361_v6 = vld [vmem:[%s7558_s3 + $0x1a4] ss:$8 sps:$4 sm:$0xff]   ;;  %v6356_v7 = vld [vmem:[%s7558_s3 + $0xa0] ss:$8 sps:$4 sm:$0xff]  }
 0xae9   : > { %3585 = vmatmul.mubr.bf16.vlgmr.msra.gmra.mxu0 %v7956_v19  ;;  %3628 = vmatmul.mubr.bf16.vlgmr.msra.gmra.mxu1 %v7956_v19  ;;  %v6298_v19 = vld [vmem:[%s7558_s3 + $0x44] ss:$8 sps:$4 sm:$0xff]  }
 0xaea   : > { %4571 = vmatpush1.bf16.msra.mxu0 %v6278_v33  ;;  %4614 = vmatpush1.bf16.msra.mxu1 %v6281_v0  ;;  %v6359_v33 = vld [vmem:[%s7558_s3 + $0x1a0] ss:$8 sps:$4 sm:$0xff]   ;;  %v6364_v0 = vld [vmem:[%s7558_s3 + $0x94] ss:$8 sps:$4 sm:$0xff]  }
 0xaeb   : > { %4572 = vmatprep.subr.bf16.mxu0 %v6286_v1  ;;  %4615 = vmatprep.subr.bf16.mxu1 %v6289_v34  ;;  %v6367_v1 = vld [vmem:[%s7558_s3 + $0x194] ss:$8 sps:$4 sm:$0xff]   ;;  %v6362_v34 = vld [vmem:[%s7558_s3 + $0x90] ss:$8 sps:$4 sm:$0xff]  }
 0xaee   : > { %4573 = vmatpush1.bf16.msra.mxu0 %v6284_v11  ;;  %4616 = vmatpush1.bf16.msra.mxu1 %v6287_v35  ;;  %v6365_v11 = vld [vmem:[%s7558_s3 + $0x190] ss:$8 sps:$4 sm:$0xff]   ;;  %v6370_v35 = vld [vmem:[%s7558_s3 + $0x84] ss:$8 sps:$4 sm:$0xff]  }
 0xaef   : > { %4574 = vmatprep.subr.bf16.mxu0 %v6292_v37  ;;  %4617 = vmatprep.subr.bf16.mxu1 %v6295_v38  ;;  %v6373_v37 = vld [vmem:[%s7558_s3 + $0x184] ss:$8 sps:$4 sm:$0xff]   ;;  %v6368_v38 = vld [vmem:[%s7558_s3 + $0x80] ss:$8 sps:$4 sm:$0xff]  }
 0xaf2   : > { %4575 = vmatpush1.bf16.msra.mxu0 %v6290_v39  ;;  %4618 = vmatpush1.bf16.msra.mxu1 %v6293_v41  ;;  %v6371_v39 = vld [vmem:[%s7558_s3 + $0x180] ss:$8 sps:$4 sm:$0xff]   ;;  %v6376_v41 = vld [vmem:[%s7558_s3 + $0x274] ss:$8 sps:$4 sm:$0xff]  }
 0xaf3   : > { %4576 = vmatprep.subr.bf16.mxu0 %v6298_v19  ;;  %4619 = vmatprep.subr.bf16.mxu1 %v6301_v42  ;;  %v6379_v19 = vld [vmem:[%s7558_s3 + $0x374] ss:$8 sps:$4 sm:$0xff]  }
 0xaf4   : > { %v8085_v42 = vld [vmem:[%s7576_s4] sm:$0xff] }
 0xaf6   : > { %4577 = vmatpush1.bf16.msra.mxu0 %v6296_v43  ;;  %4620 = vmatpush1.bf16.msra.mxu1 %v6299_v45  ;;  %v2789_v43 = vrot.slane %v8085_v42, %v7666_v63  ;;  %v2797_v45 = vrot.slane %v8085_v42, %v1232_v61 }
 0xaf7   : > { %4578 = vmatprep.subr.bf16.mxu0 %v6304_v46  ;;  %4621 = vmatprep.subr.bf16.mxu1 %v6307_v47  ;;  %v2793_v46 = vrot.slane %v8085_v42, %v7752_v44  ;;  %v2801_v47 = vrot.slane %v8085_v42, %v1236_v40 }
 0xafa   : > { %4579 = vmatpush1.bf16.msra.mxu0 %v6302_v49  ;;  %4622 = vmatpush1.bf16.msra.mxu1 %v6305_v51 }
 0xafb   : > { %4580 = vmatprep.subr.bf16.mxu0 %v6310_v52  ;;  %4623 = vmatprep.subr.bf16.mxu1 %v6313_v55 }
 0xafe   : > { %4581 = vmatpush1.bf16.msra.mxu0 %v6308_v4  ;;  %4624 = vmatpush1.bf16.msra.mxu1 %v6311_v59 }
 0xaff   : > { %4582 = vmatprep.subr.bf16.mxu0 %v6316_v62  ;;  %4625 = vmatprep.subr.bf16.mxu1 %v6319_v2 }
 0xb02   : > { %4583 = vmatpush1.bf16.msra.mxu0 %v6314_v54  ;;  %4626 = vmatpush1.bf16.msra.mxu1 %v6317_v57 }
 0xb03   : > { %4584 = vmatprep.subr.bf16.mxu0 %v6322_v3  ;;  %4627 = vmatprep.subr.bf16.mxu1 %v6325_v5 }
 0xb06   : > { %4585 = vmatpush1.bf16.msra.mxu0 %v6320_v9  ;;  %4628 = vmatpush1.bf16.msra.mxu1 %v6323_v36 }
 0xb07   : > { %4586 = vmatprep.subr.bf16.mxu0 %v6328_v28  ;;  %4629 = vmatprep.subr.bf16.mxu1 %v6331_v58 }
 0xb0a   : > { %4587 = vmatpush2.bf16.msra.mxu0 %v6326_v10  ;;  %4630 = vmatpush2.bf16.msra.mxu1 %v6329_v12 }
 0xb0b   : > { %4588 = vmatprep.subr.bf16.mxu0 %v6334_v16  ;;  %4631 = vmatprep.subr.bf16.mxu1 %v6337_v48 }
 0xb0e   : > { %4589 = vmatpush2.bf16.msra.mxu0 %v6332_v17  ;;  %4632 = vmatpush2.bf16.msra.mxu1 %v6335_v18 }
 0xb0f   : > { %4590 = vmatprep.subr.bf16.mxu0 %v6340_v32  ;;  %4633 = vmatprep.subr.bf16.mxu1 %v6343_v20 }
 0xb12   : > { %4591 = vmatpush2.bf16.msra.mxu0 %v6338_v21  ;;  %4634 = vmatpush2.bf16.msra.mxu1 %v6341_v22 }
 0xb13   : > { %4592 = vmatprep.subr.bf16.mxu0 %v6346_v23  ;;  %4635 = vmatprep.subr.bf16.mxu1 %v6349_v24 }
 0xb16   : > { %4593 = vmatpush2.bf16.msra.mxu0 %v6344_v25  ;;  %4636 = vmatpush2.bf16.msra.mxu1 %v6347_v29 }
 0xb17   : > { %4594 = vmatprep.subr.bf16.mxu0 %v6352_v50  ;;  %4637 = vmatprep.subr.bf16.mxu1 %v6355_v30 }
 0xb1a   : > { %4595 = vmatpush2.bf16.msra.mxu0 %v6350_v31  ;;  %4638 = vmatpush2.bf16.msra.mxu1 %v6353_v53 }
 0xb1b   : > { %4596 = vmatprep.subr.bf16.mxu0 %v6358_v56  ;;  %4639 = vmatprep.subr.bf16.mxu1 %v6361_v6 }
 0xb1e   : > { %4597 = vmatpush2.bf16.msra.mxu0 %v6356_v7  ;;  %4640 = vmatpush2.bf16.msra.mxu1 %v6359_v33 }
 0xb1f   : > { %4598 = vmatprep.subr.bf16.mxu0 %v6364_v0  ;;  %4641 = vmatprep.subr.bf16.mxu1 %v6367_v1 }
 0xb22   : > { %4599 = vmatpush2.bf16.msra.mxu0 %v6362_v34  ;;  %4642 = vmatpush2.bf16.msra.mxu1 %v6365_v11 }
 0xb23   : > { %4600 = vmatprep.subr.bf16.mxu0 %v6370_v35  ;;  %4643 = vmatprep.subr.bf16.mxu1 %v6373_v37 }
 0xb26   : > { %4601 = vmatpush2.bf16.msra.mxu0 %v6368_v38  ;;  %4644 = vmatpush2.bf16.msra.mxu1 %v6371_v39 }
 0xb27   : > { %4656 = vmatprep.subr.bf16.mxu0 %v6376_v41  ;;  %4699 = vmatprep.subr.bf16.mxu1 %v6379_v19 }
 0xb69   : > { %v3500_v49 = vpop.f32.mrf.mxu0  ;;  %v3543_v51 = vpop.f32.mrf.mxu1 }
 0xb6a   : > { %v8097_v52 = vadd.f32 %v3500_v49, %v2789_v43  ;;  %v8099_v55 = vadd.f32 %v3543_v51, %v2797_v45 }
 0xb6b   : > { %v3502_v4 = vpop.f32.mrf.mxu0  ;;  %v3545_v59 = vpop.f32.mrf.mxu1 }
 0xb6c   : > { %v3638_v62 = vmul.f32 %v8097_v52, %v8097_v52  ;;  %v3640_v61 = vmul.f32 %v8099_v55, %v8099_v55  ;;  %v8105_v2 = vadd.f32 %v3502_v4, %v2793_v46  ;;  %v8107_v54 = vadd.f32 %v3545_v59, %v2801_v47 }
 0xb6d   : > { %v3504_v57 = vpop.f32.mrf.mxu0  ;;  %v3547_v40 = vpop.f32.mrf.mxu1 }
 0xb6e   : > { %v3654_v3 = vmul.f32 %v3638_v62, %v8097_v52  ;;  %v3656_v5 = vmul.f32 %v3640_v61, %v8099_v55  ;;  %v3639_v9 = vmul.f32 %v8105_v2, %v8105_v2  ;;  %v3641_v36 = vmul.f32 %v8107_v54, %v8107_v54 }
 0xb6f   : > { %v8115_v28 = vadd.f32 %v3504_v57, %v2789_v43  ;;  %v8117_v58 = vadd.f32 %v3547_v40, %v2797_v45  ;;  %v3506_v10 = vpop.f32.mrf.mxu0  ;;  %v3549_v12 = vpop.f32.mrf.mxu1 }
 0xb70   : > { %v3670_v16 = vmul.f32 0.044715, %v3654_v3  ;;  %v3672_v48 = vmul.f32 0.044715, %v3656_v5  ;;  %v3655_v17 = vmul.f32 %v3639_v9, %v8105_v2  ;;  %v3657_v18 = vmul.f32 %v3641_v36, %v8107_v54 }
 0xb71   : > { %v3646_v32 = vmul.f32 %v8115_v28, %v8115_v28  ;;  %v3648_v20 = vmul.f32 %v8117_v58, %v8117_v58  ;;  %v8125_v21 = vadd.f32 %v3506_v10, %v2793_v46  ;;  %v8127_v22 = vadd.f32 %v3549_v12, %v2801_v47 }
 0xb72   : > { %v3686_v23 = vadd.f32 %v3670_v16, %v8097_v52  ;;  %v3688_v24 = vadd.f32 %v3672_v48, %v8099_v55  ;;  %v3671_v25 = vmul.f32 0.044715, %v3655_v17  ;;  %v3673_v29 = vmul.f32 0.044715, %v3657_v18 }
 0xb73   : > { %v3662_v50 = vmul.f32 %v3646_v32, %v8115_v28  ;;  %v3664_v30 = vmul.f32 %v3648_v20, %v8117_v58  ;;  %v3647_v31 = vmul.f32 %v8125_v21, %v8125_v21  ;;  %v3649_v53 = vmul.f32 %v8127_v22, %v8127_v22 }
 0xb74   : > { %v3702_v56 = vmul.f32 0.7978846, %v3686_v23  ;;  %v3704_v6 = vmul.f32 0.7978846, %v3688_v24  ;;  %v3687_v7 = vadd.f32 %v3671_v25, %v8105_v2  ;;  %v3689_v33 = vadd.f32 %v3673_v29, %v8107_v54 }
 0xb75   : > { %v3678_v0 = vmul.f32 0.044715, %v3662_v50  ;;  %v3680_v1 = vmul.f32 0.044715, %v3664_v30  ;;  %v3663_v34 = vmul.f32 %v3647_v31, %v8125_v21  ;;  %v3665_v11 = vmul.f32 %v3649_v53, %v8127_v22 }
 0xb76   : > { %6490 = vtanh.f32 %v3702_v56  ;;  %v3703_v35 = vmul.f32 0.7978846, %v3687_v7  ;;  %v3705_v37 = vmul.f32 0.7978846, %v3689_v33 }
 0xb77   : > { %6492 = vtanh.f32 %v3704_v6  ;;  %v3694_v38 = vadd.f32 %v3678_v0, %v8115_v28  ;;  %v3696_v39 = vadd.f32 %v3680_v1, %v8117_v58  ;;  %v3679_v41 = vmul.f32 0.044715, %v3663_v34 }
 0xb78   : > { %6494 = vtanh.f32 %v3703_v35  ;;  %v3681_v19 = vmul.f32 0.044715, %v3665_v11  ;;  %v6377_v35 = vld [vmem:[%s7558_s3 + $0x370] ss:$8 sps:$4 sm:$0xff]  }
 0xb79   : > { %6496 = vtanh.f32 %v3705_v37  ;;  %v3710_v43 = vmul.f32 0.7978846, %v3694_v38  ;;  %v3712_v45 = vmul.f32 0.7978846, %v3696_v39  ;;  %v3695_v46 = vadd.f32 %v3679_v41, %v8125_v21  ;;  %v6391_v37 = vld [vmem:[%s7558_s3 + $0x354] ss:$8 sps:$4 sm:$0xff]  }
 0xb7a   : > { %v3697_v47 = vadd.f32 %v3681_v19, %v8127_v22  ;;  %v6386_v38 = vld [vmem:[%s7558_s3 + $0x250] ss:$8 sps:$4 sm:$0xff]   ;;  %v6394_v41 = vld [vmem:[%s7558_s3 + $0x244] ss:$8 sps:$4 sm:$0xff]  }
 0xb7b   : > { %6498 = vtanh.f32 %v3710_v43  ;;  %v3711_v49 = vmul.f32 0.7978846, %v3695_v46  ;;  %v6389_v39 = vld [vmem:[%s7558_s3 + $0x350] ss:$8 sps:$4 sm:$0xff]   ;;  %v6397_v19 = vld [vmem:[%s7558_s3 + $0x344] ss:$8 sps:$4 sm:$0xff]  }
 0xb7c   : > { %6500 = vtanh.f32 %v3712_v45  ;;  %v3713_v51 = vmul.f32 0.7978846, %v3697_v47  ;;  %v6392_v43 = vld [vmem:[%s7558_s3 + $0x240] ss:$8 sps:$4 sm:$0xff]   ;;  %v6400_v46 = vld [vmem:[%s7558_s3 + $0x234] ss:$8 sps:$4 sm:$0xff]  }
 0xb7d   : > { %6502 = vtanh.f32 %v3711_v49  ;;  %v6395_v45 = vld [vmem:[%s7558_s3 + $0x340] ss:$8 sps:$4 sm:$0xff]   ;;  %v6403_v47 = vld [vmem:[%s7558_s3 + $0x334] ss:$8 sps:$4 sm:$0xff]   ;;  %v6398_v49 = vld [vmem:[%s7558_s3 + $0x230] ss:$8 sps:$4 sm:$0xff]  }
 0xb7e   : > { %6504 = vtanh.f32 %v3713_v51  ;;  %v6401_v51 = vld [vmem:[%s7558_s3 + $0x330] ss:$8 sps:$4 sm:$0xff]  }
 0xb83   : > { %v6491_v4 = vpop.eup %6490 }
 0xb84   : > { %v6493_v59 = vpop.eup %6492  ;;  %v3734_v3 = vadd.f32 1.0, %v6491_v4  ;;  %v6406_v4 = vld [vmem:[%s7558_s3 + $0x224] ss:$8 sps:$4 sm:$0xff]  }
 0xb85   : > { %v6495_v62 = vpop.eup %6494  ;;  %v3736_v36 = vadd.f32 1.0, %v6493_v59  ;;  %v2812_v59 = vsub.s32 6, %v7659_v60 }
 0xb86   : > { %v6497_v61 = vpop.eup %6496  ;;  %v3735_v57 = vadd.f32 1.0, %v6495_v62  ;;  %v3750_v20 = vmul.f32 0.5, %v3734_v3  ;;  %v6409_v62 = vld [vmem:[%s7558_s3 + $0x324] ss:$8 sps:$4 sm:$0xff]   ;;  %v2805_v3 = vrot.slane %v8085_v42, %v1240_v8 }
 0xb87   : > { %v3737_v5 = vadd.f32 1.0, %v6497_v61  ;;  %v3752_v29 = vmul.f32 0.5, %v3736_v36  ;;  %v2816_v61 = vsub.s32 7, %v7659_v60  ;;  %v6415_v36 = vld [vmem:[%s7558_s3 + $0x314] ss:$8 sps:$4 sm:$0xff]  }
 0xb88   : > { %v6499_v40 = vpop.eup %6498  ;;  %v3751_v32 = vmul.f32 0.5, %v3735_v57  ;;  %v3766_v7 = vmul.f32 %v3750_v20, %v8097_v52  ;;  %v6385_v52 = vld [vmem:[%s7558_s3 + $0x364] ss:$8 sps:$4 sm:$0xff]   ;;  %v6404_v57 = vld [vmem:[%s7558_s3 + $0x220] ss:$8 sps:$4 sm:$0xff]  }
 0xb89   : > { %v6501_v9 = vpop.eup %6500  ;;  %v3742_v10 = vadd.f32 1.0, %v6499_v40  ;;  %v3753_v25 = vmul.f32 0.5, %v3737_v5  ;;  %v3768_v1 = vmul.f32 %v3752_v29, %v8099_v55  ;;  %v6380_v55 = vld [vmem:[%s7558_s3 + $0x260] ss:$8 sps:$4 sm:$0xff]   ;;  %v2813_v5 = vrot.slane %v8085_v42, %v2812_v59  ;;  %v6418_v60 = vld [vmem:[%s7558_s3 + $0x204] ss:$8 sps:$4 sm:$0xff]  }
 0xb8a   : > { %v6503_v12 = vpop.eup %6502  ;;  %v3744_v16 = vadd.f32 1.0, %v6501_v9  ;;  %v3767_v56 = vmul.f32 %v3751_v32, %v8105_v2  ;;  %v6382_v2 = vld [vmem:[%s7558_s3 + $0x264] ss:$8 sps:$4 sm:$0xff]   ;;  %v6407_v40 = vld [vmem:[%s7558_s3 + $0x320] ss:$8 sps:$4 sm:$0xff]  }
 0xb8b   : > { %v6505_v48 = vpop.eup %6504  ;;  %v3758_v17 = vmul.f32 0.5, %v3742_v10  ;;  %v3743_v18 = vadd.f32 1.0, %v6503_v12  ;;  %v3769_v33 = vmul.f32 %v3753_v25, %v8107_v54  ;;  %v6383_v54 = vld [vmem:[%s7558_s3 + $0x360] ss:$8 sps:$4 sm:$0xff]   ;;  %v6412_v9 = vld [vmem:[%s7558_s3 + $0x214] ss:$8 sps:$4 sm:$0xff]   ;;  %v2809_v10 = vrot.slane %v8085_v42, %v1244_v26 }
 0xb8c   : > { %v3760_v23 = vmul.f32 0.5, %v3744_v16  ;;  %v3745_v24 = vadd.f32 1.0, %v6505_v48  ;;  %v2817_v12 = vrot.slane %v8085_v42, %v2816_v61  ;;  %v6413_v32 = vld [vmem:[%s7558_s3 + $0x310] ss:$8 sps:$4 sm:$0xff]   ;;  %v6421_v26 = vld [vmem:[%s7558_s3 + $0x304] ss:$8 sps:$4 sm:$0xff]  }
 0xb8d   : > { %v3759_v50 = vmul.f32 0.5, %v3743_v18  ;;  %v3774_v30 = vmul.f32 %v3758_v17, %v8115_v28  ;;  %v6374_v28 = vld [vmem:[%s7558_s3 + $0x270] ss:$8 sps:$4 sm:$0xff]   ;;  %v6433_v59 = vld [vmem:[%s7558_s3 + $0x3e4] ss:$8 sps:$4 sm:$0xff]  }
 0xb8e   : > { %v3761_v31 = vmul.f32 0.5, %v3745_v24  ;;  %v3776_v53 = vmul.f32 %v3760_v23, %v8117_v58  ;;  %v6410_v17 = vld [vmem:[%s7558_s3 + $0x210] ss:$8 sps:$4 sm:$0xff]  }
 0xb8f   : > { %v3775_v6 = vmul.f32 %v3759_v50, %v8125_v21  ;;  %v3911_v58 = vpack.c.bf16 %v3774_v30, %v3766_v7 }
 0xb90   : > { %v3777_v0 = vmul.f32 %v3761_v31, %v8127_v22  ;;  %v3913_v21 = vpack.c.bf16 %v3776_v53, %v3768_v1  ;;  %v6388_v22 = vld [vmem:[%s7558_s3 + $0x254] ss:$8 sps:$4 sm:$0xff]   ;;  %v6416_v31 = vld [vmem:[%s7558_s3 + $0x200] ss:$8 sps:$4 sm:$0xff]  }
 0xb91   : > { %v3912_v34 = vpack.c.bf16 %v3775_v6, %v3767_v56 }
 0xb92   : > { %v3914_v11 = vpack.c.bf16 %v3777_v0, %v3769_v33  ;;  %v6419_v33 = vld [vmem:[%s7558_s3 + $0x300] ss:$8 sps:$4 sm:$0xff]   ;;  %v6424_v0 = vld [vmem:[%s7558_s3 + $0x2f4] ss:$8 sps:$4 sm:$0xff]  }
 0xb93   : > { %4602 = vmatprep.mubr.bf16.mxu0 %v3912_v34 }
 0xb94   : > { %4645 = vmatprep.mubr.bf16.mxu1 %v3914_v11  ;;  %4603 = vmatmul.mubr.bf16.vlgmr.msra.gmra.mxu0 %v3911_v58 }
 0xb95   : > { %4646 = vmatmul.mubr.bf16.vlgmr.msra.gmra.mxu1 %v3913_v21  ;;  %4657 = vmatpush1.bf16.msra.mxu0 %v6374_v28 }
 0xb96   : > { %4700 = vmatpush1.bf16.msra.mxu1 %v6377_v35  ;;  %4658 = vmatprep.subr.bf16.mxu0 %v6382_v2  ;;  %v6427_v35 = vld [vmem:[%s7558_s3 + $0x3f4] ss:$8 sps:$4 sm:$0xff]  }
 0xb97   : > { %4701 = vmatprep.subr.bf16.mxu1 %v6385_v52 }
 0xb99   : > { %4659 = vmatpush1.bf16.msra.mxu0 %v6380_v55 }
 0xb9a   : > { %4702 = vmatpush1.bf16.msra.mxu1 %v6383_v54  ;;  %4660 = vmatprep.subr.bf16.mxu0 %v6388_v22 }
 0xb9b   : > { %4703 = vmatprep.subr.bf16.mxu1 %v6391_v37 }
 0xb9d   : > { %4661 = vmatpush1.bf16.msra.mxu0 %v6386_v38  ;;  %v6422_v38 = vld [vmem:[%s7558_s3 + $0x2f0] ss:$8 sps:$4 sm:$0xff]  }
 0xb9e   : > { %4704 = vmatpush1.bf16.msra.mxu1 %v6389_v39  ;;  %4662 = vmatprep.subr.bf16.mxu0 %v6394_v41  ;;  %v6425_v39 = vld [vmem:[%s7558_s3 + $0x3f0] ss:$8 sps:$4 sm:$0xff]  }
 0xb9f   : > { %4705 = vmatprep.subr.bf16.mxu1 %v6397_v19 }
 0xba1   : > { %4663 = vmatpush1.bf16.msra.mxu0 %v6392_v43 }
 0xba2   : > { %4706 = vmatpush1.bf16.msra.mxu1 %v6395_v45  ;;  %4664 = vmatprep.subr.bf16.mxu0 %v6400_v46  ;;  %v6430_v46 = vld [vmem:[%s7558_s3 + $0x2e4] ss:$8 sps:$4 sm:$0xff]  }
 0xba3   : > { %4707 = vmatprep.subr.bf16.mxu1 %v6403_v47 }
 0xba5   : > { %4665 = vmatpush1.bf16.msra.mxu0 %v6398_v49 }
 0xba6   : > { %4708 = vmatpush1.bf16.msra.mxu1 %v6401_v51  ;;  %4666 = vmatprep.subr.bf16.mxu0 %v6406_v4 }
 0xba7   : > { %4709 = vmatprep.subr.bf16.mxu1 %v6409_v62 }
 0xba9   : > { %4667 = vmatpush1.bf16.msra.mxu0 %v6404_v57  ;;  %v3586_v16 = vpop.f32.mrf.mxu0  ;;  %v3629_v48 = vpop.f32.mrf.mxu1 }
 0xbaa   : > { %4710 = vmatpush1.bf16.msra.mxu1 %v6407_v40  ;;  %v8188_v18 = vadd.f32 %v3586_v16, %v2805_v3  ;;  %v8190_v8 = vadd.f32 %v3629_v48, %v2813_v5  ;;  %4668 = vmatprep.subr.bf16.mxu0 %v6412_v9 }
 0xbab   : > { %v3588_v20 = vpop.f32.mrf.mxu0  ;;  %v3631_v23 = vpop.f32.mrf.mxu1  ;;  %4711 = vmatprep.subr.bf16.mxu1 %v6415_v36 }
 0xbac   : > { %v3642_v42 = vmul.f32 %v8188_v18, %v8188_v18  ;;  %v3644_v24 = vmul.f32 %v8190_v8, %v8190_v8  ;;  %v8199_v25 = vadd.f32 %v3588_v20, %v2809_v10  ;;  %v8201_v29 = vadd.f32 %v3631_v23, %v2817_v12 }
 0xbad   : > { %4669 = vmatpush1.bf16.msra.mxu0 %v6410_v17  ;;  %v3590_v50 = vpop.f32.mrf.mxu0  ;;  %v3633_v30 = vpop.f32.mrf.mxu1  ;;  %v6436_v17 = vld [vmem:[%s7558_s3 + $0x2d4] ss:$8 sps:$4 sm:$0xff]  }
 0xbae   : > { %v3658_v53 = vmul.f32 %v3642_v42, %v8188_v18  ;;  %v3660_v56 = vmul.f32 %v3644_v24, %v8190_v8  ;;  %v3643_v6 = vmul.f32 %v8199_v25, %v8199_v25  ;;  %v3645_v7 = vmul.f32 %v8201_v29, %v8201_v29  ;;  %4712 = vmatpush1.bf16.msra.mxu1 %v6413_v32 }
 0xbaf   : > { %v8212_v1 = vadd.f32 %v3590_v50, %v2805_v3  ;;  %v8214_v34 = vadd.f32 %v3633_v30, %v2813_v5  ;;  %v3592_v28 = vpop.f32.mrf.mxu0  ;;  %v3635_v11 = vpop.f32.mrf.mxu1  ;;  %4670 = vmatprep.subr.bf16.mxu0 %v6418_v60  ;;  %4713 = vmatprep.subr.bf16.mxu1 %v6421_v26  ;;  %v6428_v3 = vld [vmem:[%s7558_s3 + $0x2e0] ss:$8 sps:$4 sm:$0xff]   ;;  %v6439_v60 = vld [vmem:[%s7558_s3 + $0x3d4] ss:$8 sps:$4 sm:$0xff]   ;;  %v6434_v30 = vld [vmem:[%s7558_s3 + $0x2d0] ss:$8 sps:$4 sm:$0xff]  }
 0xbb0   : > { %v3674_v58 = vmul.f32 0.044715, %v3658_v53  ;;  %v3676_v2 = vmul.f32 0.044715, %v3660_v56  ;;  %v3659_v21 = vmul.f32 %v3643_v6, %v8199_v25  ;;  %v3661_v52 = vmul.f32 %v3645_v7, %v8201_v29  ;;  %v6437_v53 = vld [vmem:[%s7558_s3 + $0x3d0] ss:$8 sps:$4 sm:$0xff]  }
 0xbb1   : > { %v3650_v55 = vmul.f32 %v8212_v1, %v8212_v1  ;;  %v3652_v54 = vmul.f32 %v8214_v34, %v8214_v34  ;;  %v8223_v22 = vadd.f32 %v3592_v28, %v2809_v10  ;;  %v8225_v37 = vadd.f32 %v3635_v11, %v2817_v12  ;;  %4671 = vmatpush1.bf16.msra.mxu0 %v6416_v31  ;;  %v6431_v12 = vld [vmem:[%s7558_s3 + $0x3e0] ss:$8 sps:$4 sm:$0xff]   ;;  %v6442_v56 = vld [vmem:[%s7558_s3 + $0x2c4] ss:$8 sps:$4 sm:$0xff]   ;;  %v6448_v11 = vld [vmem:[%s7558_s3 + $0x2b4] ss:$8 sps:$4 sm:$0xff]  }
 0xbb2   : > { %v3690_v41 = vadd.f32 %v3674_v58, %v8188_v18  ;;  %v3692_v19 = vadd.f32 %v3676_v2, %v8190_v8  ;;  %v3675_v43 = vmul.f32 0.044715, %v3659_v21  ;;  %v3677_v45 = vmul.f32 0.044715, %v3661_v52  ;;  %4714 = vmatpush1.bf16.msra.mxu1 %v6419_v33  ;;  %4672 = vmatprep.subr.bf16.mxu0 %v6424_v0  ;;  %v6445_v7 = vld [vmem:[%s7558_s3 + $0x3c4] ss:$8 sps:$4 sm:$0xff]  }
 0xbb3   : > { %v3666_v47 = vmul.f32 %v3650_v55, %v8212_v1  ;;  %v3668_v49 = vmul.f32 %v3652_v54, %v8214_v34  ;;  %v3651_v51 = vmul.f32 %v8223_v22, %v8223_v22  ;;  %v3653_v4 = vmul.f32 %v8225_v37, %v8225_v37  ;;  %4715 = vmatprep.subr.bf16.mxu1 %v6427_v35  ;;  %v6440_v0 = vld [vmem:[%s7558_s3 + $0x2c0] ss:$8 sps:$4 sm:$0xff]   ;;  %v6451_v35 = vld [vmem:[%s7558_s3 + $0x3b4] ss:$8 sps:$4 sm:$0xff]   ;;  %v6446_v58 = vld [vmem:[%s7558_s3 + $0x2b0] ss:$8 sps:$4 sm:$0xff]  }
 0xbb4   : > { %v3706_v62 = vmul.f32 0.7978846, %v3690_v41  ;;  %v3708_v61 = vmul.f32 0.7978846, %v3692_v19  ;;  %v3691_v57 = vadd.f32 %v3675_v43, %v8199_v25  ;;  %v3693_v40 = vadd.f32 %v3677_v45, %v8201_v29  ;;  %v6443_v28 = vld [vmem:[%s7558_s3 + $0x3c0] ss:$8 sps:$4 sm:$0xff]  }
 0xbb5   : > { %v3682_v5 = vmul.f32 0.044715, %v3666_v47  ;;  %v3684_v9 = vmul.f32 0.044715, %v3668_v49  ;;  %v3667_v36 = vmul.f32 %v3651_v51, %v8223_v22  ;;  %v3669_v10 = vmul.f32 %v3653_v4, %v8225_v37  ;;  %4673 = vmatpush2.bf16.msra.mxu0 %v6422_v38  ;;  %v6449_v2 = vld [vmem:[%s7558_s3 + $0x3b0] ss:$8 sps:$4 sm:$0xff]  }
 0xbb6   : > { %6506 = vtanh.f32 %v3706_v62  ;;  %v3707_v16 = vmul.f32 0.7978846, %v3691_v57  ;;  %v3709_v48 = vmul.f32 0.7978846, %v3693_v40  ;;  %4716 = vmatpush2.bf16.msra.mxu1 %v6425_v39  ;;  %4674 = vmatprep.subr.bf16.mxu0 %v6430_v46  ;;  %v6454_v21 = vld [vmem:[%s7558_s3 + $0x2a4] ss:$8 sps:$4 sm:$0xff]  }
 0xbb7   : > { %6508 = vtanh.f32 %v3708_v61  ;;  %v3698_v32 = vadd.f32 %v3682_v5, %v8212_v1  ;;  %v3700_v20 = vadd.f32 %v3684_v9, %v8214_v34  ;;  %v3683_v23 = vmul.f32 0.044715, %v3667_v36  ;;  %4717 = vmatprep.subr.bf16.mxu1 %v6433_v59  ;;  %v6457_v55 = vld [vmem:[%s7558_s3 + $0x3a4] ss:$8 sps:$4 sm:$0xff]   ;;  %v6452_v39 = vld [vmem:[%s7558_s3 + $0x2a0] ss:$8 sps:$4 sm:$0xff]  }
 0xbb8   : > { %6510 = vtanh.f32 %v3707_v16  ;;  %v3685_v26 = vmul.f32 0.044715, %v3669_v10  ;;  %v6455_v19 = vld [vmem:[%s7558_s3 + $0x3a0] ss:$8 sps:$4 sm:$0xff]   ;;  %v6460_v43 = vld [vmem:[%s7558_s3 + $0x294] ss:$8 sps:$4 sm:$0xff]  }
 0xbb9   : > { %6512 = vtanh.f32 %v3709_v48  ;;  %v3714_v42 = vmul.f32 0.7978846, %v3698_v32  ;;  %v3716_v24 = vmul.f32 0.7978846, %v3700_v20  ;;  %v3699_v50 = vadd.f32 %v3683_v23, %v8223_v22  ;;  %4675 = vmatpush2.bf16.msra.mxu0 %v6428_v3  ;;  %v6463_v45 = vld [vmem:[%s7558_s3 + $0x394] ss:$8 sps:$4 sm:$0xff]  }
 0xbba   : > { %v3701_v31 = vadd.f32 %v3685_v26, %v8225_v37  ;;  %4718 = vmatpush2.bf16.msra.mxu1 %v6431_v12  ;;  %4676 = vmatprep.subr.bf16.mxu0 %v6436_v17  ;;  %v6458_v61 = vld [vmem:[%s7558_s3 + $0x290] ss:$8 sps:$4 sm:$0xff]   ;;  %v6466_v5 = vld [vmem:[%s7558_s3 + $0x284] ss:$8 sps:$4 sm:$0xff]  }
 0xbbb   : > { %6514 = vtanh.f32 %v3714_v42  ;;  %v3715_v6 = vmul.f32 0.7978846, %v3699_v50  ;;  %4719 = vmatprep.subr.bf16.mxu1 %v6439_v60  ;;  %v6461_v3 = vld [vmem:[%s7558_s3 + $0x390] ss:$8 sps:$4 sm:$0xff]   ;;  %v6469_v10 = vld [vmem:[%s7558_s3 + $0x384] ss:$8 sps:$4 sm:$0xff]  }
 0xbbc   : > { %6516 = vtanh.f32 %v3716_v24  ;;  %v3717_v33 = vmul.f32 0.7978846, %v3701_v31  ;;  %v6464_v60 = vld [vmem:[%s7558_s3 + $0x280] ss:$8 sps:$4 sm:$0xff]  }
 0xbbd   : > { %6518 = vtanh.f32 %v3715_v6  ;;  %4677 = vmatpush2.bf16.msra.mxu0 %v6434_v30  ;;  %v6467_v24 = vld [vmem:[%s7558_s3 + $0x380] ss:$8 sps:$4 sm:$0xff]   ;;  %s8457_s3 = sld [smem:[#allocation50_spill]] (!%p5800_p3) }
 0xbbe   : > { %6520 = vtanh.f32 %v3717_v33  ;;  %4720 = vmatpush2.bf16.msra.mxu1 %v6437_v53  ;;  %4678 = vmatprep.subr.bf16.mxu0 %v6442_v56 }
 0xbbf   : > { %4721 = vmatprep.subr.bf16.mxu1 %v6445_v7 }
 0xbc1   : > { %4679 = vmatpush2.bf16.msra.mxu0 %v6440_v0 }
 0xbc2   : > { %4722 = vmatpush2.bf16.msra.mxu1 %v6443_v28  ;;  %4680 = vmatprep.subr.bf16.mxu0 %v6448_v11 }
 0xbc3   : > { %v6507_v52 = vpop.eup %6506  ;;  %4723 = vmatprep.subr.bf16.mxu1 %v6451_v35 }
 0xbc4   : > { %v6509_v54 = vpop.eup %6508  ;;  %v3738_v49 = vadd.f32 1.0, %v6507_v52 }
 0xbc5   : > { %v6511_v38 = vpop.eup %6510  ;;  %4681 = vmatpush2.bf16.msra.mxu0 %v6446_v58  ;;  %v3740_v59 = vadd.f32 1.0, %v6509_v54 }
 0xbc6   : > { %v6513_v41 = vpop.eup %6512  ;;  %4724 = vmatpush2.bf16.msra.mxu1 %v6449_v2  ;;  %4682 = vmatprep.subr.bf16.mxu0 %v6454_v21  ;;  %v3739_v46 = vadd.f32 1.0, %v6511_v38  ;;  %v3754_v48 = vmul.f32 0.5, %v3738_v49 }
 0xbc7   : > { %4725 = vmatprep.subr.bf16.mxu1 %v6457_v55  ;;  %v3741_v51 = vadd.f32 1.0, %v6513_v41  ;;  %v3756_v23 = vmul.f32 0.5, %v3740_v59 }
 0xbc8   : > { %v6515_v47 = vpop.eup %6514  ;;  %v3755_v16 = vmul.f32 0.5, %v3739_v46  ;;  %v3770_v56 = vmul.f32 %v3754_v48, %v8188_v18  ;;  %v3910_v18 = vld [vmem:[%s8453_s20] sm:$0x3] }
 0xbc9   : > { %v6517_v4 = vpop.eup %6516  ;;  %v3746_v62 = vadd.f32 1.0, %v6515_v47  ;;  %4683 = vmatpush2.bf16.msra.mxu0 %v6452_v39  ;;  %v3757_v20 = vmul.f32 0.5, %v3741_v51 }
 0xbca   : > { %v6519_v57 = vpop.eup %6518  ;;  %v3748_v40 = vadd.f32 1.0, %v6517_v4  ;;  %4726 = vmatpush2.bf16.msra.mxu1 %v6455_v19  ;;  %4684 = vmatprep.subr.bf16.mxu0 %v6460_v43  ;;  %v3771_v31 = vmul.f32 %v3755_v16, %v8199_v25 }
 0xbcb   : > { %v6521_v9 = vpop.eup %6520  ;;  %v3762_v36 = vmul.f32 0.5, %v3746_v62  ;;  %4727 = vmatprep.subr.bf16.mxu1 %v6463_v45  ;;  %v3747_v12 = vadd.f32 1.0, %v6519_v57  ;;  %v3773_v6 = vmul.f32 %v3757_v20, %v8201_v29  ;;  %v3923_v29 = vrot.slane %v3910_v18, %v7666_v63 }
 0xbcc   : > { %v3764_v17 = vmul.f32 0.5, %v3748_v40  ;;  %v3749_v32 = vadd.f32 1.0, %v6521_v9 }
 0xbcd   : > { %4685 = vmatpush2.bf16.msra.mxu0 %v6458_v61  ;;  %v3763_v26 = vmul.f32 0.5, %v3747_v12  ;;  %v3778_v42 = vmul.f32 %v3762_v36, %v8212_v1  ;;  %v3772_v1 = vmul.f32 %v3756_v23, %v8190_v8  ;;  %v3927_v8 = vrot.slane %v3910_v18, %v7752_v44 }
 0xbce   : > { %4728 = vmatpush2.bf16.msra.mxu1 %v6461_v3  ;;  %4686 = vmatprep.subr.bf16.mxu0 %v6466_v5  ;;  %v3765_v50 = vmul.f32 0.5, %v3749_v32  ;;  %v3780_v30 = vmul.f32 %v3764_v17, %v8214_v34 }
 0xbcf   : > { %4729 = vmatprep.subr.bf16.mxu1 %v6469_v10  ;;  %v3779_v53 = vmul.f32 %v3763_v26, %v8223_v22  ;;  %v3915_v28 = vpack.c.bf16 %v3778_v42, %v3770_v56 }
 0xbd0   : > { %v3781_v7 = vmul.f32 %v3765_v50, %v8225_v37  ;;  %v3917_v34 = vpack.c.bf16 %v3780_v30, %v3772_v1 }
 0xbd1   : > { %4687 = vmatpush2.bf16.msra.mxu0 %v6464_v60  ;;  %v3916_v33 = vpack.c.bf16 %v3779_v53, %v3771_v31 }
 0xbd2   : > { %4730 = vmatpush2.bf16.msra.mxu1 %v6467_v24  ;;  %v3918_v0 = vpack.c.bf16 %v3781_v7, %v3773_v6 }
 0xbd3   : > { %4688 = vmatprep.mubr.bf16.mxu0 %v3916_v33 }
 0xbd4   : > { %4731 = vmatprep.mubr.bf16.mxu1 %v3918_v0  ;;  %4689 = vmatmul.mubr.bf16.vlgmr.msra.gmra.mxu0 %v3915_v28 }
 0xbd5   : > { %4732 = vmatmul.mubr.bf16.vlgmr.msra.gmra.mxu1 %v3917_v34  ;;  %v4746_v34 = vld [vmem:[%s7581_s23] sm:$0x3] }
 0xbd6   : > { %v4788_v18 = vrot.slane %v4746_v34, %v7752_v44 }
 0xc54   : > { %v4604_v25 = vpop.f32.mrf.mxu0 }
 0xc55   : > { %v4647_v22 = vpop.f32.mrf.mxu1  ;;  %v4605_v58 = vadd.f32 %v4604_v25, %v3923_v29  ;;  %v4747_v25 = vld [vmem:[%s8454_s25] sm:$0x3] }
 0xc56   : > { %v4606_v11 = vpop.f32.mrf.mxu0 }
 0xc57   : > { %v4649_v37 = vpop.f32.mrf.mxu1  ;;  %v4607_v21 = vadd.f32 %v4606_v11, %v3927_v8  ;;  %v4648_v55 = vadd.f32 %v4647_v22, %v4605_v58  ;;  %v4784_v22 = vrot.slane %v4746_v34, %v7666_v63 }
 0xc58   : > { %v4608_v35 = vpop.f32.mrf.mxu0 }
 0xc59   : > { %v4651_v2 = vpop.f32.mrf.mxu1  ;;  %v4609_v54 = vadd.f32 %v4608_v35, %v3923_v29  ;;  %v4650_v41 = vadd.f32 %v4649_v37, %v4607_v21  ;;  %v4799_v29 = vrot.slane %v4747_v25, %v7666_v63  ;;  %v4803_v37 = vrot.slane %v4747_v25, %v7752_v44 }
 0xc5a   : > { %v4610_v52 = vpop.f32.mrf.mxu0 }
 0xc5b   : > { %v4653_v38 = vpop.f32.mrf.mxu1  ;;  %v4611_v19 = vadd.f32 %v4610_v52, %v3927_v8  ;;  %v4652_v47 = vadd.f32 %v4651_v2, %v4609_v54 }
 0xc5d   : > { %v4654_v62 = vadd.f32 %v4653_v38, %v4611_v19 }
 0xc94   : > { %v4690_v39 = vpop.f32.mrf.mxu0 }
 0xc95   : > { %v4691_v43 = vadd.f32 %v4690_v39, %v4648_v55  ;;  %v4733_v45 = vpop.f32.mrf.mxu1 }
 0xc96   : > { %v4692_v46 = vpop.f32.mrf.mxu0 }
 0xc97   : > { %v4734_v49 = vadd.f32 %v4733_v45, %v4691_v43  ;;  %v4693_v51 = vadd.f32 %v4692_v46, %v4650_v41  ;;  %v4735_v4 = vpop.f32.mrf.mxu1 }
 0xc98   : > { %v4694_v59 = vpop.f32.mrf.mxu0 }
 0xc99   : > { %v4736_v61 = vadd.f32 %v4735_v4, %v4693_v51  ;;  %v4695_v57 = vadd.f32 %v4694_v59, %v4652_v47  ;;  %v4737_v40 = vpop.f32.mrf.mxu1  ;;  %v4742_v5 = vadd.f32 %v4734_v49, %v7944_v14 }
 0xc9a   : > { %v4696_v3 = vpop.f32.mrf.mxu0 }
 0xc9b   : > { %v4743_v9 = vadd.f32 %v4736_v61, %v7940_v27  ;;  %v4738_v36 = vadd.f32 %v4737_v40, %v4695_v57  ;;  %v4697_v10 = vadd.f32 %v4696_v3, %v4654_v62  ;;  %v4739_v12 = vpop.f32.mrf.mxu1 }
 0xc9d   : > { %v4740_v16 = vadd.f32 %v4739_v12, %v4697_v10  ;;  %v4748_v48 = vadd.f32 %v4743_v9, %v4742_v5  ;;  %v4744_v17 = vadd.f32 %v4738_v36, %v7946_v15 }
 0xc9f   : > { %v4745_v32 = vadd.f32 %v4740_v16, %v7942_v13  ;;  %4749 = vadd.xlane.f32.xlu0 %v4748_v48 }
 0xca1   : > { %v4751_v20 = vadd.f32 %v4745_v32, %v4744_v17 }
 0xca3   : > { %4752 = vadd.xlane.f32.xlu1 %v4751_v20 }
 0xd28   : > { %v4750_v23 = vpop.xlane.xlu0 %4749 }
 0xd29   : > { %v4754_v60 = vmul.f32 0.00390625, %v4750_v23 }
 0xd2b   : > { %v4756_v26 = vsub.f32 %v4742_v5, %v4754_v60  ;;  %v4757_v42 = vsub.f32 %v4743_v9, %v4754_v60 }
 0xd2c   : > { %v4753_v24 = vpop.xlane.xlu1 %4752 }
 0xd2d   : > { %v4755_v14 = vmul.f32 0.00390625, %v4753_v24  ;;  %v4760_v50 = vmul.f32 %v4756_v26, %v4756_v26  ;;  %v4761_v27 = vmul.f32 %v4757_v42, %v4757_v42 }
 0xd2f   : > { %v4758_v30 = vsub.f32 %v4744_v17, %v4755_v14  ;;  %v4759_v31 = vsub.f32 %v4745_v32, %v4755_v14  ;;  %v4764_v53 = vadd.f32 %v4761_v27, %v4760_v50 }
 0xd31   : > { %4765 = vadd.xlane.f32.xlu0 %v4764_v53  ;;  %v4762_v15 = vmul.f32 %v4758_v30, %v4758_v30  ;;  %v4763_v56 = vmul.f32 %v4759_v31, %v4759_v31 }
 0xd33   : > { %v4767_v13 = vadd.f32 %v4763_v56, %v4762_v15 }
 0xd35   : > { %4768 = vadd.xlane.f32.xlu1 %v4767_v13 }
 0xdba   : > { %v4766_v6 = vpop.xlane.xlu0 %4765 }
 0xdbb   : > { %v4770_v7 = vmul.f32 0.00390625, %v4766_v6 }
 0xdbd   : > { %v4772_v1 = vadd.f32 1e-12, %v4770_v7 }
 0xdbe   : > { %v4769_v33 = vpop.xlane.xlu1 %4768 }
 0xdbf   : > { %6522 = vrsqrt.f32 %v4772_v1  ;;  %v4771_v0 = vmul.f32 0.00390625, %v4769_v33 }
 0xdc1   : > { %v4773_v28 = vadd.f32 1e-12, %v4771_v0 }
 0xdc3   : > { %6524 = vrsqrt.f32 %v4773_v28 }
 0xdcc   : > { %v6523_v11 = vpop.eup %6522 }
 0xdcd   : > { %v4776_v8 = vmul.f32 %v6523_v11, %v4756_v26  ;;  %v4777_v35 = vmul.f32 %v6523_v11, %v4757_v42 }
 0xdcf   : > { %v4791_v58 = vmul.f32 %v4784_v22, %v4776_v8  ;;  %v4792_v2 = vmul.f32 %v4788_v18, %v4777_v35 }
 0xdd0   : > { %v6525_v21 = vpop.eup %6524 }
 0xdd1   : > { %v4806_v52 = vadd.f32 %v4799_v29, %v4791_v58  ;;  %v4807_v55 = vadd.f32 %v4803_v37, %v4792_v2  ;;  %v4778_v54 = vmul.f32 %v6525_v21, %v4758_v30  ;;  %v4779_v38 = vmul.f32 %v6525_v21, %v4759_v31 }
 0xdd3   : > { %4810 = vst [vmem:[#allocation2 + $0x10] sm:$0xff] %v4806_v52  ;;  %4811 = vst [vmem:[#allocation2] sm:$0xff] %v4807_v55  ;;  %v4793_v39 = vmul.f32 %v4784_v22, %v4778_v54  ;;  %v4794_v41 = vmul.f32 %v4788_v18, %v4779_v38  ;;  %4817 = sbr.rel (%p5800_p3) target bundleno = 4297 (0x10c9), region = 160 }
 0xdd5   : > { %v4808_v19 = vadd.f32 %v4799_v29, %v4793_v39  ;;  %v4809_v43 = vadd.f32 %v4803_v37, %v4794_v41 }
 0xdd7   : > { %4812 = vst [vmem:[#allocation2 + $0x18] sm:$0xff] %v4808_v19  ;;  %4813 = vst [vmem:[#allocation2 + $0x8] sm:$0xff] %v4809_v43 }
 0xdd8   : > { %v6529_v63 = vld [vmem:[#allocation20 + $0x78] sm:$0xff]   ;;  %v4821_v45 = vrot.slane %v4809_v43, 7  ;;  %v6531_v46 = vld [vmem:[#allocation20 + $0x70] sm:$0xff]   ;;  %vm4824_vm3 = vcmask 1040384   ;;  %v6533_v51 = vld [vmem:[#allocation20 + $0x68] sm:$0xff]   ;;  %v4820_v10 = vrot.slane %v4808_v19, 7 }
 0xdd9   : > { %v6530_v44 = vld [vmem:[#allocation20 + $0x38] sm:$0xff]   ;;  %5847 = vmatprep.subr.bf16.mxu0 %v6529_v63  ;;  %v6532_v47 = vld [vmem:[#allocation20 + $0x30] sm:$0xff]   ;;  %v6534_v59 = vld [vmem:[#allocation20 + $0x28] sm:$0xff]   ;;  %vm5005_vm4 = vcmask 1041408   ;;  %vm5024_vm5 = vcmask 1024   ;;  %vm5038_vm6 = vcmask 0  }
 0xdda   : > { %5848 = vmatpush3.bf16.msra.mxu0 %v6530_v44  ;;  %v4826_v49 = vsel %vm4824_vm3, %v4807_v55, %v4821_v45  ;;  %v6535_v62 = vld [vmem:[#allocation20 + $0x60] sm:$0xff]   ;;  %v6537_v57 = vld [vmem:[#allocation20 + $0x58] sm:$0xff]   ;;  %v6539_v3 = vld [vmem:[#allocation20 + $0x50] sm:$0xff]   ;;  %v4825_v48 = vsel %vm4824_vm3, %v4806_v52, %v4820_v10 }
 0xddb   : > { %5849 = vmatprep.subr.bf16.mxu0 %v6531_v46  ;;  %v4828_v4 = vpack.c.bf16 %v4826_v49, %v4826_v49  ;;  %v6536_v61 = vld [vmem:[#allocation20 + $0x20] sm:$0xff]   ;;  %v6538_v40 = vld [vmem:[#allocation20 + $0x18] sm:$0xff]   ;;  %v6540_v5 = vld [vmem:[#allocation20 + $0x10] sm:$0xff]   ;;  %v4827_v17 = vpack.c.bf16 %v4825_v48, %v4825_v48 }
 0xddc   : > { %v6541_v9 = vld [vmem:[#allocation20 + $0x48] sm:$0xff]   ;;  %v6543_v12 = vld [vmem:[#allocation20 + $0x40] sm:$0xff]  }
 0xddd   : > { %4996 = vmatprep.mubr.bf16.mxu0 %v4828_v4  ;;  %v6542_v36 = vld [vmem:[#allocation20 + $0x8] sm:$0xff]   ;;  %v6544_v16 = vld [vmem:[#allocation20] sm:$0xff]  }
 0xdde   : > { %5850 = vmatpush3.bf16.msra.mxu0 %v6532_v47  ;;  %v5801_v20 = vld [vmem:[%s8456_s26] ss:$0 sm:$0xff] }
 0xddf   : > { %5851 = vmatprep.subr.bf16.mxu0 %v6533_v51  ;;  %v5018_v42 = vld [vmem:[%s8457_s3] sm:$0x3] }
 0xde2   : > { %5852 = vmatpush3.bf16.msra.mxu0 %v6534_v59 }
 0xde3   : > { %5853 = vmatprep.subr.bf16.mxu0 %v6535_v62 }
 0xde6   : > { %5854 = vmatpush3.bf16.msra.mxu0 %v6536_v61 }
 0xde7   : > { %5855 = vmatprep.subr.bf16.mxu0 %v6537_v57 }
 0xdea   : > { %5856 = vmatpush3.bf16.msra.mxu0 %v6538_v40 }
 0xdeb   : > { %5857 = vmatprep.subr.bf16.mxu0 %v6539_v3 }
 0xdee   : > { %5858 = vmatpush3.bf16.msra.mxu0 %v6540_v5 }
 0xdef   : > { %5859 = vmatprep.subr.bf16.mxu0 %v6541_v9 }
 0xdf2   : > { %5860 = vmatpush3.bf16.msra.mxu0 %v6542_v36 }
 0xdf3   : > { %5861 = vmatprep.subr.bf16.mxu0 %v6543_v12 }
 0xdf6   : > { %5862 = vmatpush3.bf16.msra.mxu0 %v6544_v16 }
 0xdf9   : > { %4997 = vmatmul.mubr.bf16.vlgmr.msra.gmra.mxu0 %v4827_v17 }
 0xeb9   : > { %v5863_v32 = vpop.f32.mrf.mxu0 }
 0xebb   : > { %v5864_v23 = vpop.f32.mrf.mxu0 }
 0xebc   : > { %v5865_v60 = vadd.f32 %v5864_v23, %v5863_v32 }
 0xebd   : > { %v5866_v26 = vpop.f32.mrf.mxu0 }
 0xebe   : > { %v4999_v24 = vadd.f32 %v5865_v60, %v5801_v20 }
 0xebf   : > { %v5867_v14 = vpop.f32.mrf.mxu0 }
 0xec0   : > { %5004 = vst [vmem:[#allocation21] sm:$0x3] %v4999_v24  ;;  %v5006_v50 = vsel %vm5005_vm4, %v4999_v24, -inf  ;;  %v5019_v27 = vmul.f32 %v5018_v42, %v4999_v24 }
 0xec1   : > { %5007 = vmax.xlane.f32.xlu0 %v5006_v50 }
 0xec2   : > { %v5020_v30 = vsel %vm5005_vm4, %v5019_v27, 0.0 }
 0xec3   : > { %5021 = vadd.xlane.f32.xlu1 %v5020_v30 }
 0xf4a   : > { %v5008_v31 = vpop.xlane.xlu0 %5007 }
 0xf4b   : > { %v5009_v53 = vsub.f32 %v4999_v24, %v5008_v31 }
 0xf4c   : > { %v5022_v0 = vpop.xlane.xlu1 %5021 }
 0xf4d   : > { %v5010_v15 = vmul.f32 1.442695, %v5009_v53 }
 0xf4f   : > { %6545 = vpow2.f32 %v5010_v15 }
 0xf5c   : > { %v6546_v56 = vpop.eup %6545 }
 0xf5d   : > { %v5012_v13 = vsel %vm5005_vm4, %v6546_v56, 0.0 }
 0xf5e   : > { %5013 = vadd.xlane.f32.xlu0 %v5012_v13 }
 0xfe7   : > { %v5014_v6 = vpop.xlane.xlu0 %5013 }
 0xfe8   : > { %6547 = vlog2.f32 %v5014_v6 }
 0xff5   : > { %v6548_v7 = vpop.eup %6547 }
 0xff6   : > { %v5016_v1 = vmul.f32 0.6931472, %v6548_v7 }
 0xff8   : > { %v5017_v33 = vadd.f32 %v5016_v1, %v5008_v31 }
 0xffa   : > { %v5023_v28 = vsub.f32 %v5017_v33, %v5022_v0 }
 0xffc   : > { %v5025_v34 = vsel %vm5024_vm5, %v5023_v28, 0.0 }
 0xffd   : > { %5026 = vadd.xlane.f32.xlu1 %v5025_v34 }
0x1086   : > { %v5027_v25 = vpop.xlane.xlu1 %5026 }
0x1087   : > { %v5028_v22 = vrot.slane %v5027_v25, 4 }
0x1089   : > { %v5029_v18 = vadd.f32 %v5028_v22, %v5027_v25 }
0x108b   : > { %v5030_v11 = vrot.slane %v5029_v18, 2 }
0x108d   : > { %v5031_v29 = vadd.f32 %v5030_v11, %v5029_v18 }
0x108f   : > { %v5032_v37 = vrot.slane %v5031_v29, 1 }
0x1091   : > { %v5033_v8 = vadd.f32 %v5032_v37, %v5031_v29 }
0x1093   : > { %5923 = vpush %v5033_v8 }
0x10c4   : > { %s5924_s23 = spop %5923 }
0x10c5   : > { %v5035_v35 = vstv %s5924_s23 }
0x10c6   : > { %v5037_v58 = vmul.f32 0.5, %v5035_v35 }
0x10c8   : > { %5039 = vst.msk [vmem:[#allocation22] sm:$0x1] %vm5038_vm6, %v5037_v58 }
0x10c9 PF: > { %s8458_s30 = sld [smem:[#allocation33_spill]]  ;;  %s7066_s18 = smov [#allocation21]  }
0x10ca   : > { %s5047_s15 = sshll.u32 %s7066_s18, 4  ;;  %s7067_s24 = smov [#allocation22]   ;;  %s5048_s15 = int_to_ptr.vmem [resolvable:$true] %s5047_s15 }
0x10cb   : > { %s5058_s21 = sshll.u32 %s7067_s24, 4  ;;  %s6931_s11 = scalar_lea.vmem %s5048_s15, 32  ;;  %s5059_s21 = int_to_ptr.vmem [resolvable:$true] %s5058_s21 }
0x10cc   : > { %p6932_p4 = scmp.ne.s32.totalorder %s5048_s15, %s6931_s11  ;;  %p6938_p8 = scmp.lt.s32.totalorder %s5048_s15, %s5048_s15 }
0x10cd   : > { %p6939_p10 = scmp.lt.s32.totalorder %s6931_s11, %s6931_s11 }
0x10cf   : > { %p6026_p1 = scmp.eq.s32.totalorder %s8458_s30, 1  ;;  %p6940_p6 = por %p6939_p10, %p6938_p8 }
0x10d1   : > { %p6933_p5 = pnand %p6932_p4, %p6026_p1 }
0x10d3   : > { %p6934_p7 = pneg %p6933_p5 }
0x10d5   : > { %p6941_p0 = pnand %p6940_p6, %p6934_p7 }
0x10d7   : > { %6944 = shalt.err (!%p6941_p0)
}
0x10d8   : > { %s8459_s7 = sld [smem:[#allocation51_spill]]  ;;  %s6955_s17 = scalar_lea.vmem %s5059_s21, 16 }
0x10d9   : > { %p6956_p9 = scmp.ne.s32.totalorder %s5059_s21, %s6955_s17  ;;  %s6961_s14 = scalar_lea.vmem %s5059_s21, 32 }
0x10da   : > { %p6962_p13 = scmp.lt.s32.totalorder %s5059_s21, %s5059_s21  ;;  %p6963_p2 = scmp.lt.s32.totalorder %s6961_s14, %s6955_s17 }
0x10db   : > { %p6957_p11 = pnand %p6956_p9, %p6026_p1 }
0x10dc   : > { %p6964_p3 = por %p6963_p2, %p6962_p13 }
0x10dd   : > { %p6958_p12 = pneg %p6957_p11 }
0x10de   : > { %5964 = dma.vmem_to_hbm [thread:$0]  (%p6026_p1), %s5048_s15, 32, %s8459_s7, [#allocation5]  }
0x10df   : > { %p6965_p4 = pnand %p6964_p3, %p6958_p12 }
0x10e1   : > { %6968 = shalt.err (!%p6965_p4)
}
0x10e2   : > { %s8460_s27 = sld [smem:[#allocation52_spill]] }
0x10e8   : > { %5966 = dma.vmem_to_hbm [thread:$0]  (%p6026_p1), %s5059_s21, 16, %s8460_s27, [#allocation23]  }
0x10e9   : > { %7016 = dma.done.wait (%p6026_p1), [#allocation5], 32  }
0x10ea   : > { %7018 = vsyncadd (%p6026_p1), [#allocation5], 4294967264 }
0x10eb   : > { %7020 = dma.done.wait (%p6026_p1), [#allocation23], 16  }
0x10ec   : > { %7022 = vsyncadd (%p6026_p1), [#allocation23], 4294967280 }
0x10ed PF: > { %s8461_s24 = sld [smem:[#allocation36_spill]] }
0x10ee   : > { %s8462_s1 = sld [smem:[#allocation31_spill]] }
0x10ef   : > { %s8463_s22 = sld [smem:[#allocation32_spill]] }
0x10f0   : > { %s8464_s23 = sld [smem:[#allocation37_spill]] }
0x10f3   : > { %p33_p5 = scmp.ge.s32.totalorder %s8461_s24, 4  }
0x10f5   :  { %35 = sbr.rel (!%p33_p5) target bundleno = 22 (0x16), region = 265 }
0x10fa   :  { %5075 = vsyncpa [#allocation4], 1 }
0x10fb   :  { %5077 = vsyncpa [#allocation4 + $0x1], 1 }
0x10fc   :  { %5078 = vsyncpa [#allocation7], 1 }
0x10fd   :  { %5079 = vsyncpa [#allocation10], 1 }
0x10fe   :  { %5080 = vsyncpa [#allocation5], 1 }
0x10ff   :  { %5082 = vsyncpa [#allocation5 + $0x1], 1 }
0x1100   :  { %5083 = vsyncpa [#allocation23], 1 }

</bundles_post_ra>
